<compile_context>
chip_gen: v7x
topology: tpu7x:2x2x1
jax: 0.10.0
libtpu: 0.0.40
codegen_flags: <defaults>
</compile_context>

<pallas_src>
import functools

import jax
import jax.numpy as jnp
from jax.experimental import pallas as pl
from jax.experimental.pallas import tpu as pltpu

F32 = jnp.float32
BF16 = jnp.bfloat16
BN_EPS = 1e-5
LANES = 128
# Conservative budget so the fused resident-y path fits the default scoped
# VMEM on v5e (16 MiB) / v6e (32 MiB) / v7x (32 MiB default, 64 MiB phys).
_FUSED_VMEM_BUDGET = 12 * 1024 * 1024


def _round_up(x, m):
    return (x + m - 1) // m * m


def _row_tile(m):
    """Largest row tile <= 1024 that divides m (multiple of 8 sublanes)."""
    if m <= 1024:
        return m
    for t in (1024, 512, 256, 128, 64, 32, 16, 8):
        if m % t == 0:
            return t
    # TODO(synk): pad M up to a multiple of 8 instead of a full-M block.
    return m


# ---------------------------------------------------------------------------
# Pallas kernels
# ---------------------------------------------------------------------------

def _fused_conv_bn_relu_kernel(x_ref, w_ref, g_ref, b_ref, o_ref,
                               y_sc, s_sc, q_sc, *, m_total, tm):
    """Fused conv (im2col matmul) + batch-stat accumulation + BN + ReLU.

    Grid = (M tiles,), 'arbitrary'.  The pre-BN activation is kept in the
    f32 VMEM scratch `y_sc`; stats accumulate in (1, Cp) scratches; the bf16
    output block (full M x Cp, constant index_map) is written only in the
    last-step epilogue, so the intermediate never touches HBM.
    """
    i = pl.program_id(0)

    @pl.when(i == 0)
    def _():
        s_sc[...] = jnp.zeros_like(s_sc)
        q_sc[...] = jnp.zeros_like(q_sc)

    # bf16 MXU matmul, f32 accumulation.  Conv bias omitted: it is exactly
    # cancelled by the training-mode BN mean subtraction.
    acc = jnp.dot(x_ref[...], w_ref[...], preferred_element_type=jnp.float32)

    row0 = pl.multiple_of(i * tm, tm)
    y_sc[pl.ds(row0, tm), :] = acc
    s_sc[...] += jnp.sum(acc, axis=0, keepdims=True)
    q_sc[...] += jnp.sum(acc * acc, axis=0, keepdims=True)

    @pl.when(i == pl.num_programs(0) - 1)
    def _():
        inv_m = 1.0 / m_total
        mean = s_sc[...] * inv_m
        var = jnp.maximum(q_sc[...] * inv_m - mean * mean, 0.0)
        scale = g_ref[...] * jax.lax.rsqrt(var + BN_EPS)     # EUP rsqrt
        shift = b_ref[...] - mean * scale
        o_ref[...] = jnp.maximum(y_sc[...] * scale + shift,
                                 0.0).astype(o_ref.dtype)


def _conv_stats_kernel(x_ref, w_ref, y_ref, s_ref, q_ref):
    """Fallback stage 1: matmul + resident (1, Cp) stats, bf16 y to HBM."""
    @pl.when(pl.program_id(0) == 0)
    def _():
        s_ref[...] = jnp.zeros_like(s_ref)
        q_ref[...] = jnp.zeros_like(q_ref)

    acc = jnp.dot(x_ref[...], w_ref[...], preferred_element_type=jnp.float32)
    y_ref[...] = acc.astype(y_ref.dtype)
    s_ref[...] += jnp.sum(acc, axis=0, keepdims=True)
    q_ref[...] += jnp.sum(acc * acc, axis=0, keepdims=True)


def _bn_relu_kernel(y_ref, sc_ref, sh_ref, o_ref):
    """Fallback stage 2: element-wise BN apply + ReLU."""
    y = y_ref[...].astype(jnp.float32)
    o_ref[...] = jnp.maximum(y * sc_ref[...] + sh_ref[...],
                             0.0).astype(o_ref.dtype)


# ---------------------------------------------------------------------------
# Conv3x3 + BatchNorm (training-mode batch stats) + ReLU stage
# ---------------------------------------------------------------------------

def conv3x3_bn_relu(x, w, gamma, beta, *, force_fallback=False):
    """x: (N, H, W, Cin); w: (9*Cin, Cout), row order (ky, kx, cin).

    Returns (N, H, W, Cout) bf16.
    """
    Nb, H, W, Cin = x.shape
    Cout = w.shape[-1]
    Cp = _round_up(Cout, LANES)          # lane-dense padded channel count
    M = Nb * H * W
    K = 9 * Cin

    # --- im2col patch extraction (XLA glue, stays inside the jit) ----------
    xp = jnp.pad(x.astype(BF16), ((0, 0), (1, 1), (1, 1), (0, 0)))
    patches = jnp.concatenate(
        [xp[:, dy:dy + H, dx:dx + W, :] for dy in range(3) for dx in range(3)],
        axis=-1)
    pat = patches.reshape(M, K)

    # --- zero-pad channels to a multiple of 128 lanes (lane-dense stores) --
    w_p = jnp.zeros((K, Cp), BF16).at[:, :Cout].set(w.astype(BF16))
    g_p = jnp.zeros((1, Cp), F32).at[0, :Cout].set(gamma.astype(F32))
    b_p = jnp.zeros((1, Cp), F32).at[0, :Cout].set(beta.astype(F32))

    tm = _row_tile(M)

    # VMEM estimate of the fused path: f32 y scratch + double-buffered bf16
    # output / patch / weight blocks + stats.
    fused_bytes = (M * Cp * 4 + 2 * M * Cp * 2 + 2 * tm * K * 2
                   + 2 * K * Cp * 2 + 8 * Cp * 4)

    if (not force_fallback) and fused_bytes <= _FUSED_VMEM_BUDGET:
        out = pl.pallas_call(
            functools.partial(_fused_conv_bn_relu_kernel, m_total=M, tm=tm),
            out_shape=jax.ShapeDtypeStruct((M, Cp), BF16),
            grid=(M // tm,),
            in_specs=[
                pl.BlockSpec((tm, K), lambda i: (i, 0)),   # patches
                pl.BlockSpec((K, Cp), lambda i: (0, 0)),   # weights (resident)
                pl.BlockSpec((1, Cp), lambda i: (0, 0)),   # gamma
                pl.BlockSpec((1, Cp), lambda i: (0, 0)),   # beta
            ],
            out_specs=pl.BlockSpec((M, Cp), lambda i: (0, 0)),
            scratch_shapes=[pltpu.VMEM((M, Cp), F32),      # pre-BN activation
                            pltpu.VMEM((1, Cp), F32),      # sum
                            pltpu.VMEM((1, Cp), F32)],     # sum of squares
            compiler_params=pltpu.CompilerParams(
                dimension_semantics=("arbitrary",)),
        )(pat, w_p, g_p, b_p)
    else:
        # Two-kernel fallback for large M (y does not fit VMEM resident).
        # NOTE(v7x): for very large shapes the M axis could be made
        # 'parallel' with per-tile partial stats to use both TensorCores.
        y, s, q = pl.pallas_call(
            _conv_stats_kernel,
            out_shape=(jax.ShapeDtypeStruct((M, Cp), BF16),
                       jax.ShapeDtypeStruct((1, Cp), F32),
                       jax.ShapeDtypeStruct((1, Cp), F32)),
            grid=(M // tm,),
            in_specs=[pl.BlockSpec((tm, K), lambda i: (i, 0)),
                      pl.BlockSpec((K, Cp), lambda i: (0, 0))],
            out_specs=(pl.BlockSpec((tm, Cp), lambda i: (i, 0)),
                       pl.BlockSpec((1, Cp), lambda i: (0, 0)),
                       pl.BlockSpec((1, Cp), lambda i: (0, 0))),
            compiler_params=pltpu.CompilerParams(
                dimension_semantics=("arbitrary",)),
        )(pat, w_p)

        mean = s / M
        var = jnp.maximum(q / M - mean * mean, 0.0)
        scale = g_p * jax.lax.rsqrt(var + BN_EPS)
        shift = b_p - mean * scale

        out = pl.pallas_call(
            _bn_relu_kernel,
            out_shape=jax.ShapeDtypeStruct((M, Cp), BF16),
            grid=(M // tm,),
            in_specs=[pl.BlockSpec((tm, Cp), lambda i: (i, 0)),
                      pl.BlockSpec((1, Cp), lambda i: (0, 0)),
                      pl.BlockSpec((1, Cp), lambda i: (0, 0))],
            out_specs=pl.BlockSpec((tm, Cp), lambda i: (i, 0)),
            compiler_params=pltpu.CompilerParams(
                dimension_semantics=("parallel",)),
        )(y, scale, shift)

    return out[:, :Cout].reshape(Nb, H, W, Cout)


# ---------------------------------------------------------------------------
# conv_block forward (matches the PyTorch module semantics, training-mode BN)
# ---------------------------------------------------------------------------

def conv_block_forward(x_nchw, params, *, force_fallback=False):
    x = jnp.transpose(x_nchw, (0, 2, 3, 1))            # NCHW -> NHWC (in-jit)
    # Conv biases b1/b2 are intentionally not used: a bias before
    # training-mode BatchNorm is exactly cancelled by the mean subtraction.
    h = conv3x3_bn_relu(x, params['w1'], params['g1'], params['be1'],
                        force_fallback=force_fallback)
    h = conv3x3_bn_relu(h, params['w2'], params['g2'], params['be2'],
                        force_fallback=force_fallback)
    return jnp.transpose(h, (0, 3, 1, 2)).astype(F32)   # back to NCHW, f32


# ---------------------------------------------------------------------------
# Pure-JAX f32 reference (mirrors the PyTorch module exactly, incl. bias)
# ---------------------------------------------------------------------------

def conv_block_reference(x_nchw, params):
    def stage(x, w, b, g, be):
        Cin, Cout = x.shape[-1], w.shape[-1]
        w4 = w.reshape(3, 3, Cin, Cout)                  # (ky, kx, cin, cout)
        y = jax.lax.conv_general_dilated(
            x, w4, window_strides=(1, 1), padding=((1, 1), (1, 1)),
            dimension_numbers=('NHWC', 'HWIO', 'NHWC')) + b
        mean = jnp.mean(y, axis=(0, 1, 2))
        var = jnp.mean(jnp.square(y - mean), axis=(0, 1, 2))
        return jnp.maximum((y - mean) * jax.lax.rsqrt(var + BN_EPS) * g + be,
                           0.0)

    x = jnp.transpose(x_nchw, (0, 2, 3, 1)).astype(F32)
    h = stage(x, params['w1'], params['b1'], params['g1'], params['be1'])
    h = stage(h, params['w2'], params['b2'], params['g2'], params['be2'])
    return jnp.transpose(h, (0, 3, 1, 2))


# ---------------------------------------------------------------------------
# Deterministic synthetic parameter init (shapes follow conv_block.__init__)
# ---------------------------------------------------------------------------

def init_params(key, ch_in=4, ch_out=32):
    k1, k2, k3, k4 = jax.random.split(key, 4)

    def conv_w(k, cin, cout):
        # Row order (ky, kx, cin) -> matches torch w.permute(2,3,1,0).reshape
        return jax.random.normal(k, (9 * cin, cout), F32) * (1.0 / (3.0 * (cin ** 0.5)))

    return dict(
        w1=conv_w(k1, ch_in, ch_out),
        b1=jax.random.normal(k2, (ch_out,), F32) * 0.01,   # cancelled by BN
        g1=jnp.ones((ch_out,), F32), be1=jnp.zeros((ch_out,), F32),
        w2=conv_w(k3, ch_out, ch_out),
        b2=jax.random.normal(k4, (ch_out,), F32) * 0.01,   # cancelled by BN
        g2=jnp.ones((ch_out,), F32), be2=jnp.zeros((ch_out,), F32),
    )


if __name__ == "__main__":
    key = jax.random.PRNGKey(0)
    kx, kp = jax.random.split(key)
    # NCHW input like the PyTorch module: batch=2, ch_in=4, 16x16, ch_out=32
    x = jax.random.normal(kx, (2, 4, 16, 16), F32)
    params = init_params(kp, ch_in=4, ch_out=32)

    # Fused single-kernel-per-stage path (default at this shape).
    fwd = jax.jit(conv_block_forward)
    out = jax.block_until_ready(fwd(x, params))
    assert out.shape == (2, 32, 16, 16), out.shape
    assert bool(jnp.all(jnp.isfinite(out)))

    # Check against the pure-JAX f32 reference (bf16 MXU -> loose tolerance).
    ref = jax.block_until_ready(jax.jit(conv_block_reference)(x, params))
    assert float(jnp.max(jnp.abs(out - ref))) < 0.2, "mismatch vs f32 reference"

    # Also exercise the large-M two-kernel fallback path at the small shape.
    fwd_fb = jax.jit(functools.partial(conv_block_forward, force_fallback=True))
    out_fb = jax.block_until_ready(fwd_fb(x, params))
    assert float(jnp.max(jnp.abs(out - out_fb))) < 0.1, "fused vs fallback mismatch"

    print("KERNEL_OK")
</pallas_src>

<mosaic_0001>
module attributes {stable_mosaic.version = 11 : i64} {
  func.func @_fused_conv_bn_relu_kernel(%arg0: i32, %arg1: memref<512x288xbf16, #tpu.memory_space<vmem>>, %arg2: memref<288x128xbf16, #tpu.memory_space<vmem>>, %arg3: memref<1x128xf32, #tpu.memory_space<vmem>>, %arg4: memref<1x128xf32, #tpu.memory_space<vmem>>, %arg5: memref<512x128xbf16, #tpu.memory_space<vmem>>, %arg6: memref<512x128xf32, #tpu.memory_space<vmem>>, %arg7: memref<1x128xf32, #tpu.memory_space<vmem>>, %arg8: memref<1x128xf32, #tpu.memory_space<vmem>>) attributes {dimension_semantics = [#tpu.dimension_semantics<arbitrary>], iteration_bounds = array<i64: 1>, scalar_prefetch = 0 : i64, scratch_operands = 3 : i64, tpu.core_type = #tpu.core_type<tc>, window_params = [{transform_indices = @transform_0, window_bounds = array<i64: 512, 288>}, {pipeline_mode = #tpu.pipeline_mode<synchronous>, transform_indices = @transform_1, window_bounds = array<i64: 288, 128>}, {pipeline_mode = #tpu.pipeline_mode<synchronous>, transform_indices = @transform_2, window_bounds = array<i64: 1, 128>}, {pipeline_mode = #tpu.pipeline_mode<synchronous>, transform_indices = @transform_3, window_bounds = array<i64: 1, 128>}, {pipeline_mode = #tpu.pipeline_mode<synchronous>, transform_indices = @transform_4, window_bounds = array<i64: 512, 128>}]} {
    %c0_i32 = arith.constant 0 : i32
    %0 = arith.cmpi eq, %arg0, %c0_i32 : i32
    %1 = arith.extui %0 : i1 to i32
    %c0_i32_0 = arith.constant 0 : i32
    %2 = arith.cmpi ne, %1, %c0_i32_0 : i32
    scf.if %2 {
      %cst_17 = arith.constant 0.000000e+00 : f32
      %24 = vector.broadcast %cst_17 : f32 to vector<1x128xf32>
      %c0_18 = arith.constant 0 : index
      %c0_19 = arith.constant 0 : index
      %25 = vector.load %arg7[%c0_18, %c0_19] : memref<1x128xf32, #tpu.memory_space<vmem>>, vector<1x128xf32>
      tpu.vector_store %arg7[%c0_18, %c0_19], %24 {strides = array<i32>} : memref<1x128xf32, #tpu.memory_space<vmem>>, vector<1x128xf32>,
      %cst_20 = arith.constant 0.000000e+00 : f32
      %26 = vector.broadcast %cst_20 : f32 to vector<1x128xf32>
      %c0_21 = arith.constant 0 : index
      %c0_22 = arith.constant 0 : index
      %27 = vector.load %arg8[%c0_21, %c0_22] : memref<1x128xf32, #tpu.memory_space<vmem>>, vector<1x128xf32>
      tpu.vector_store %arg8[%c0_21, %c0_22], %26 {strides = array<i32>} : memref<1x128xf32, #tpu.memory_space<vmem>>, vector<1x128xf32>,
    } else {
    }
    %c0 = arith.constant 0 : index
    %c0_1 = arith.constant 0 : index
    %3 = vector.load %arg1[%c0, %c0_1] : memref<512x288xbf16, #tpu.memory_space<vmem>>, vector<512x288xbf16>
    %c0_2 = arith.constant 0 : index
    %c0_3 = arith.constant 0 : index
    %4 = vector.load %arg2[%c0_2, %c0_3] : memref<288x128xbf16, #tpu.memory_space<vmem>>, vector<288x128xbf16>
    %cst = arith.constant dense<0.000000e+00> : vector<512x128xf32>
    %5 = tpu.matmul %3, %4, %cst {dimension_numbers = #tpu.dot_dimension_numbers<[1], [0], [0], [1], [0, 0, 1, 1], [], []>} : vector<512x288xbf16>, vector<288x128xbf16>, vector<512x128xf32> -> vector<512x128xf32>
    %c512_i32 = arith.constant 512 : i32
    %6 = arith.muli %arg0, %c512_i32 : i32
    %7 = tpu.assume_multiple %6, 512 : i32
    %8 = arith.index_cast %7 : i32 to index
    %c0_4 = arith.constant 0 : index
    %9 = vector.load %arg6[%8, %c0_4] : memref<512x128xf32, #tpu.memory_space<vmem>>, vector<512x128xf32>
    tpu.vector_store %arg6[%8, %c0_4], %5 {strides = array<i32>} : memref<512x128xf32, #tpu.memory_space<vmem>>, vector<512x128xf32>,
    %c0_5 = arith.constant 0 : index
    %c0_6 = arith.constant 0 : index
    %10 = vector.load %arg7[%c0_5, %c0_6] : memref<1x128xf32, #tpu.memory_space<vmem>>, vector<1x128xf32>
    %cst_7 = arith.constant dense<0.000000e+00> : vector<128xf32>
    %11 = vector.multi_reduction <add>, %5, %cst_7 [0] : vector<512x128xf32> to vector<128xf32>
    %12 = vector.shape_cast %11 : vector<128xf32> to vector<1x128xf32>
    %13 = arith.addf %10, %12 : vector<1x128xf32>
    %c0_8 = arith.constant 0 : index
    %c0_9 = arith.constant 0 : index
    %14 = vector.load %arg7[%c0_8, %c0_9] : memref<1x128xf32, #tpu.memory_space<vmem>>, vector<1x128xf32>
    tpu.vector_store %arg7[%c0_8, %c0_9], %13 {strides = array<i32>} : memref<1x128xf32, #tpu.memory_space<vmem>>, vector<1x128xf32>,
    %c0_10 = arith.constant 0 : index
    %c0_11 = arith.constant 0 : index
    %15 = vector.load %arg8[%c0_10, %c0_11] : memref<1x128xf32, #tpu.memory_space<vmem>>, vector<1x128xf32>
    %16 = arith.mulf %5, %5 : vector<512x128xf32>
    %cst_12 = arith.constant dense<0.000000e+00> : vector<128xf32>
    %17 = vector.multi_reduction <add>, %16, %cst_12 [0] : vector<512x128xf32> to vector<128xf32>
    %18 = vector.shape_cast %17 : vector<128xf32> to vector<1x128xf32>
    %19 = arith.addf %15, %18 : vector<1x128xf32>
    %c0_13 = arith.constant 0 : index
    %c0_14 = arith.constant 0 : index
    %20 = vector.load %arg8[%c0_13, %c0_14] : memref<1x128xf32, #tpu.memory_space<vmem>>, vector<1x128xf32>
    tpu.vector_store %arg8[%c0_13, %c0_14], %19 {strides = array<i32>} : memref<1x128xf32, #tpu.memory_space<vmem>>, vector<1x128xf32>,
    %c0_i32_15 = arith.constant 0 : i32
    %21 = arith.cmpi eq, %arg0, %c0_i32_15 : i32
    %22 = arith.extui %21 : i1 to i32
    %c0_i32_16 = arith.constant 0 : i32
    %23 = arith.cmpi ne, %22, %c0_i32_16 : i32
    scf.if %23 {
      %c0_17 = arith.constant 0 : index
      %c0_18 = arith.constant 0 : index
      %24 = vector.load %arg7[%c0_17, %c0_18] : memref<1x128xf32, #tpu.memory_space<vmem>>, vector<1x128xf32>
      %cst_19 = arith.constant 0.001953125 : f32
      %25 = vector.broadcast %cst_19 : f32 to vector<1x128xf32>
      %26 = arith.mulf %24, %25 : vector<1x128xf32>
      %c0_20 = arith.constant 0 : index
      %c0_21 = arith.constant 0 : index
      %27 = vector.load %arg8[%c0_20, %c0_21] : memref<1x128xf32, #tpu.memory_space<vmem>>, vector<1x128xf32>
      %cst_22 = arith.constant 0.001953125 : f32
      %28 = vector.broadcast %cst_22 : f32 to vector<1x128xf32>
      %29 = arith.mulf %27, %28 : vector<1x128xf32>
      %30 = arith.mulf %26, %26 : vector<1x128xf32>
      %31 = arith.subf %29, %30 : vector<1x128xf32>
      %cst_23 = arith.constant 0.000000e+00 : f32
      %32 = vector.broadcast %cst_23 : f32 to vector<1x128xf32>
      %33 = arith.maximumf %31, %32 : vector<1x128xf32>
      %c0_24 = arith.constant 0 : index
      %c0_25 = arith.constant 0 : index
      %34 = vector.load %arg3[%c0_24, %c0_25] : memref<1x128xf32, #tpu.memory_space<vmem>>, vector<1x128xf32>
      %cst_26 = arith.constant 9.99999974E-6 : f32
      %35 = vector.broadcast %cst_26 : f32 to vector<1x128xf32>
      %36 = arith.addf %33, %35 : vector<1x128xf32>
      %37 = math.rsqrt %36 : vector<1x128xf32>
      %38 = arith.mulf %34, %37 : vector<1x128xf32>
      %c0_27 = arith.constant 0 : index
      %c0_28 = arith.constant 0 : index
      %39 = vector.load %arg4[%c0_27, %c0_28] : memref<1x128xf32, #tpu.memory_space<vmem>>, vector<1x128xf32>
      %40 = arith.mulf %26, %38 : vector<1x128xf32>
      %41 = arith.subf %39, %40 : vector<1x128xf32>
      %c0_29 = arith.constant 0 : index
      %c0_30 = arith.constant 0 : index
      %42 = vector.load %arg6[%c0_29, %c0_30] : memref<512x128xf32, #tpu.memory_space<vmem>>, vector<512x128xf32>
      %43 = vector.broadcast %38 : vector<1x128xf32> to vector<512x128xf32>
      %44 = arith.mulf %42, %43 : vector<512x128xf32>
      %45 = vector.broadcast %41 : vector<1x128xf32> to vector<512x128xf32>
      %46 = arith.addf %44, %45 : vector<512x128xf32>
      %cst_31 = arith.constant 0.000000e+00 : f32
      %47 = vector.broadcast %cst_31 : f32 to vector<512x128xf32>
      %48 = arith.maximumf %46, %47 : vector<512x128xf32>
      %49 = arith.truncf %48 : vector<512x128xf32> to vector<512x128xbf16>
      %c0_32 = arith.constant 0 : index
      %c0_33 = arith.constant 0 : index
      %50 = vector.load %arg5[%c0_32, %c0_33] : memref<512x128xbf16, #tpu.memory_space<vmem>>, vector<512x128xbf16>
      tpu.vector_store %arg5[%c0_32, %c0_33], %49 {strides = array<i32>} : memref<512x128xbf16, #tpu.memory_space<vmem>>, vector<512x128xbf16>,
    } else {
    }
    return
  }
  func.func @transform_0(%arg0: i32) -> (i32, i32) {
    %c0_i32 = arith.constant 0 : i32
    %c0_i32_0 = arith.constant 0 : i32
    return %arg0, %c0_i32 : i32, i32
  }
  func.func @transform_1(%arg0: i32) -> (i32, i32) {
    %c0_i32 = arith.constant 0 : i32
    %c0_i32_0 = arith.constant 0 : i32
    %c0_i32_1 = arith.constant 0 : i32
    return %c0_i32, %c0_i32_0 : i32, i32
  }
  func.func @transform_2(%arg0: i32) -> (i32, i32) {
    %c0_i32 = arith.constant 0 : i32
    %c0_i32_0 = arith.constant 0 : i32
    %c0_i32_1 = arith.constant 0 : i32
    return %c0_i32, %c0_i32_0 : i32, i32
  }
  func.func @transform_3(%arg0: i32) -> (i32, i32) {
    %c0_i32 = arith.constant 0 : i32
    %c0_i32_0 = arith.constant 0 : i32
    %c0_i32_1 = arith.constant 0 : i32
    return %c0_i32, %c0_i32_0 : i32, i32
  }
  func.func @transform_4(%arg0: i32) -> (i32, i32) {
    %c0_i32 = arith.constant 0 : i32
    %c0_i32_0 = arith.constant 0 : i32
    %c0_i32_1 = arith.constant 0 : i32
    return %c0_i32, %c0_i32_0 : i32, i32
  }
}

module attributes {stable_mosaic.version = 11 : i64} {
  func.func @_fused_conv_bn_relu_kernel(%arg0: i32, %arg1: memref<512x36xbf16, #tpu.memory_space<vmem>>, %arg2: memref<36x128xbf16, #tpu.memory_space<vmem>>, %arg3: memref<1x128xf32, #tpu.memory_space<vmem>>, %arg4: memref<1x128xf32, #tpu.memory_space<vmem>>, %arg5: memref<512x128xbf16, #tpu.memory_space<vmem>>, %arg6: memref<512x128xf32, #tpu.memory_space<vmem>>, %arg7: memref<1x128xf32, #tpu.memory_space<vmem>>, %arg8: memref<1x128xf32, #tpu.memory_space<vmem>>) attributes {dimension_semantics = [#tpu.dimension_semantics<arbitrary>], iteration_bounds = array<i64: 1>, scalar_prefetch = 0 : i64, scratch_operands = 3 : i64, tpu.core_type = #tpu.core_type<tc>, window_params = [{transform_indices = @transform_0, window_bounds = array<i64: 512, 36>}, {pipeline_mode = #tpu.pipeline_mode<synchronous>, transform_indices = @transform_1, window_bounds = array<i64: 36, 128>}, {pipeline_mode = #tpu.pipeline_mode<synchronous>, transform_indices = @transform_2, window_bounds = array<i64: 1, 128>}, {pipeline_mode = #tpu.pipeline_mode<synchronous>, transform_indices = @transform_3, window_bounds = array<i64: 1, 128>}, {pipeline_mode = #tpu.pipeline_mode<synchronous>, transform_indices = @transform_4, window_bounds = array<i64: 512, 128>}]} {
    %c0_i32 = arith.constant 0 : i32
    %0 = arith.cmpi eq, %arg0, %c0_i32 : i32
    %1 = arith.extui %0 : i1 to i32
    %c0_i32_0 = arith.constant 0 : i32
    %2 = arith.cmpi ne, %1, %c0_i32_0 : i32
    scf.if %2 {
      %cst_17 = arith.constant 0.000000e+00 : f32
      %24 = vector.broadcast %cst_17 : f32 to vector<1x128xf32>
      %c0_18 = arith.constant 0 : index
      %c0_19 = arith.constant 0 : index
      %25 = vector.load %arg7[%c0_18, %c0_19] : memref<1x128xf32, #tpu.memory_space<vmem>>, vector<1x128xf32>
      tpu.vector_store %arg7[%c0_18, %c0_19], %24 {strides = array<i32>} : memref<1x128xf32, #tpu.memory_space<vmem>>, vector<1x128xf32>,
      %cst_20 = arith.constant 0.000000e+00 : f32
      %26 = vector.broadcast %cst_20 : f32 to vector<1x128xf32>
      %c0_21 = arith.constant 0 : index
      %c0_22 = arith.constant 0 : index
      %27 = vector.load %arg8[%c0_21, %c0_22] : memref<1x128xf32, #tpu.memory_space<vmem>>, vector<1x128xf32>
      tpu.vector_store %arg8[%c0_21, %c0_22], %26 {strides = array<i32>} : memref<1x128xf32, #tpu.memory_space<vmem>>, vector<1x128xf32>,
    } else {
    }
    %c0 = arith.constant 0 : index
    %c0_1 = arith.constant 0 : index
    %3 = vector.load %arg1[%c0, %c0_1] : memref<512x36xbf16, #tpu.memory_space<vmem>>, vector<512x36xbf16>
    %c0_2 = arith.constant 0 : index
    %c0_3 = arith.constant 0 : index
    %4 = vector.load %arg2[%c0_2, %c0_3] : memref<36x128xbf16, #tpu.memory_space<vmem>>, vector<36x128xbf16>
    %cst = arith.constant dense<0.000000e+00> : vector<512x128xf32>
    %5 = tpu.matmul %3, %4, %cst {dimension_numbers = #tpu.dot_dimension_numbers<[1], [0], [0], [1], [0, 0, 1, 1], [], []>} : vector<512x36xbf16>, vector<36x128xbf16>, vector<512x128xf32> -> vector<512x128xf32>
    %c512_i32 = arith.constant 512 : i32
    %6 = arith.muli %arg0, %c512_i32 : i32
    %7 = tpu.assume_multiple %6, 512 : i32
    %8 = arith.index_cast %7 : i32 to index
    %c0_4 = arith.constant 0 : index
    %9 = vector.load %arg6[%8, %c0_4] : memref<512x128xf32, #tpu.memory_space<vmem>>, vector<512x128xf32>
    tpu.vector_store %arg6[%8, %c0_4], %5 {strides = array<i32>} : memref<512x128xf32, #tpu.memory_space<vmem>>, vector<512x128xf32>,
    %c0_5 = arith.constant 0 : index
    %c0_6 = arith.constant 0 : index
    %10 = vector.load %arg7[%c0_5, %c0_6] : memref<1x128xf32, #tpu.memory_space<vmem>>, vector<1x128xf32>
    %cst_7 = arith.constant dense<0.000000e+00> : vector<128xf32>
    %11 = vector.multi_reduction <add>, %5, %cst_7 [0] : vector<512x128xf32> to vector<128xf32>
    %12 = vector.shape_cast %11 : vector<128xf32> to vector<1x128xf32>
    %13 = arith.addf %10, %12 : vector<1x128xf32>
    %c0_8 = arith.constant 0 : index
    %c0_9 = arith.constant 0 : index
    %14 = vector.load %arg7[%c0_8, %c0_9] : memref<1x128xf32, #tpu.memory_space<vmem>>, vector<1x128xf32>
    tpu.vector_store %arg7[%c0_8, %c0_9], %13 {strides = array<i32>} : memref<1x128xf32, #tpu.memory_space<vmem>>, vector<1x128xf32>,
    %c0_10 = arith.constant 0 : index
    %c0_11 = arith.constant 0 : index
    %15 = vector.load %arg8[%c0_10, %c0_11] : memref<1x128xf32, #tpu.memory_space<vmem>>, vector<1x128xf32>
    %16 = arith.mulf %5, %5 : vector<512x128xf32>
    %cst_12 = arith.constant dense<0.000000e+00> : vector<128xf32>
    %17 = vector.multi_reduction <add>, %16, %cst_12 [0] : vector<512x128xf32> to vector<128xf32>
    %18 = vector.shape_cast %17 : vector<128xf32> to vector<1x128xf32>
    %19 = arith.addf %15, %18 : vector<1x128xf32>
    %c0_13 = arith.constant 0 : index
    %c0_14 = arith.constant 0 : index
    %20 = vector.load %arg8[%c0_13, %c0_14] : memref<1x128xf32, #tpu.memory_space<vmem>>, vector<1x128xf32>
    tpu.vector_store %arg8[%c0_13, %c0_14], %19 {strides = array<i32>} : memref<1x128xf32, #tpu.memory_space<vmem>>, vector<1x128xf32>,
    %c0_i32_15 = arith.constant 0 : i32
    %21 = arith.cmpi eq, %arg0, %c0_i32_15 : i32
    %22 = arith.extui %21 : i1 to i32
    %c0_i32_16 = arith.constant 0 : i32
    %23 = arith.cmpi ne, %22, %c0_i32_16 : i32
    scf.if %23 {
      %c0_17 = arith.constant 0 : index
      %c0_18 = arith.constant 0 : index
      %24 = vector.load %arg7[%c0_17, %c0_18] : memref<1x128xf32, #tpu.memory_space<vmem>>, vector<1x128xf32>
      %cst_19 = arith.constant 0.001953125 : f32
      %25 = vector.broadcast %cst_19 : f32 to vector<1x128xf32>
      %26 = arith.mulf %24, %25 : vector<1x128xf32>
      %c0_20 = arith.constant 0 : index
      %c0_21 = arith.constant 0 : index
      %27 = vector.load %arg8[%c0_20, %c0_21] : memref<1x128xf32, #tpu.memory_space<vmem>>, vector<1x128xf32>
      %cst_22 = arith.constant 0.001953125 : f32
      %28 = vector.broadcast %cst_22 : f32 to vector<1x128xf32>
      %29 = arith.mulf %27, %28 : vector<1x128xf32>
      %30 = arith.mulf %26, %26 : vector<1x128xf32>
      %31 = arith.subf %29, %30 : vector<1x128xf32>
      %cst_23 = arith.constant 0.000000e+00 : f32
      %32 = vector.broadcast %cst_23 : f32 to vector<1x128xf32>
      %33 = arith.maximumf %31, %32 : vector<1x128xf32>
      %c0_24 = arith.constant 0 : index
      %c0_25 = arith.constant 0 : index
      %34 = vector.load %arg3[%c0_24, %c0_25] : memref<1x128xf32, #tpu.memory_space<vmem>>, vector<1x128xf32>
      %cst_26 = arith.constant 9.99999974E-6 : f32
      %35 = vector.broadcast %cst_26 : f32 to vector<1x128xf32>
      %36 = arith.addf %33, %35 : vector<1x128xf32>
      %37 = math.rsqrt %36 : vector<1x128xf32>
      %38 = arith.mulf %34, %37 : vector<1x128xf32>
      %c0_27 = arith.constant 0 : index
      %c0_28 = arith.constant 0 : index
      %39 = vector.load %arg4[%c0_27, %c0_28] : memref<1x128xf32, #tpu.memory_space<vmem>>, vector<1x128xf32>
      %40 = arith.mulf %26, %38 : vector<1x128xf32>
      %41 = arith.subf %39, %40 : vector<1x128xf32>
      %c0_29 = arith.constant 0 : index
      %c0_30 = arith.constant 0 : index
      %42 = vector.load %arg6[%c0_29, %c0_30] : memref<512x128xf32, #tpu.memory_space<vmem>>, vector<512x128xf32>
      %43 = vector.broadcast %38 : vector<1x128xf32> to vector<512x128xf32>
      %44 = arith.mulf %42, %43 : vector<512x128xf32>
      %45 = vector.broadcast %41 : vector<1x128xf32> to vector<512x128xf32>
      %46 = arith.addf %44, %45 : vector<512x128xf32>
      %cst_31 = arith.constant 0.000000e+00 : f32
      %47 = vector.broadcast %cst_31 : f32 to vector<512x128xf32>
      %48 = arith.maximumf %46, %47 : vector<512x128xf32>
      %49 = arith.truncf %48 : vector<512x128xf32> to vector<512x128xbf16>
      %c0_32 = arith.constant 0 : index
      %c0_33 = arith.constant 0 : index
      %50 = vector.load %arg5[%c0_32, %c0_33] : memref<512x128xbf16, #tpu.memory_space<vmem>>, vector<512x128xbf16>
      tpu.vector_store %arg5[%c0_32, %c0_33], %49 {strides = array<i32>} : memref<512x128xbf16, #tpu.memory_space<vmem>>, vector<512x128xbf16>,
    } else {
    }
    return
  }
  func.func @transform_0(%arg0: i32) -> (i32, i32) {
    %c0_i32 = arith.constant 0 : i32
    %c0_i32_0 = arith.constant 0 : i32
    return %arg0, %c0_i32 : i32, i32
  }
  func.func @transform_1(%arg0: i32) -> (i32, i32) {
    %c0_i32 = arith.constant 0 : i32
    %c0_i32_0 = arith.constant 0 : i32
    %c0_i32_1 = arith.constant 0 : i32
    return %c0_i32, %c0_i32_0 : i32, i32
  }
  func.func @transform_2(%arg0: i32) -> (i32, i32) {
    %c0_i32 = arith.constant 0 : i32
    %c0_i32_0 = arith.constant 0 : i32
    %c0_i32_1 = arith.constant 0 : i32
    return %c0_i32, %c0_i32_0 : i32, i32
  }
  func.func @transform_3(%arg0: i32) -> (i32, i32) {
    %c0_i32 = arith.constant 0 : i32
    %c0_i32_0 = arith.constant 0 : i32
    %c0_i32_1 = arith.constant 0 : i32
    return %c0_i32, %c0_i32_0 : i32, i32
  }
  func.func @transform_4(%arg0: i32) -> (i32, i32) {
    %c0_i32 = arith.constant 0 : i32
    %c0_i32_0 = arith.constant 0 : i32
    %c0_i32_1 = arith.constant 0 : i32
    return %c0_i32, %c0_i32_0 : i32, i32
  }
}

</mosaic_0001>

<bundles_post_ra>
// kernel: conv_block_forward.2
= control target key start
LH: loop header
LB: loop body
LE: loop exit
PB: predicated region body
PF: predicated region fallthrough
CT: control target
= control target key end

     0   :  { %vm268_vm0 = vcmask 293888   ;;  %vm365_vm1 = vcmask 1041408   ;;  %v2078_v36 = vmov 0.0   ;;  %s3266_s1 = inlined_call_operand.vmem [shape: bf16[36,128], index: 1, kind: input, shape index: {}]   ;;  %s3267_s0 = inlined_call_operand.vmem [shape: bf16[512,36], index: 0, kind: input, shape index: {}]   ;;  %s3268_s2 = inlined_call_operand.vmem [shape: f32[1,128], index: 2, kind: input, shape index: {}]   ;;  %s3269_s3 = inlined_call_operand.vmem [shape: f32[1,128], index: 3, kind: input, shape index: {}]   ;;  %s3270_s4 = inlined_call_operand.vmem [shape: bf16[512,128], index: 4, kind: output, shape index: {}]  }
   0x1   :  { %v2041_v0 = vld [vmem:[%s3266_s1] sm:$0xff]   ;;  %v2042_v1 = vld [vmem:[%s3266_s1 + $0x8] sm:$0xff]   ;;  %v2043_v2 = vld [vmem:[%s3266_s1 + $0x10] ss:$0 sps:$4 sm:$0x33]  }
   0x2   :  { %1962 = vmatprep.subr.bf16.mxu0 %v2041_v0  ;;  %v2044_v3 = vld [vmem:[%s3267_s0] sm:$0xff]   ;;  %2032 = vmatprep.subr.bf16.mxu1 %v2041_v0  ;;  %v367_v4 = vsel %vm365_vm1, %v2043_v2, 0  ;;  %v2045_v5 = vld [vmem:[%s3267_s0 + $0x8] sm:$0xff]   ;;  %v2046_v6 = vld [vmem:[%s3267_s0 + $0x10] sm:$0xff]   ;;  %22 = vst [vmem:[#allocation3] sm:$0x1] %v2078_v36 }
   0x3   :  { %1963 = vmatpush3.bf16.msra.mxu0 %v2041_v0  ;;  %2035 = vmatpush3.bf16.msra.mxu1 %v2041_v0  ;;  %v2047_v7 = vld [vmem:[%s3267_s0 + $0x18] sm:$0xff]   ;;  %v2048_v8 = vld [vmem:[%s3267_s0 + $0x20] sm:$0xff]   ;;  %v2061_v10 = vld [vmem:[%s3267_s0 + $0x88] sm:$0xff]   ;;  %23 = vst [vmem:[#allocation4] sm:$0x1] %v2078_v36 }
   0x4   :  { %1964 = vmatprep.subr.bf16.mxu0 %v2042_v1  ;;  %1968 = vmatprep.mubr.msk.bf16.mxu0 %vm268_vm0, %v2044_v3  ;;  %v2060_v9 = vld [vmem:[%s3267_s0 + $0x80] sm:$0xff]   ;;  %v2062_v11 = vld [vmem:[%s3267_s0 + $0x90] sm:$0xff]   ;;  %v2049_v12 = vld [vmem:[%s3267_s0 + $0x28] sm:$0xff]  }
   0x5   :  { %2033 = vmatprep.subr.bf16.mxu1 %v2042_v1  ;;  %2000 = vmatprep.mubr.msk.bf16.mxu1 %vm268_vm0, %v2060_v9  ;;  %v2050_v13 = vld [vmem:[%s3267_s0 + $0x30] sm:$0xff]   ;;  %v2063_v14 = vld [vmem:[%s3267_s0 + $0x98] sm:$0xff]   ;;  %v2064_v15 = vld [vmem:[%s3267_s0 + $0xa0] sm:$0xff]  }
   0x6   :  { %v2051_v16 = vld [vmem:[%s3267_s0 + $0x38] sm:$0xff]   ;;  %v2065_v17 = vld [vmem:[%s3267_s0 + $0xa8] sm:$0xff]   ;;  %v2052_v18 = vld [vmem:[%s3267_s0 + $0x40] sm:$0xff]  }
   0x7   :  { %1965 = vmatpush3.bf16.msra.mxu0 %v2042_v1  ;;  %2036 = vmatpush3.bf16.msra.mxu1 %v2042_v1  ;;  %v2066_v19 = vld [vmem:[%s3267_s0 + $0xb0] sm:$0xff]   ;;  %v2053_v20 = vld [vmem:[%s3267_s0 + $0x48] sm:$0xff]   ;;  %v2067_v21 = vld [vmem:[%s3267_s0 + $0xb8] sm:$0xff]  }
   0x8   :  { %2038 = vmatprep.subr.msk.bf16.mxu0 %vm365_vm1, %v2043_v2  ;;  %2039 = vmatprep.subr.msk.bf16.mxu1 %vm365_vm1, %v2043_v2  ;;  %v2054_v22 = vld [vmem:[%s3267_s0 + $0x50] sm:$0xff]   ;;  %v2068_v23 = vld [vmem:[%s3267_s0 + $0xc0] sm:$0xff]   ;;  %v2055_v24 = vld [vmem:[%s3267_s0 + $0x58] sm:$0xff]  }
   0x9   :  { %v2069_v25 = vld [vmem:[%s3267_s0 + $0xc8] sm:$0xff]   ;;  %v2056_v26 = vld [vmem:[%s3267_s0 + $0x60] sm:$0xff]   ;;  %v2070_v27 = vld [vmem:[%s3267_s0 + $0xd0] sm:$0xff]  }
   0xa   :  { %v2057_v28 = vld [vmem:[%s3267_s0 + $0x68] sm:$0xff]   ;;  %v2071_v29 = vld [vmem:[%s3267_s0 + $0xd8] sm:$0xff]   ;;  %v2058_v30 = vld [vmem:[%s3267_s0 + $0x70] sm:$0xff]  }
   0xb   :  { %1967 = vmatpush3.bf16.msra.mxu0 %v367_v4  ;;  %2037 = vmatpush3.bf16.msra.mxu1 %v367_v4  ;;  %v2072_v31 = vld [vmem:[%s3267_s0 + $0xe0] sm:$0xff]   ;;  %v2059_v32 = vld [vmem:[%s3267_s0 + $0x78] sm:$0xff]   ;;  %v2073_v33 = vld [vmem:[%s3267_s0 + $0xe8] sm:$0xff]  }
   0xc   :  { %v2074_v34 = vld [vmem:[%s3267_s0 + $0xf0] sm:$0xff]   ;;  %v2075_v35 = vld [vmem:[%s3267_s0 + $0xf8] sm:$0xff]  }
   0xe   :  { %1969 = vmatmul.mubr.msk.bf16.vlgmr.msra.gmra.mrb[0].mxu0 %vm268_vm0, %v2045_v5  ;;  %2001 = vmatmul.mubr.msk.bf16.vlgmr.msra.gmra.mrb[0].mxu1 %vm268_vm0, %v2061_v10 }
   0xf   :  { %1972 = vmatprep.mubr.msk.bf16.mxu0 %vm268_vm0, %v2046_v6  ;;  %2004 = vmatprep.mubr.msk.bf16.mxu1 %vm268_vm0, %v2062_v11 }
  0x16   :  { %1973 = vmatmul.mubr.msk.bf16.gmra.mrb[4].mxu0 %vm268_vm0, %v2047_v7  ;;  %2005 = vmatmul.mubr.msk.bf16.gmra.mrb[4].mxu1 %vm268_vm0, %v2063_v14 }
  0x17   :  { %1976 = vmatprep.mubr.msk.bf16.mxu0 %vm268_vm0, %v2048_v8  ;;  %2008 = vmatprep.mubr.msk.bf16.mxu1 %vm268_vm0, %v2064_v15 }
  0x1e   :  { %1977 = vmatmul.mubr.msk.bf16.gmra.mrb[8].mxu0 %vm268_vm0, %v2049_v12  ;;  %2009 = vmatmul.mubr.msk.bf16.gmra.mrb[8].mxu1 %vm268_vm0, %v2065_v17 }
  0x1f   :  { %1980 = vmatprep.mubr.msk.bf16.mxu0 %vm268_vm0, %v2050_v13  ;;  %2012 = vmatprep.mubr.msk.bf16.mxu1 %vm268_vm0, %v2066_v19 }
  0x26   :  { %1981 = vmatmul.mubr.msk.bf16.gmra.mrb[12].mxu0 %vm268_vm0, %v2051_v16  ;;  %2013 = vmatmul.mubr.msk.bf16.gmra.mrb[12].mxu1 %vm268_vm0, %v2067_v21 }
  0x27   :  { %1984 = vmatprep.mubr.msk.bf16.mxu0 %vm268_vm0, %v2052_v18  ;;  %2016 = vmatprep.mubr.msk.bf16.mxu1 %vm268_vm0, %v2068_v23 }
  0x2e   :  { %1985 = vmatmul.mubr.msk.bf16.gmra.mrb[16].mxu0 %vm268_vm0, %v2053_v20  ;;  %2017 = vmatmul.mubr.msk.bf16.gmra.mrb[16].mxu1 %vm268_vm0, %v2069_v25 }
  0x2f   :  { %1988 = vmatprep.mubr.msk.bf16.mxu0 %vm268_vm0, %v2054_v22  ;;  %2020 = vmatprep.mubr.msk.bf16.mxu1 %vm268_vm0, %v2070_v27 }
  0x36   :  { %1989 = vmatmul.mubr.msk.bf16.gmra.mrb[20].mxu0 %vm268_vm0, %v2055_v24  ;;  %2021 = vmatmul.mubr.msk.bf16.gmra.mrb[20].mxu1 %vm268_vm0, %v2071_v29 }
  0x37   :  { %1992 = vmatprep.mubr.msk.bf16.mxu0 %vm268_vm0, %v2056_v26  ;;  %2024 = vmatprep.mubr.msk.bf16.mxu1 %vm268_vm0, %v2072_v31 }
  0x3e   :  { %1993 = vmatmul.mubr.msk.bf16.gmra.mrb[24].mxu0 %vm268_vm0, %v2057_v28  ;;  %2025 = vmatmul.mubr.msk.bf16.gmra.mrb[24].mxu1 %vm268_vm0, %v2073_v33 }
  0x3f   :  { %1996 = vmatprep.mubr.msk.bf16.mxu0 %vm268_vm0, %v2058_v30  ;;  %2028 = vmatprep.mubr.msk.bf16.mxu1 %vm268_vm0, %v2074_v34 }
  0x46   :  { %1997 = vmatmul.mubr.msk.bf16.gmra.mrb[28].mxu0 %vm268_vm0, %v2059_v32  ;;  %2029 = vmatmul.mubr.msk.bf16.gmra.mrb[28].mxu1 %vm268_vm0, %v2075_v35 }
  0xe1   :  { %v2241_v37 = vpop.f32.mrb[0].mxu0  ;;  %v2263_v51 = vpop.f32.mrb[0].mxu1 }
  0xe2   :  { %v2243_v38 = vpop.f32.mrb[1].mxu0  ;;  %v799_v44 = vmul.f32 %v2241_v37, %v2241_v37  ;;  %v2267_v53 = vpop.f32.mrb[1].mxu1 }
  0xe3   :  { %v2245_v39 = vpop.f32.mrb[2].mxu0  ;;  %v797_v41 = vmul.f32 %v2243_v38, %v2243_v38  ;;  %3300 = vst [vmem:[#allocation5_spill] sm:$0xff] %v2267_v53  ;;  %v2274_v58 = vpop.f32.mrb[2].mxu1 }
  0xe4   :  { %v2247_v40 = vpop.f32.mrb[3].mxu0  ;;  %v800_v47 = vmul.f32 %v2245_v39, %v2245_v39  ;;  %v2278_v60 = vpop.f32.mrb[3].mxu1 }
  0xe5   :  { %v725_v42 = vadd.f32 %v2247_v40, %v2243_v38  ;;  %v798_v43 = vmul.f32 %v2247_v40, %v2247_v40  ;;  %3301 = vst [vmem:[#allocation6_spill] sm:$0xff] %v2278_v60 }
  0xe7   :  { %v726_v45 = vadd.f32 %v2241_v37, %v725_v42  ;;  %v861_v46 = vadd.f32 %v798_v43, %v797_v41 }
  0xe9   :  { %v862_v48 = vadd.f32 %v861_v46, %v799_v44  ;;  %v2260_v49 = vpop.f32.mrb[4].mxu0  ;;  %v727_v50 = vadd.f32 %v2245_v39, %v726_v45  ;;  %v2291_v7 = vpop.f32.mrb[4].mxu1 }
  0xea   :  { %v2265_v52 = vpop.f32.mrb[5].mxu0  ;;  %v803_v0 = vmul.f32 %v2260_v49, %v2260_v49  ;;  %v2295_v9 = vpop.f32.mrb[5].mxu1 }
  0xeb   :  { %v728_v54 = vadd.f32 %v727_v50, %v2265_v52  ;;  %v801_v55 = vmul.f32 %v2265_v52, %v2265_v52  ;;  %v863_v56 = vadd.f32 %v862_v48, %v800_v47  ;;  %v2272_v57 = vpop.f32.mrb[6].mxu0  ;;  %v2302_v14 = vpop.f32.mrb[6].mxu1 }
  0xec   :  { %v2276_v59 = vpop.f32.mrb[7].mxu0  ;;  %v804_v3 = vmul.f32 %v2272_v57, %v2272_v57  ;;  %v2306_v16 = vpop.f32.mrb[7].mxu1 }
  0xed   :  { %v864_v61 = vadd.f32 %v863_v56, %v801_v55  ;;  %v729_v62 = vadd.f32 %v728_v54, %v2276_v59  ;;  %v802_v63 = vmul.f32 %v2276_v59, %v2276_v59 }
  0xef   :  { %v730_v1 = vadd.f32 %v2260_v49, %v729_v62  ;;  %v865_v2 = vadd.f32 %v864_v61, %v802_v63 }
  0xf1   :  { %v866_v4 = vadd.f32 %v865_v2, %v803_v0  ;;  %v2288_v5 = vpop.f32.mrb[8].mxu0  ;;  %v731_v6 = vadd.f32 %v2272_v57, %v730_v1  ;;  %v2319_v27 = vpop.f32.mrb[8].mxu1 }
  0xf2   :  { %v2293_v8 = vpop.f32.mrb[9].mxu0  ;;  %v807_v20 = vmul.f32 %v2288_v5, %v2288_v5  ;;  %v2323_v29 = vpop.f32.mrb[9].mxu1 }
  0xf3   :  { %v732_v10 = vadd.f32 %v731_v6, %v2293_v8  ;;  %v805_v11 = vmul.f32 %v2293_v8, %v2293_v8  ;;  %v867_v12 = vadd.f32 %v866_v4, %v804_v3  ;;  %v2300_v13 = vpop.f32.mrb[10].mxu0  ;;  %v2330_v34 = vpop.f32.mrb[10].mxu1 }
  0xf4   :  { %v2304_v15 = vpop.f32.mrb[11].mxu0  ;;  %v808_v23 = vmul.f32 %v2300_v13, %v2300_v13  ;;  %v2334_v36 = vpop.f32.mrb[11].mxu1 }
  0xf5   :  { %v868_v17 = vadd.f32 %v867_v12, %v805_v11  ;;  %v733_v18 = vadd.f32 %v732_v10, %v2304_v15  ;;  %v806_v19 = vmul.f32 %v2304_v15, %v2304_v15 }
  0xf7   :  { %v734_v21 = vadd.f32 %v2288_v5, %v733_v18  ;;  %v869_v22 = vadd.f32 %v868_v17, %v806_v19 }
  0xf9   :  { %v870_v24 = vadd.f32 %v869_v22, %v807_v20  ;;  %v2316_v25 = vpop.f32.mrb[12].mxu0  ;;  %v735_v26 = vadd.f32 %v2300_v13, %v734_v21  ;;  %v2347_v55 = vpop.f32.mrb[12].mxu1 }
  0xfa   :  { %v2321_v28 = vpop.f32.mrb[13].mxu0  ;;  %v811_v44 = vmul.f32 %v2316_v25, %v2316_v25  ;;  %v2351_v61 = vpop.f32.mrb[13].mxu1 }
  0xfb   :  { %v736_v30 = vadd.f32 %v735_v26, %v2321_v28  ;;  %v809_v31 = vmul.f32 %v2321_v28, %v2321_v28  ;;  %v871_v32 = vadd.f32 %v870_v24, %v808_v23  ;;  %v2328_v33 = vpop.f32.mrb[14].mxu0  ;;  %v2358_v2 = vpop.f32.mrb[14].mxu1 }
  0xfc   :  { %v2332_v35 = vpop.f32.mrb[15].mxu0  ;;  %v812_v47 = vmul.f32 %v2328_v33, %v2328_v33  ;;  %v2362_v4 = vpop.f32.mrb[15].mxu1 }
  0xfd   :  { %v872_v41 = vadd.f32 %v871_v32, %v809_v31  ;;  %v737_v42 = vadd.f32 %v736_v30, %v2332_v35  ;;  %v810_v43 = vmul.f32 %v2332_v35, %v2332_v35 }
  0xff   :  { %v738_v45 = vadd.f32 %v2316_v25, %v737_v42  ;;  %v873_v46 = vadd.f32 %v872_v41, %v810_v43 }
 0x101   :  { %v874_v48 = vadd.f32 %v873_v46, %v811_v44  ;;  %v2344_v50 = vpop.f32.mrb[16].mxu0  ;;  %v739_v54 = vadd.f32 %v2328_v33, %v738_v45  ;;  %v2375_v23 = vpop.f32.mrb[16].mxu1 }
 0x102   :  { %v2349_v56 = vpop.f32.mrb[17].mxu0  ;;  %v815_v12 = vmul.f32 %v2344_v50, %v2344_v50  ;;  %v2379_v26 = vpop.f32.mrb[17].mxu1 }
 0x103   :  { %v740_v62 = vadd.f32 %v739_v54, %v2349_v56  ;;  %v813_v63 = vmul.f32 %v2349_v56, %v2349_v56  ;;  %v875_v0 = vadd.f32 %v874_v48, %v812_v47  ;;  %v2356_v1 = vpop.f32.mrb[18].mxu0  ;;  %v2386_v42 = vpop.f32.mrb[18].mxu1 }
 0x104   :  { %3302 = vst [vmem:[#allocation7_spill] sm:$0xff] %v2356_v1  ;;  %v2360_v3 = vpop.f32.mrb[19].mxu0  ;;  %v816_v19 = vmul.f32 %v2356_v1, %v2356_v1  ;;  %v2390_v44 = vpop.f32.mrb[19].mxu1 }
 0x105   :  { %v876_v6 = vadd.f32 %v875_v0, %v813_v63  ;;  %v741_v10 = vadd.f32 %v740_v62, %v2360_v3  ;;  %v814_v11 = vmul.f32 %v2360_v3, %v2360_v3 }
 0x107   :  { %v742_v17 = vadd.f32 %v2344_v50, %v741_v10  ;;  %v877_v18 = vadd.f32 %v876_v6, %v814_v11 }
 0x109   :  { %v878_v20 = vadd.f32 %v877_v18, %v815_v12  ;;  %v2372_v21 = vpop.f32.mrb[20].mxu0  ;;  %v743_v22 = vadd.f32 %v2356_v1, %v742_v17  ;;  %v2403_v11 = vpop.f32.mrb[20].mxu1 }
 0x10a   :  { %3303 = vst [vmem:[#allocation8_spill] sm:$0xff] %v2372_v21  ;;  %v2377_v24 = vpop.f32.mrb[21].mxu0  ;;  %v819_v48 = vmul.f32 %v2372_v21, %v2372_v21  ;;  %v2407_v17 = vpop.f32.mrb[21].mxu1 }
 0x10b   :  { %3304 = vst [vmem:[#allocation9_spill] sm:$0xff] %v2377_v24  ;;  %v744_v30 = vadd.f32 %v743_v22, %v2377_v24  ;;  %v817_v31 = vmul.f32 %v2377_v24, %v2377_v24  ;;  %v879_v32 = vadd.f32 %v878_v20, %v816_v19  ;;  %v2384_v41 = vpop.f32.mrb[22].mxu0 }
 0x10c   :  { %3305 = vst [vmem:[#allocation10_spill] sm:$0xff] %v2384_v41  ;;  %v2388_v43 = vpop.f32.mrb[23].mxu0  ;;  %v820_v63 = vmul.f32 %v2384_v41, %v2384_v41 }
 0x10d   :  { %3306 = vst [vmem:[#allocation11_spill] sm:$0xff] %v2388_v43  ;;  %v880_v45 = vadd.f32 %v879_v32, %v817_v31  ;;  %v745_v46 = vadd.f32 %v744_v30, %v2388_v43  ;;  %v818_v47 = vmul.f32 %v2388_v43, %v2388_v43  ;;  %v2414_v30 = vpop.f32.mrb[22].mxu1 }
 0x10e   :  { %3310 = vst [vmem:[#allocation15_spill] sm:$0xff] %v2414_v30  ;;  %v2418_v32 = vpop.f32.mrb[23].mxu1 }
 0x10f   :  { %v746_v54 = vadd.f32 %v2372_v21, %v745_v46  ;;  %v881_v62 = vadd.f32 %v880_v45, %v818_v47 }
 0x111   :  { %v882_v0 = vadd.f32 %v881_v62, %v819_v48  ;;  %v2400_v6 = vpop.f32.mrb[24].mxu0  ;;  %v747_v10 = vadd.f32 %v2384_v41, %v746_v54 }
 0x112   :  { %3307 = vst [vmem:[#allocation12_spill] sm:$0xff] %v2400_v6  ;;  %v2405_v12 = vpop.f32.mrb[25].mxu0  ;;  %v823_v48 = vmul.f32 %v2400_v6, %v2400_v6 }
 0x113   :  { %3308 = vst [vmem:[#allocation13_spill] sm:$0xff] %v2405_v12  ;;  %v748_v18 = vadd.f32 %v747_v10, %v2405_v12  ;;  %v821_v19 = vmul.f32 %v2405_v12, %v2405_v12  ;;  %v883_v20 = vadd.f32 %v882_v0, %v820_v63  ;;  %v2412_v22 = vpop.f32.mrb[26].mxu0 }
 0x114   :  { %3309 = vst [vmem:[#allocation14_spill] sm:$0xff] %v2412_v22  ;;  %v2416_v31 = vpop.f32.mrb[27].mxu0  ;;  %v824_v63 = vmul.f32 %v2412_v22, %v2412_v22 }
 0x115   :  { %3311 = vst [vmem:[#allocation16_spill] sm:$0xff] %v2416_v31  ;;  %v884_v45 = vadd.f32 %v883_v20, %v821_v19  ;;  %v749_v46 = vadd.f32 %v748_v18, %v2416_v31  ;;  %v822_v47 = vmul.f32 %v2416_v31, %v2416_v31  ;;  %v2431_v19 = vpop.f32.mrb[24].mxu1 }
 0x116   :  { %3313 = vst [vmem:[#allocation18_spill] sm:$0xff] %v2431_v19  ;;  %v2435_v20 = vpop.f32.mrb[25].mxu1 }
 0x117   :  { %v750_v54 = vadd.f32 %v2400_v6, %v749_v46  ;;  %v885_v62 = vadd.f32 %v884_v45, %v822_v47  ;;  %3315 = vst [vmem:[#allocation20_spill] sm:$0xff] %v2435_v20  ;;  %v2442_v6 = vpop.f32.mrb[26].mxu1 }
 0x118   :  { %3317 = vst [vmem:[#allocation22_spill] sm:$0xff] %v2442_v6 }
 0x119   :  { %v886_v0 = vadd.f32 %v885_v62, %v823_v48  ;;  %v2428_v10 = vpop.f32.mrb[28].mxu0  ;;  %v751_v12 = vadd.f32 %v2412_v22, %v750_v54  ;;  %v2446_v62 = vpop.f32.mrb[27].mxu1 }
 0x11a   :  { %3312 = vst [vmem:[#allocation17_spill] sm:$0xff] %v2428_v10  ;;  %v2433_v18 = vpop.f32.mrb[29].mxu0  ;;  %3319 = vst [vmem:[#allocation24_spill] sm:$0xff] %v2446_v62 }
 0x11b   :  { %3314 = vst [vmem:[#allocation19_spill] sm:$0xff] %v2433_v18  ;;  %v752_v31 = vadd.f32 %v751_v12, %v2433_v18  ;;  %v825_v46 = vmul.f32 %v2433_v18, %v2433_v18  ;;  %v887_v45 = vadd.f32 %v886_v0, %v824_v63  ;;  %v2440_v47 = vpop.f32.mrb[30].mxu0  ;;  %v827_v12 = vmul.f32 %v2428_v10, %v2428_v10 }
 0x11c   :  { %3316 = vst [vmem:[#allocation21_spill] sm:$0xff] %v2440_v47  ;;  %v2444_v48 = vpop.f32.mrb[31].mxu0  ;;  %v828_v0 = vmul.f32 %v2440_v47, %v2440_v47 }
 0x11d   :  { %3318 = vst [vmem:[#allocation23_spill] sm:$0xff] %v2444_v48  ;;  %v888_v54 = vadd.f32 %v887_v45, %v825_v46  ;;  %v753_v22 = vadd.f32 %v752_v31, %v2444_v48  ;;  %v826_v41 = vmul.f32 %v2444_v48, %v2444_v48  ;;  %v829_v46 = vmul.f32 %v2267_v53, %v2267_v53  ;;  %v2459_v45 = vpop.f32.mrb[28].mxu1 }
 0x11e   :  { %3320 = vst [vmem:[#allocation25_spill] sm:$0xff] %v2459_v45  ;;  %v2461_v31 = vpop.f32.mrb[29].mxu1 }
 0x11f   :  { %v754_v18 = vadd.f32 %v2428_v10, %v753_v22  ;;  %v889_v63 = vadd.f32 %v888_v54, %v826_v41  ;;  %3321 = vst [vmem:[#allocation26_spill] sm:$0xff] %v2461_v31  ;;  %v2464_v1 = vpop.f32.mrb[30].mxu1  ;;  %v834_v10 = vmul.f32 %v2306_v16, %v2306_v16 }
 0x120   :  { %v2466_v22 = vpop.f32.mrb[31].mxu1 }
 0x121   :  { %v890_v21 = vadd.f32 %v889_v63, %v827_v12  ;;  %v755_v43 = vadd.f32 %v2440_v47, %v754_v18  ;;  %3322 = vst [vmem:[#allocation27_spill] sm:$0xff] %v2466_v22  ;;  %v830_v18 = vmul.f32 %v2278_v60, %v2278_v60  ;;  %v831_v12 = vmul.f32 %v2263_v51, %v2263_v51 }
 0x123   :  { %v756_v48 = vadd.f32 %v755_v43, %v2267_v53  ;;  %v891_v24 = vadd.f32 %v890_v21, %v828_v0  ;;  %v832_v43 = vmul.f32 %v2274_v58, %v2274_v58 }
 0x125   :  { %v892_v41 = vadd.f32 %v891_v24, %v829_v46  ;;  %v757_v54 = vadd.f32 %v756_v48, %v2278_v60  ;;  %v833_v24 = vmul.f32 %v2295_v9, %v2295_v9 }
 0x127   :  { %v758_v63 = vadd.f32 %v2263_v51, %v757_v54  ;;  %v893_v47 = vadd.f32 %v892_v41, %v830_v18  ;;  %v835_v41 = vmul.f32 %v2291_v7, %v2291_v7  ;;  %v836_v18 = vmul.f32 %v2302_v14, %v2302_v14 }
 0x129   :  { %v894_v21 = vadd.f32 %v893_v47, %v831_v12  ;;  %v759_v0 = vadd.f32 %v2274_v58, %v758_v63 }
 0x12b   :  { %v760_v48 = vadd.f32 %v759_v0, %v2295_v9  ;;  %v895_v46 = vadd.f32 %v894_v21, %v832_v43  ;;  %v837_v43 = vmul.f32 %v2323_v29, %v2323_v29 }
 0x12d   :  { %v896_v53 = vadd.f32 %v895_v46, %v833_v24  ;;  %v761_v60 = vadd.f32 %v760_v48, %v2306_v16  ;;  %v838_v46 = vmul.f32 %v2334_v36, %v2334_v36 }
 0x12f   :  { %v762_v54 = vadd.f32 %v2291_v7, %v761_v60  ;;  %v897_v47 = vadd.f32 %v896_v53, %v834_v10  ;;  %v839_v53 = vmul.f32 %v2319_v27, %v2319_v27 }
 0x131   :  { %v898_v12 = vadd.f32 %v897_v47, %v835_v41  ;;  %v763_v63 = vadd.f32 %v2302_v14, %v762_v54  ;;  %v840_v41 = vmul.f32 %v2330_v34, %v2330_v34 }
 0x133   :  { %v764_v21 = vadd.f32 %v763_v63, %v2323_v29  ;;  %v899_v0 = vadd.f32 %v898_v12, %v836_v18  ;;  %v841_v18 = vmul.f32 %v2351_v61, %v2351_v61 }
 0x135   :  { %v900_v24 = vadd.f32 %v899_v0, %v837_v43  ;;  %v765_v48 = vadd.f32 %v764_v21, %v2334_v36  ;;  %v842_v0 = vmul.f32 %v2362_v4, %v2362_v4 }
 0x137   :  { %v766_v60 = vadd.f32 %v2319_v27, %v765_v48  ;;  %v901_v10 = vadd.f32 %v900_v24, %v838_v46  ;;  %v843_v24 = vmul.f32 %v2347_v55, %v2347_v55 }
 0x139   :  { %v902_v54 = vadd.f32 %v901_v10, %v839_v53  ;;  %v767_v47 = vadd.f32 %v2330_v34, %v766_v60  ;;  %v844_v53 = vmul.f32 %v2358_v2, %v2358_v2 }
 0x13b   :  { %v768_v12 = vadd.f32 %v767_v47, %v2351_v61  ;;  %v903_v63 = vadd.f32 %v902_v54, %v840_v41  ;;  %v845_v41 = vmul.f32 %v2379_v26, %v2379_v26 }
 0x13d   :  { %v904_v43 = vadd.f32 %v903_v63, %v841_v18  ;;  %v769_v21 = vadd.f32 %v768_v12, %v2362_v4  ;;  %v846_v63 = vmul.f32 %v2390_v44, %v2390_v44 }
 0x13f   :  { %v770_v48 = vadd.f32 %v2347_v55, %v769_v21  ;;  %v905_v46 = vadd.f32 %v904_v43, %v842_v0  ;;  %v847_v43 = vmul.f32 %v2375_v23, %v2375_v23 }
 0x141   :  { %v906_v60 = vadd.f32 %v905_v46, %v843_v24  ;;  %v771_v10 = vadd.f32 %v2358_v2, %v770_v48  ;;  %v848_v24 = vmul.f32 %v2386_v42, %v2386_v42 }
 0x143   :  { %v772_v54 = vadd.f32 %v771_v10, %v2379_v26  ;;  %v907_v47 = vadd.f32 %v906_v60, %v844_v53  ;;  %v849_v53 = vmul.f32 %v2407_v17, %v2407_v17 }
 0x145   :  { %v908_v18 = vadd.f32 %v907_v47, %v845_v41  ;;  %v773_v12 = vadd.f32 %v772_v54, %v2390_v44  ;;  %v850_v47 = vmul.f32 %v2418_v32, %v2418_v32 }
 0x147   :  { %v774_v21 = vadd.f32 %v2375_v23, %v773_v12  ;;  %v909_v0 = vadd.f32 %v908_v18, %v846_v63  ;;  %v851_v18 = vmul.f32 %v2403_v11, %v2403_v11 }
 0x149   :  { %v910_v48 = vadd.f32 %v909_v0, %v847_v43  ;;  %v775_v46 = vadd.f32 %v2386_v42, %v774_v21  ;;  %v852_v43 = vmul.f32 %v2414_v30, %v2414_v30 }
 0x14b   :  { %v776_v60 = vadd.f32 %v775_v46, %v2407_v17  ;;  %v911_v10 = vadd.f32 %v910_v48, %v848_v24  ;;  %v853_v24 = vmul.f32 %v2435_v20, %v2435_v20 }
 0x14d   :  { %v912_v41 = vadd.f32 %v911_v10, %v849_v53  ;;  %v777_v54 = vadd.f32 %v776_v60, %v2418_v32  ;;  %v854_v10 = vmul.f32 %v2446_v62, %v2446_v62 }
 0x14f   :  { %v778_v12 = vadd.f32 %v2403_v11, %v777_v54  ;;  %v913_v63 = vadd.f32 %v912_v41, %v850_v47  ;;  %v855_v41 = vmul.f32 %v2431_v19, %v2431_v19 }
 0x151   :  { %v914_v21 = vadd.f32 %v913_v63, %v851_v18  ;;  %v779_v0 = vadd.f32 %v2414_v30, %v778_v12  ;;  %v856_v18 = vmul.f32 %v2442_v6, %v2442_v6 }
 0x153   :  { %v780_v48 = vadd.f32 %v779_v0, %v2435_v20  ;;  %v915_v46 = vadd.f32 %v914_v21, %v852_v43  ;;  %v857_v43 = vmul.f32 %v2461_v31, %v2461_v31 }
 0x155   :  { %v916_v53 = vadd.f32 %v915_v46, %v853_v24  ;;  %v781_v60 = vadd.f32 %v780_v48, %v2446_v62  ;;  %v858_v46 = vmul.f32 %v2466_v22, %v2466_v22  ;;  %v724_v62 = vld [vmem:[#allocation3] sm:$0x1] }
 0x157   :  { %v782_v54 = vadd.f32 %v2431_v19, %v781_v60  ;;  %v917_v47 = vadd.f32 %v916_v53, %v854_v10  ;;  %v859_v53 = vmul.f32 %v2459_v45, %v2459_v45 }
 0x159   :  { %v918_v12 = vadd.f32 %v917_v47, %v855_v41  ;;  %v783_v63 = vadd.f32 %v2442_v6, %v782_v54  ;;  %v860_v41 = vmul.f32 %v2464_v1, %v2464_v1 }
 0x15b   :  { %v784_v21 = vadd.f32 %v783_v63, %v2461_v31  ;;  %v919_v0 = vadd.f32 %v918_v12, %v856_v18 }
 0x15d   :  { %v920_v24 = vadd.f32 %v919_v0, %v857_v43  ;;  %v785_v48 = vadd.f32 %v784_v21, %v2466_v22 }
 0x15f   :  { %v786_v60 = vadd.f32 %v2459_v45, %v785_v48  ;;  %v921_v10 = vadd.f32 %v920_v24, %v858_v46  ;;  %v796_v24 = vld [vmem:[#allocation4] sm:$0x1] }
 0x161   :  { %v787_v54 = vadd.f32 %v2464_v1, %v786_v60  ;;  %v922_v47 = vadd.f32 %v921_v10, %v859_v53 }
 0x163   :  { %v788_v63 = vrot.slane %v787_v54, 4  ;;  %v923_v18 = vadd.f32 %v922_v47, %v860_v41 }
 0x165   :  { %v789_v12 = vadd.f32 %v788_v63, %v787_v54  ;;  %v924_v43 = vrot.slane %v923_v18, 4 }
 0x167   :  { %v790_v21 = vrot.slane %v789_v12, 2  ;;  %v925_v0 = vadd.f32 %v924_v43, %v923_v18 }
 0x169   :  { %v791_v31 = vadd.f32 %v790_v21, %v789_v12  ;;  %v926_v22 = vrot.slane %v925_v0, 2  ;;  %v1014_v12 = vlaneseq }
 0x16b   :  { %v792_v6 = vrot.slane %v791_v31, 1  ;;  %v927_v19 = vadd.f32 %v926_v22, %v925_v0  ;;  %v2561_v22 = vshrl.u32 %v1014_v12, 7 }
 0x16d   :  { %v793_v20 = vadd.f32 %v792_v6, %v791_v31  ;;  %v928_v48 = vrot.slane %v927_v19, 1  ;;  %v942_v6 = vld [vmem:[%s3268_s2] sm:$0x1] }
 0x16f   :  { %v794_v46 = vadd.f32 %v793_v20, %v724_v62  ;;  %v929_v45 = vadd.f32 %v928_v48, %v927_v19  ;;  %v3294_v19 = vsub.s32 0, %v2561_v22  ;;  %v2570_v62 = vld [vmem:[%s3269_s3] sm:$0x1] }
 0x171   :  { %795 = vst [vmem:[#allocation3] sm:$0x1] %v794_v46  ;;  %v930_v30 = vadd.f32 %v929_v45, %v796_v24 }
 0x173   :  { %931 = vst [vmem:[#allocation4] sm:$0x1] %v930_v30 }
 0x178   :  { %v935_v53 = vld [vmem:[#allocation3] sm:$0x1] }
 0x179   :  { %v936_v60 = vmul.f32 0.001953125, %v935_v53  ;;  %v3323_v53 = vld [vmem:[#allocation7_spill] sm:$0xff] }
 0x17a   :  { %v937_v10 = vld [vmem:[#allocation4] sm:$0x1] }
 0x17b   :  { %v938_v41 = vmul.f32 0.001953125, %v937_v10  ;;  %v939_v54 = vmul.f32 %v936_v60, %v936_v60  ;;  %v3325_v10 = vld [vmem:[#allocation11_spill] sm:$0xff] }
 0x17d   :  { %v940_v47 = vsub.f32 %v938_v41, %v939_v54  ;;  %v3326_v41 = vld [vmem:[#allocation8_spill] sm:$0xff]  ;;  %v3327_v54 = vld [vmem:[#allocation10_spill] sm:$0xff] }
 0x17f   :  { %v941_v63 = vmax.f32 %v940_v47, 0.0  ;;  %v3328_v47 = vld [vmem:[#allocation13_spill] sm:$0xff] }
 0x181   :  { %v943_v18 = vadd.f32 1e-05, %v941_v63 }
 0x183   :  { %2076 = vrsqrt.f32 %v943_v18  ;;  %v3329_v18 = vld [vmem:[#allocation16_spill] sm:$0xff] }
 0x18d   :  { %v2077_v20 = vpop.eup %2076 }
 0x18e   :  { %v945_v30 = vmul.f32 %v2077_v20, %v942_v6  ;;  %v3330_v6 = vld [vmem:[#allocation12_spill] sm:$0xff] }
 0x190   :  { %v2572_v45 = vmul.f32 %v945_v30, %v936_v60  ;;  %v2576_v31 = vrot.slane %v945_v30, %v3294_v19  ;;  %v3324_v60 = vld [vmem:[#allocation9_spill] sm:$0xff]  ;;  %v3331_v30 = vld [vmem:[#allocation14_spill] sm:$0xff] }
 0x191   :  { %v3337_v19 = vld [vmem:[#allocation6_spill] sm:$0xff] }
 0x192   :  { %v948_v43 = vsub.f32 %v2570_v62, %v2572_v45  ;;  %v2582_v21 = vmul.f32 %v2576_v31, %v2243_v38  ;;  %v2586_v0 = vmul.f32 %v2576_v31, %v2247_v40  ;;  %v2590_v48 = vmul.f32 %v2241_v37, %v2576_v31  ;;  %v3332_v45 = vld [vmem:[#allocation19_spill] sm:$0xff] }
 0x193   :  { %v2594_v24 = vmul.f32 %v2245_v39, %v2576_v31  ;;  %v2598_v46 = vmul.f32 %v2576_v31, %v2265_v52  ;;  %v2602_v38 = vmul.f32 %v2576_v31, %v2276_v59  ;;  %v2606_v40 = vmul.f32 %v2260_v49, %v2576_v31 }
 0x194   :  { %v2610_v37 = vmul.f32 %v2272_v57, %v2576_v31  ;;  %v2614_v39 = vmul.f32 %v2576_v31, %v2293_v8  ;;  %v2618_v52 = vmul.f32 %v2576_v31, %v2304_v15  ;;  %v2622_v59 = vmul.f32 %v2288_v5, %v2576_v31 }
 0x195   :  { %v2626_v49 = vmul.f32 %v2300_v13, %v2576_v31  ;;  %v2630_v57 = vmul.f32 %v2576_v31, %v2321_v28  ;;  %v2634_v8 = vmul.f32 %v2576_v31, %v2332_v35  ;;  %v2638_v15 = vmul.f32 %v2316_v25, %v2576_v31 }
 0x196   :  { %v2642_v5 = vmul.f32 %v2328_v33, %v2576_v31  ;;  %v2646_v13 = vmul.f32 %v2576_v31, %v2349_v56  ;;  %v2650_v28 = vmul.f32 %v2576_v31, %v2360_v3  ;;  %v2654_v35 = vmul.f32 %v2344_v50, %v2576_v31 }
 0x197   :  { %v2658_v25 = vmul.f32 %v3323_v53, %v2576_v31  ;;  %v2662_v33 = vmul.f32 %v2576_v31, %v3324_v60  ;;  %v2666_v56 = vmul.f32 %v2576_v31, %v3325_v10  ;;  %v2670_v3 = vmul.f32 %v3326_v41, %v2576_v31  ;;  %v3333_v60 = vld [vmem:[#allocation23_spill] sm:$0xff]  ;;  %v3334_v41 = vld [vmem:[#allocation17_spill] sm:$0xff] }
 0x198   :  { %v2674_v50 = vmul.f32 %v3327_v54, %v2576_v31  ;;  %v2678_v63 = vmul.f32 %v2576_v31, %v3328_v47  ;;  %v2682_v12 = vmul.f32 %v2576_v31, %v3329_v18  ;;  %v2686_v20 = vmul.f32 %v3330_v6, %v2576_v31  ;;  %v3335_v47 = vld [vmem:[#allocation21_spill] sm:$0xff] }
 0x199   :  { %v2690_v62 = vmul.f32 %v3331_v30, %v2576_v31  ;;  %v2694_v53 = vmul.f32 %v2576_v31, %v3332_v45  ;;  %v2698_v10 = vmul.f32 %v2576_v31, %v3333_v60  ;;  %v2702_v54 = vmul.f32 %v3334_v41, %v2576_v31  ;;  %v3336_v6 = vld [vmem:[#allocation5_spill] sm:$0xff] }
 0x19a   :  { %v2706_v18 = vmul.f32 %v3335_v47, %v2576_v31  ;;  %v2710_v30 = vmul.f32 %v2576_v31, %v3336_v6  ;;  %v2714_v45 = vmul.f32 %v2576_v31, %v3337_v19  ;;  %v2718_v60 = vmul.f32 %v2263_v51, %v2576_v31 }
 0x19b   :  { %v2722_v41 = vmul.f32 %v2274_v58, %v2576_v31  ;;  %v2726_v47 = vmul.f32 %v2576_v31, %v2295_v9  ;;  %v2730_v6 = vmul.f32 %v2576_v31, %v2306_v16  ;;  %v2734_v19 = vmul.f32 %v2291_v7, %v2576_v31 }
 0x19c   :  { %v2738_v51 = vmul.f32 %v2302_v14, %v2576_v31  ;;  %v2742_v58 = vmul.f32 %v2576_v31, %v2323_v29  ;;  %v2746_v9 = vmul.f32 %v2576_v31, %v2334_v36  ;;  %v2750_v16 = vmul.f32 %v2319_v27, %v2576_v31 }
 0x19d   :  { %v2754_v7 = vmul.f32 %v2330_v34, %v2576_v31  ;;  %v2758_v14 = vmul.f32 %v2576_v31, %v2351_v61  ;;  %v2762_v29 = vmul.f32 %v2576_v31, %v2362_v4  ;;  %v2766_v36 = vmul.f32 %v2347_v55, %v2576_v31 }
 0x19e   :  { %v2770_v27 = vmul.f32 %v2358_v2, %v2576_v31  ;;  %v2774_v34 = vmul.f32 %v2576_v31, %v2379_v26  ;;  %v2778_v61 = vmul.f32 %v2576_v31, %v2390_v44  ;;  %v2782_v4 = vmul.f32 %v2375_v23, %v2576_v31 }
 0x19f   :  { %v2786_v55 = vmul.f32 %v2386_v42, %v2576_v31  ;;  %v2790_v2 = vmul.f32 %v2576_v31, %v2407_v17  ;;  %v2794_v26 = vmul.f32 %v2576_v31, %v2418_v32  ;;  %v2798_v44 = vmul.f32 %v2403_v11, %v2576_v31 }
 0x1a0   :  { %3338 = vst [vmem:[#allocation7_spill] sm:$0xff] %v2778_v61  ;;  %3339 = vst [vmem:[#allocation9_spill] sm:$0xff] %v2782_v4  ;;  %v3344_v61 = vld [vmem:[#allocation15_spill] sm:$0xff]  ;;  %v3346_v4 = vld [vmem:[#allocation20_spill] sm:$0xff] }
 0x1a1   :  { %3340 = vst [vmem:[#allocation11_spill] sm:$0xff] %v2786_v55  ;;  %3341 = vst [vmem:[#allocation8_spill] sm:$0xff] %v2790_v2  ;;  %v2802_v23 = vmul.f32 %v3344_v61, %v2576_v31  ;;  %v2806_v42 = vmul.f32 %v2576_v31, %v3346_v4  ;;  %v3348_v55 = vld [vmem:[#allocation24_spill] sm:$0xff]  ;;  %v3350_v2 = vld [vmem:[#allocation18_spill] sm:$0xff] }
 0x1a2   :  { %3342 = vst [vmem:[#allocation10_spill] sm:$0xff] %v2794_v26  ;;  %3343 = vst [vmem:[#allocation13_spill] sm:$0xff] %v2798_v44  ;;  %v2810_v17 = vmul.f32 %v2576_v31, %v3348_v55  ;;  %v2814_v32 = vmul.f32 %v3350_v2, %v2576_v31  ;;  %v3351_v26 = vld [vmem:[#allocation22_spill] sm:$0xff]  ;;  %v3352_v44 = vsub.s32 0, %v2561_v22 }
 0x1a3   :  { %3345 = vst [vmem:[#allocation16_spill] sm:$0xff] %v2802_v23  ;;  %3347 = vst [vmem:[#allocation12_spill] sm:$0xff] %v2806_v42  ;;  %v2818_v11 = vmul.f32 %v3351_v26, %v2576_v31  ;;  %v3353_v23 = vld [vmem:[#allocation26_spill] sm:$0xff]  ;;  %v3354_v42 = vld [vmem:[#allocation27_spill] sm:$0xff]  ;;  %v2838_v26 = vmul.f32 %v2464_v1, %v2576_v31 }
 0x1a4   :  { %3349 = vst [vmem:[#allocation14_spill] sm:$0xff] %v2810_v17  ;;  %v2822_v61 = vrot.slane %v948_v43, %v3352_v44  ;;  %v2826_v4 = vmul.f32 %v2576_v31, %v3353_v23  ;;  %v2830_v55 = vmul.f32 %v2576_v31, %v3354_v42  ;;  %v3355_v17 = vld [vmem:[#allocation25_spill] sm:$0xff] }
 0x1a5   :  { %v2834_v2 = vmul.f32 %v3355_v17, %v2576_v31 }
 0x1a6   :  { %v2842_v22 = vadd.f32 %v2822_v61, %v2582_v21  ;;  %v2846_v43 = vadd.f32 %v2822_v61, %v2586_v0  ;;  %v2850_v44 = vadd.f32 %v2822_v61, %v2590_v48  ;;  %v2854_v23 = vadd.f32 %v2822_v61, %v2594_v24 }
 0x1a7   :  { %v2858_v1 = vadd.f32 %v2822_v61, %v2598_v46  ;;  %v2862_v31 = vadd.f32 %v2822_v61, %v2602_v38  ;;  %v2866_v21 = vadd.f32 %v2822_v61, %v2606_v40  ;;  %v2870_v0 = vadd.f32 %v2822_v61, %v2610_v37  ;;  %v3366_v42 = vld [vmem:[#allocation9_spill] sm:$0xff] }
 0x1a8   :  { %3356 = vst [vmem:[#allocation19_spill] sm:$0xff] %v2842_v22  ;;  %3357 = vst [vmem:[#allocation23_spill] sm:$0xff] %v2846_v43  ;;  %v2874_v48 = vadd.f32 %v2822_v61, %v2614_v39  ;;  %v2878_v24 = vadd.f32 %v2822_v61, %v2618_v52  ;;  %v2882_v46 = vadd.f32 %v2822_v61, %v2622_v59  ;;  %v3368_v17 = vld [vmem:[#allocation11_spill] sm:$0xff] }
 0x1a9   :  { %3358 = vst [vmem:[#allocation17_spill] sm:$0xff] %v2850_v44  ;;  %3359 = vst [vmem:[#allocation21_spill] sm:$0xff] %v2854_v23  ;;  %v2886_v38 = vadd.f32 %v2822_v61, %v2626_v49  ;;  %v2890_v40 = vadd.f32 %v2822_v61, %v2630_v57  ;;  %v2894_v37 = vadd.f32 %v2822_v61, %v2634_v8 }
 0x1aa   :  { %3360 = vst [vmem:[#allocation5_spill] sm:$0xff] %v2858_v1  ;;  %v2898_v39 = vadd.f32 %v2822_v61, %v2638_v15  ;;  %v2902_v52 = vadd.f32 %v2822_v61, %v2642_v5  ;;  %v2906_v59 = vadd.f32 %v2822_v61, %v2646_v13  ;;  %v2910_v49 = vadd.f32 %v2822_v61, %v2650_v28 }
 0x1ab   :  { %v2914_v57 = vadd.f32 %v2822_v61, %v2654_v35  ;;  %v2918_v8 = vadd.f32 %v2822_v61, %v2658_v25  ;;  %v2922_v15 = vadd.f32 %v2822_v61, %v2662_v33  ;;  %v2926_v5 = vadd.f32 %v2822_v61, %v2666_v56 }
 0x1ac   :  { %v2930_v13 = vadd.f32 %v2822_v61, %v2670_v3  ;;  %v2934_v28 = vadd.f32 %v2822_v61, %v2674_v50  ;;  %v2938_v35 = vadd.f32 %v2822_v61, %v2678_v63  ;;  %v2942_v25 = vadd.f32 %v2822_v61, %v2682_v12 }
 0x1ad   :  { %v2946_v33 = vadd.f32 %v2822_v61, %v2686_v20  ;;  %v2950_v56 = vadd.f32 %v2822_v61, %v2690_v62  ;;  %v2954_v3 = vadd.f32 %v2822_v61, %v2694_v53  ;;  %v2958_v50 = vadd.f32 %v2822_v61, %v2698_v10 }
 0x1ae   :  { %v2962_v63 = vadd.f32 %v2822_v61, %v2702_v54  ;;  %v2966_v12 = vadd.f32 %v2822_v61, %v2706_v18  ;;  %v2970_v20 = vadd.f32 %v2822_v61, %v2710_v30  ;;  %v2974_v62 = vadd.f32 %v2822_v61, %v2714_v45 }
 0x1af   :  { %v2978_v53 = vadd.f32 %v2822_v61, %v2718_v60  ;;  %v2982_v10 = vadd.f32 %v2822_v61, %v2722_v41  ;;  %v2986_v54 = vadd.f32 %v2822_v61, %v2726_v47  ;;  %v2990_v18 = vadd.f32 %v2822_v61, %v2730_v6 }
 0x1b0   :  { %v2994_v30 = vadd.f32 %v2822_v61, %v2734_v19  ;;  %v2998_v45 = vadd.f32 %v2822_v61, %v2738_v51  ;;  %v3002_v60 = vadd.f32 %v2822_v61, %v2742_v58  ;;  %v3006_v41 = vadd.f32 %v2822_v61, %v2746_v9 }
 0x1b1   :  { %v3010_v47 = vadd.f32 %v2822_v61, %v2750_v16  ;;  %v3014_v6 = vadd.f32 %v2822_v61, %v2754_v7  ;;  %v3018_v19 = vadd.f32 %v2822_v61, %v2758_v14  ;;  %v3022_v51 = vadd.f32 %v2822_v61, %v2762_v29  ;;  %v3364_v7 = vld [vmem:[#allocation7_spill] sm:$0xff] }
 0x1b2   :  { %v3026_v58 = vadd.f32 %v2822_v61, %v2766_v36  ;;  %v3030_v9 = vadd.f32 %v2822_v61, %v2770_v27  ;;  %v3034_v16 = vadd.f32 %v2822_v61, %v2774_v34  ;;  %v3038_v14 = vadd.f32 %v2822_v61, %v3364_v7 }
 0x1b3   :  { %v3042_v29 = vadd.f32 %v2822_v61, %v3366_v42  ;;  %v3046_v36 = vadd.f32 %v2822_v61, %v3368_v17 }
 0x1b4   :  { %3361 = vst [vmem:[#allocation6_spill] sm:$0xff] %v3026_v58  ;;  %3362 = vst [vmem:[#allocation15_spill] sm:$0xff] %v3030_v9  ;;  %v3370_v58 = vld [vmem:[#allocation8_spill] sm:$0xff]  ;;  %v3371_v9 = vld [vmem:[#allocation10_spill] sm:$0xff] }
 0x1b5   :  { %3363 = vst [vmem:[#allocation20_spill] sm:$0xff] %v3034_v16  ;;  %3365 = vst [vmem:[#allocation24_spill] sm:$0xff] %v3038_v14  ;;  %v3050_v27 = vadd.f32 %v2822_v61, %v3370_v58  ;;  %v3054_v34 = vadd.f32 %v2822_v61, %v3371_v9  ;;  %v3372_v16 = vld [vmem:[#allocation13_spill] sm:$0xff]  ;;  %v3373_v14 = vld [vmem:[#allocation16_spill] sm:$0xff]  ;;  %v3074_v9 = vadd.f32 %v2822_v61, %v2814_v32 }
 0x1b6   :  { %3367 = vst [vmem:[#allocation18_spill] sm:$0xff] %v3042_v29  ;;  %3369 = vst [vmem:[#allocation22_spill] sm:$0xff] %v3046_v36  ;;  %v3058_v7 = vadd.f32 %v2822_v61, %v3372_v16  ;;  %v3062_v42 = vadd.f32 %v2822_v61, %v3373_v14  ;;  %v3374_v29 = vld [vmem:[#allocation12_spill] sm:$0xff]  ;;  %v3375_v36 = vld [vmem:[#allocation14_spill] sm:$0xff]  ;;  %v3078_v16 = vadd.f32 %v2822_v61, %v2818_v11  ;;  %v1164_v11 = vmax.f32 %v2886_v38, 0.0 }
 0x1b7   :  { %v3066_v17 = vadd.f32 %v2822_v61, %v3374_v29  ;;  %v3070_v58 = vadd.f32 %v2822_v61, %v3375_v36  ;;  %3376 = vst [vmem:[#allocation26_spill] sm:$0xff] %v3074_v9  ;;  %v3082_v14 = vadd.f32 %v2822_v61, %v2826_v4  ;;  %v3086_v29 = vadd.f32 %v2822_v61, %v2830_v55 }
 0x1b8   :  { %3377 = vst [vmem:[#allocation27_spill] sm:$0xff] %v3078_v16  ;;  %v3090_v36 = vadd.f32 %v2822_v61, %v2834_v2  ;;  %v3094_v32 = vadd.f32 %v2822_v61, %v2838_v26  ;;  %v1158_v55 = vmax.f32 %v2862_v31, 0.0  ;;  %v1160_v2 = vmax.f32 %v2870_v0, 0.0 }
 0x1b9   :  { %3378 = vst [vmem:[#allocation25_spill] sm:$0xff] %v3082_v14  ;;  %3379 = vst [vmem:[#allocation7_spill] sm:$0xff] %v3086_v29  ;;  %v1159_v29 = vmax.f32 %v2866_v21, 0.0  ;;  %v1162_v61 = vmax.f32 %v2878_v24, 0.0  ;;  %v1163_v26 = vmax.f32 %v2882_v46, 0.0  ;;  %v1165_v16 = vmax.f32 %v2890_v40, 0.0 }
 0x1ba   :  { %3380 = vst [vmem:[#allocation9_spill] sm:$0xff] %v3090_v36  ;;  %3381 = vst [vmem:[#allocation11_spill] sm:$0xff] %v3094_v32  ;;  %v1161_v36 = vmax.f32 %v2874_v48, 0.0  ;;  %v1166_v4 = vmax.f32 %v2894_v37, 0.0  ;;  %v1167_v14 = vmax.f32 %v2898_v39, 0.0  ;;  %v1168_v31 = vmax.f32 %v2902_v52, 0.0 }
 0x1bb   :  { %v1169_v21 = vmax.f32 %v2906_v59, 0.0  ;;  %v1170_v0 = vmax.f32 %v2910_v49, 0.0  ;;  %v1171_v48 = vmax.f32 %v2914_v57, 0.0  ;;  %v1172_v24 = vmax.f32 %v2918_v8, 0.0  ;;  %v3382_v9 = vld [vmem:[#allocation6_spill] sm:$0xff]  ;;  %v3383_v1 = vld [vmem:[#allocation15_spill] sm:$0xff] }
 0x1bc   :  { %v1173_v46 = vmax.f32 %v2922_v15, 0.0  ;;  %v1174_v38 = vmax.f32 %v2926_v5, 0.0  ;;  %v1175_v40 = vmax.f32 %v2930_v13, 0.0  ;;  %v1176_v37 = vmax.f32 %v2934_v28, 0.0  ;;  %v3384_v23 = vld [vmem:[#allocation20_spill] sm:$0xff] }
 0x1bd   :  { %v1177_v39 = vmax.f32 %v2938_v35, 0.0  ;;  %v1178_v52 = vmax.f32 %v2942_v25, 0.0  ;;  %v1179_v59 = vmax.f32 %v2946_v33, 0.0  ;;  %v1180_v49 = vmax.f32 %v2950_v56, 0.0  ;;  %v3385_v44 = vld [vmem:[#allocation24_spill] sm:$0xff]  ;;  %v3386_v43 = vld [vmem:[#allocation18_spill] sm:$0xff] }
 0x1be   :  { %v1181_v57 = vmax.f32 %v2954_v3, 0.0  ;;  %v1182_v8 = vmax.f32 %v2958_v50, 0.0  ;;  %v1183_v15 = vmax.f32 %v2962_v63, 0.0  ;;  %v1184_v5 = vmax.f32 %v2966_v12, 0.0  ;;  %v3387_v22 = vld [vmem:[#allocation22_spill] sm:$0xff] }
 0x1bf   :  { %v1185_v13 = vmax.f32 %v2970_v20, 0.0  ;;  %v1186_v28 = vmax.f32 %v2974_v62, 0.0  ;;  %v1187_v35 = vmax.f32 %v2978_v53, 0.0  ;;  %v1188_v25 = vmax.f32 %v2982_v10, 0.0  ;;  %v3388_v32 = vld [vmem:[#allocation26_spill] sm:$0xff] }
 0x1c0   :  { %v1189_v33 = vmax.f32 %v2986_v54, 0.0  ;;  %v1190_v56 = vmax.f32 %v2990_v18, 0.0  ;;  %v1191_v3 = vmax.f32 %v2994_v30, 0.0  ;;  %v1192_v50 = vmax.f32 %v2998_v45, 0.0 }
 0x1c1   :  { %v1193_v63 = vmax.f32 %v3002_v60, 0.0  ;;  %v1194_v12 = vmax.f32 %v3006_v41, 0.0  ;;  %v1195_v20 = vmax.f32 %v3010_v47, 0.0  ;;  %v1196_v62 = vmax.f32 %v3014_v6, 0.0 }
 0x1c2   :  { %v1197_v53 = vmax.f32 %v3018_v19, 0.0  ;;  %v1198_v10 = vmax.f32 %v3022_v51, 0.0  ;;  %v1199_v54 = vmax.f32 %v3382_v9, 0.0  ;;  %v1200_v18 = vmax.f32 %v3383_v1, 0.0 }
 0x1c3   :  { %v1201_v30 = vmax.f32 %v3384_v23, 0.0  ;;  %v1202_v45 = vmax.f32 %v3385_v44, 0.0  ;;  %v1203_v60 = vmax.f32 %v3386_v43, 0.0  ;;  %v1204_v41 = vmax.f32 %v3387_v22, 0.0  ;;  %v3389_v44 = vld [vmem:[#allocation27_spill] sm:$0xff]  ;;  %v3390_v22 = vld [vmem:[#allocation25_spill] sm:$0xff] }
 0x1c4   :  { %v1205_v47 = vmax.f32 %v3050_v27, 0.0  ;;  %v1206_v6 = vmax.f32 %v3054_v34, 0.0  ;;  %v1207_v19 = vmax.f32 %v3058_v7, 0.0  ;;  %v1208_v51 = vmax.f32 %v3062_v42, 0.0  ;;  %v3391_v34 = vld [vmem:[#allocation7_spill] sm:$0xff]  ;;  %v3392_v42 = vld [vmem:[#allocation9_spill] sm:$0xff] }
 0x1c5   :  { %v1209_v9 = vmax.f32 %v3066_v17, 0.0  ;;  %v1210_v1 = vmax.f32 %v3070_v58, 0.0  ;;  %v1211_v23 = vmax.f32 %v3388_v32, 0.0  ;;  %v1212_v43 = vmax.f32 %v3389_v44, 0.0  ;;  %v3393_v58 = vld [vmem:[#allocation11_spill] sm:$0xff] }
 0x1c6   :  { %v1213_v27 = vmax.f32 %v3390_v22, 0.0  ;;  %v1214_v7 = vmax.f32 %v3391_v34, 0.0  ;;  %v1215_v17 = vmax.f32 %v3392_v42, 0.0  ;;  %v1216_v32 = vmax.f32 %v3393_v58, 0.0  ;;  %v3394_v44 = vld [vmem:[#allocation19_spill] sm:$0xff] }
 0x1c7   :  { %v3395_v22 = vmax.f32 %v3394_v44, 0.0  ;;  %v3396_v34 = vld [vmem:[#allocation23_spill] sm:$0xff]  ;;  %v3398_v44 = vld [vmem:[#allocation17_spill] sm:$0xff] }
 0x1c8   :  { %v3397_v42 = vmax.f32 %v3396_v34, 0.0  ;;  %v3399_v34 = vmax.f32 %v3398_v44, 0.0 }
 0x1ca   :  { %v1739_v58 = vpack.c.bf16 %v3397_v42, %v3395_v22  ;;  %v3400_v22 = vld [vmem:[#allocation21_spill] sm:$0xff] }
 0x1cb   :  { %v3401_v42 = vmax.f32 %v3400_v22, 0.0  ;;  %v3402_v22 = vld [vmem:[#allocation5_spill] sm:$0xff] }
 0x1cc   :  { %1740 = vst [vmem:[%s3270_s4] sm:$0xff] %v1739_v58  }
 0x1cd   :  { %v1744_v44 = vpack.c.bf16 %v3401_v42, %v3399_v34  ;;  %v3403_v34 = vmax.f32 %v3402_v22, 0.0  ;;  %v1754_v22 = vpack.c.bf16 %v1160_v2, %v1159_v29  ;;  %v1769_v2 = vpack.c.bf16 %v1166_v4, %v1165_v16 }
 0x1ce   :  { %v1774_v29 = vpack.c.bf16 %v1168_v31, %v1167_v14  ;;  %v1789_v16 = vpack.c.bf16 %v1174_v38, %v1173_v46  ;;  %v1794_v14 = vpack.c.bf16 %v1176_v37, %v1175_v40  ;;  %v1799_v4 = vpack.c.bf16 %v1178_v52, %v1177_v39 }
 0x1cf   :  { %v1749_v42 = vpack.c.bf16 %v1158_v55, %v3403_v34  ;;  %v1759_v34 = vpack.c.bf16 %v1162_v61, %v1161_v36  ;;  %v1764_v55 = vpack.c.bf16 %v1164_v11, %v1163_v26  ;;  %1896 = vst [vmem:[%s3270_s4 + $0x8] sm:$0xff] %v1744_v44   ;;  %1898 = vst [vmem:[%s3270_s4 + $0x18] sm:$0xff] %v1754_v22  }
 0x1d0   :  { %v1779_v36 = vpack.c.bf16 %v1170_v0, %v1169_v21  ;;  %v1784_v11 = vpack.c.bf16 %v1172_v24, %v1171_v48  ;;  %1901 = vst [vmem:[%s3270_s4 + $0x30] sm:$0xff] %v1769_v2   ;;  %1902 = vst [vmem:[%s3270_s4 + $0x38] sm:$0xff] %v1774_v29   ;;  %v1804_v61 = vpack.c.bf16 %v1180_v49, %v1179_v59 }
 0x1d1   :  { %1897 = vst [vmem:[%s3270_s4 + $0x10] sm:$0xff] %v1749_v42   ;;  %1899 = vst [vmem:[%s3270_s4 + $0x20] sm:$0xff] %v1759_v34   ;;  %v1809_v26 = vpack.c.bf16 %v1182_v8, %v1181_v57  ;;  %v1814_v31 = vpack.c.bf16 %v1184_v5, %v1183_v15  ;;  %v1819_v21 = vpack.c.bf16 %v1186_v28, %v1185_v13 }
 0x1d2   :  { %1900 = vst [vmem:[%s3270_s4 + $0x28] sm:$0xff] %v1764_v55   ;;  %1903 = vst [vmem:[%s3270_s4 + $0x40] sm:$0xff] %v1779_v36   ;;  %v1824_v0 = vpack.c.bf16 %v1188_v25, %v1187_v35  ;;  %v1829_v48 = vpack.c.bf16 %v1190_v56, %v1189_v33  ;;  %v1834_v24 = vpack.c.bf16 %v1192_v50, %v1191_v3 }
 0x1d3   :  { %1904 = vst [vmem:[%s3270_s4 + $0x48] sm:$0xff] %v1784_v11   ;;  %1905 = vst [vmem:[%s3270_s4 + $0x50] sm:$0xff] %v1789_v16   ;;  %v1839_v46 = vpack.c.bf16 %v1194_v12, %v1193_v63  ;;  %v1844_v38 = vpack.c.bf16 %v1196_v62, %v1195_v20  ;;  %v1849_v40 = vpack.c.bf16 %v1198_v10, %v1197_v53 }
 0x1d4   :  { %1906 = vst [vmem:[%s3270_s4 + $0x58] sm:$0xff] %v1794_v14   ;;  %1907 = vst [vmem:[%s3270_s4 + $0x60] sm:$0xff] %v1799_v4   ;;  %v1854_v37 = vpack.c.bf16 %v1200_v18, %v1199_v54  ;;  %v1859_v39 = vpack.c.bf16 %v1202_v45, %v1201_v30  ;;  %v1864_v52 = vpack.c.bf16 %v1204_v41, %v1203_v60 }
 0x1d5   :  { %1908 = vst [vmem:[%s3270_s4 + $0x68] sm:$0xff] %v1804_v61   ;;  %1909 = vst [vmem:[%s3270_s4 + $0x70] sm:$0xff] %v1809_v26   ;;  %v1869_v59 = vpack.c.bf16 %v1206_v6, %v1205_v47  ;;  %v1874_v49 = vpack.c.bf16 %v1208_v51, %v1207_v19  ;;  %v1879_v57 = vpack.c.bf16 %v1210_v1, %v1209_v9 }
 0x1d6   :  { %1910 = vst [vmem:[%s3270_s4 + $0x78] sm:$0xff] %v1814_v31   ;;  %1911 = vst [vmem:[%s3270_s4 + $0x80] sm:$0xff] %v1819_v21   ;;  %v1884_v8 = vpack.c.bf16 %v1212_v43, %v1211_v23  ;;  %v1889_v15 = vpack.c.bf16 %v1214_v7, %v1213_v27  ;;  %v1894_v5 = vpack.c.bf16 %v1216_v32, %v1215_v17 }
 0x1d7   :  { %1912 = vst [vmem:[%s3270_s4 + $0x88] sm:$0xff] %v1824_v0   ;;  %1913 = vst [vmem:[%s3270_s4 + $0x90] sm:$0xff] %v1829_v48  }
 0x1d8   :  { %1914 = vst [vmem:[%s3270_s4 + $0x98] sm:$0xff] %v1834_v24   ;;  %1915 = vst [vmem:[%s3270_s4 + $0xa0] sm:$0xff] %v1839_v46  }
 0x1d9   :  { %1916 = vst [vmem:[%s3270_s4 + $0xa8] sm:$0xff] %v1844_v38   ;;  %1917 = vst [vmem:[%s3270_s4 + $0xb0] sm:$0xff] %v1849_v40  }
 0x1da   :  { %1918 = vst [vmem:[%s3270_s4 + $0xb8] sm:$0xff] %v1854_v37   ;;  %1919 = vst [vmem:[%s3270_s4 + $0xc0] sm:$0xff] %v1859_v39  }
 0x1db   :  { %1920 = vst [vmem:[%s3270_s4 + $0xc8] sm:$0xff] %v1864_v52   ;;  %1921 = vst [vmem:[%s3270_s4 + $0xd0] sm:$0xff] %v1869_v59  }
 0x1dc   :  { %1922 = vst [vmem:[%s3270_s4 + $0xd8] sm:$0xff] %v1874_v49   ;;  %1923 = vst [vmem:[%s3270_s4 + $0xe0] sm:$0xff] %v1879_v57  }
 0x1dd   :  { %1924 = vst [vmem:[%s3270_s4 + $0xe8] sm:$0xff] %v1884_v8   ;;  %1925 = vst [vmem:[%s3270_s4 + $0xf0] sm:$0xff] %v1889_v15  }
 0x1de   :  { %1926 = vst [vmem:[%s3270_s4 + $0xf8] sm:$0xff] %v1894_v5  }

// kernel: conv_block_forward.3
= control target key start
LH: loop header
LB: loop body
LE: loop exit
PB: predicated region body
PF: predicated region fallthrough
CT: control target
= control target key end

     0   :  { %v3083_v0 = vmov 0   ;;  %vm776_vm0 = vcmask 261120   ;;  %s4655_s1 = inlined_call_operand.vmem [shape: bf16[288,128], index: 1, kind: input, shape index: {}]   ;;  %s4656_s0 = inlined_call_operand.vmem [shape: bf16[512,288], index: 0, kind: input, shape index: {}]   ;;  %s4657_s2 = inlined_call_operand.vmem [shape: f32[1,128], index: 2, kind: input, shape index: {}]   ;;  %s4658_s3 = inlined_call_operand.vmem [shape: f32[1,128], index: 3, kind: input, shape index: {}]   ;;  %s4659_s4 = inlined_call_operand.vmem [shape: bf16[512,128], index: 4, kind: output, shape index: {}]  }
   0x1   :  { %873 = vmatprep.subr.bf16.mxu0 %v3083_v0  ;;  %2901 = vmatprep.subr.bf16.mxu1 %v3083_v0  ;;  %v2935_v1 = vld [vmem:[%s4655_s1] sm:$0xff]   ;;  %v2936_v2 = vld [vmem:[%s4655_s1 + $0x8] sm:$0xff]   ;;  %v2937_v3 = vld [vmem:[%s4655_s1 + $0x10] sm:$0xff]  }
   0x2   :  { %874 = vmatpush1.bf16.msra.mxu0 %v2935_v1  ;;  %2917 = vmatpush1.bf16.msra.mxu1 %v2935_v1  ;;  %v2938_v4 = vld [vmem:[%s4655_s1 + $0x18] sm:$0xff]   ;;  %v2939_v5 = vld [vmem:[%s4655_s1 + $0x20] sm:$0xff]   ;;  %v2940_v7 = vld [vmem:[%s4655_s1 + $0x28] sm:$0xff]  }
   0x3   :  { %875 = vmatprep.subr.bf16.mxu0 %v3083_v0  ;;  %2902 = vmatprep.subr.bf16.mxu1 %v3083_v0  ;;  %v2953_v6 = vld [vmem:[%s4656_s0 + $0x4] ss:$12 sps:$4 sm:$0xff]   ;;  %v2942_v10 = vld [vmem:[%s4655_s1 + $0x38] sm:$0xff]   ;;  %v2944_v12 = vld [vmem:[%s4655_s1 + $0x48] sm:$0xff]  }
   0x4   :  { %v2956_v8 = vld [vmem:[%s4656_s0 + $0x244] ss:$12 sps:$4 sm:$0xff]   ;;  %905 = vmatprep.mubr.bf16.mxu0 %v2953_v6  ;;  %v2946_v14 = vld [vmem:[%s4655_s1 + $0x58] sm:$0xff]   ;;  %v2948_v16 = vld [vmem:[%s4655_s1 + $0x68] sm:$0xff]  }
   0x5   :  { %1097 = vmatprep.mubr.bf16.mxu1 %v2956_v8  ;;  %v2941_v9 = vld [vmem:[%s4655_s1 + $0x30] sm:$0xff]   ;;  %v2943_v11 = vld [vmem:[%s4655_s1 + $0x40] sm:$0xff]   ;;  %v2950_v18 = vld [vmem:[%s4655_s1 + $0x78] sm:$0xff]  }
   0x6   :  { %876 = vmatpush1.bf16.msra.mxu0 %v2936_v2  ;;  %2918 = vmatpush1.bf16.msra.mxu1 %v2936_v2  ;;  %v2945_v13 = vld [vmem:[%s4655_s1 + $0x50] sm:$0xff]   ;;  %v2947_v15 = vld [vmem:[%s4655_s1 + $0x60] sm:$0xff]   ;;  %v2957_v22 = vld [vmem:[%s4656_s0 + $0x1c] ss:$12 sps:$4 sm:$0xff]  }
   0x7   :  { %877 = vmatprep.subr.bf16.mxu0 %v3083_v0  ;;  %2903 = vmatprep.subr.bf16.mxu1 %v3083_v0  ;;  %v2949_v17 = vld [vmem:[%s4655_s1 + $0x70] sm:$0xff]   ;;  %v2975_v19 = vld [vmem:[%s4655_s1 + $0x80] sm:$0xff]   ;;  %v2959_v23 = vld [vmem:[%s4656_s0 + $0x25c] ss:$12 sps:$4 sm:$0xff]  }
   0x8   :  { %v2951_v20 = vld [vmem:[%s4656_s0] ss:$12 sps:$4 sm:$0xff]   ;;  %v2961_v25 = vld [vmem:[%s4656_s0 + $0x18] ss:$12 sps:$4 sm:$0xff]   ;;  %v2967_v29 = vld [vmem:[%s4656_s0 + $0x30] ss:$12 sps:$4 sm:$0xff]  }
   0x9   :  { %v2954_v21 = vld [vmem:[%s4656_s0 + $0x240] ss:$12 sps:$4 sm:$0xff]   ;;  %v2962_v26 = vld [vmem:[%s4656_s0 + $0x258] ss:$12 sps:$4 sm:$0xff]   ;;  %v2968_v30 = vld [vmem:[%s4656_s0 + $0x270] ss:$12 sps:$4 sm:$0xff]  }
   0xa   :  { %878 = vmatpush1.bf16.msra.mxu0 %v2937_v3  ;;  %2919 = vmatpush1.bf16.msra.mxu1 %v2937_v3  ;;  %v3000_v24 = vld [vmem:[%s4655_s1 + $0x88] sm:$0xff]   ;;  %v2963_v27 = vld [vmem:[%s4656_s0 + $0x34] ss:$12 sps:$4 sm:$0xff]   ;;  %v2976_v35 = vld [vmem:[%s4656_s0 + $0x64] ss:$12 sps:$4 sm:$0xff]  }
   0xb   :  { %879 = vmatprep.subr.bf16.mxu0 %v3083_v0  ;;  %2904 = vmatprep.subr.bf16.mxu1 %v3083_v0  ;;  %v2965_v28 = vld [vmem:[%s4656_s0 + $0x274] ss:$12 sps:$4 sm:$0xff]   ;;  %v2969_v31 = vld [vmem:[%s4656_s0 + $0x4c] ss:$12 sps:$4 sm:$0xff]   ;;  %v2978_v36 = vld [vmem:[%s4656_s0 + $0x2a4] ss:$12 sps:$4 sm:$0xff]  }
   0xc   :  { %v2971_v32 = vld [vmem:[%s4656_s0 + $0x28c] ss:$12 sps:$4 sm:$0xff]   ;;  %v2973_v33 = vld [vmem:[%s4656_s0 + $0x48] ss:$12 sps:$4 sm:$0xff]   ;;  %v2992_v45 = vld [vmem:[%s4656_s0 + $0x90] ss:$12 sps:$4 sm:$0xff]  }
   0xd   :  { %v2974_v34 = vld [vmem:[%s4656_s0 + $0x288] ss:$12 sps:$4 sm:$0xff]   ;;  %v2980_v37 = vld [vmem:[%s4656_s0 + $0x60] ss:$12 sps:$4 sm:$0xff]   ;;  %v2986_v41 = vld [vmem:[%s4656_s0 + $0x78] ss:$12 sps:$4 sm:$0xff]  }
   0xe   :  { %880 = vmatpush1.bf16.msra.mxu0 %v2938_v4  ;;  %2920 = vmatpush1.bf16.msra.mxu1 %v2938_v4  ;;  %v2981_v38 = vld [vmem:[%s4656_s0 + $0x2a0] ss:$12 sps:$4 sm:$0xff]   ;;  %v2982_v39 = vld [vmem:[%s4656_s0 + $0x7c] ss:$12 sps:$4 sm:$0xff]   ;;  %v2987_v42 = vld [vmem:[%s4656_s0 + $0x2b8] ss:$12 sps:$4 sm:$0xff]  }
   0xf   :  { %881 = vmatprep.subr.bf16.mxu0 %v3083_v0  ;;  %2905 = vmatprep.subr.bf16.mxu1 %v3083_v0  ;;  %v2984_v40 = vld [vmem:[%s4656_s0 + $0x2bc] ss:$12 sps:$4 sm:$0xff]   ;;  %v2988_v43 = vld [vmem:[%s4656_s0 + $0x94] ss:$12 sps:$4 sm:$0xff]   ;;  %v2994_v47 = vld [vmem:[%s4656_s0 + $0xac] ss:$12 sps:$4 sm:$0xff]  }
  0x10   :  { %v2990_v44 = vld [vmem:[%s4656_s0 + $0x2d4] ss:$12 sps:$4 sm:$0xff]   ;;  %v2993_v46 = vld [vmem:[%s4656_s0 + $0x2d0] ss:$12 sps:$4 sm:$0xff]   ;;  %v2996_v48 = vld [vmem:[%s4656_s0 + $0x2ec] ss:$12 sps:$4 sm:$0xff]  }
  0x11   :  { %v2998_v49 = vld [vmem:[%s4656_s0 + $0xa8] ss:$12 sps:$4 sm:$0xff]   ;;  %v3001_v51 = vld [vmem:[%s4656_s0 + $0xc4] ss:$12 sps:$4 sm:$0xff]   ;;  %v3004_v53 = vld [vmem:[%s4656_s0 + $0xc0] ss:$12 sps:$4 sm:$0xff]  }
  0x12   :  { %882 = vmatpush1.bf16.msra.mxu0 %v2939_v5  ;;  %2921 = vmatpush1.bf16.msra.mxu1 %v2939_v5  ;;  %v2999_v50 = vld [vmem:[%s4656_s0 + $0x2e8] ss:$12 sps:$4 sm:$0xff]   ;;  %v3005_v54 = vld [vmem:[%s4656_s0 + $0x20] ss:$12 sps:$4 sm:$0xff]   ;;  %v3008_v56 = vld [vmem:[%s4656_s0 + $0x38] ss:$12 sps:$4 sm:$0xff]  }
  0x13   :  { %883 = vmatprep.subr.bf16.mxu0 %v3083_v0  ;;  %2906 = vmatprep.subr.bf16.mxu1 %v3083_v0  ;;  %v3003_v52 = vld [vmem:[%s4656_s0 + $0x8] ss:$12 sps:$4 sm:$0xff]   ;;  %v3009_v57 = vld [vmem:[%s4656_s0 + $0xd8] ss:$12 sps:$4 sm:$0xff]   ;;  %v3010_v58 = vld [vmem:[%s4656_s0 + $0x50] ss:$12 sps:$4 sm:$0xff]  }
  0x14   :  { %v3006_v55 = vld [vmem:[%s4656_s0 + $0xdc] ss:$12 sps:$4 sm:$0xff]   ;;  %v3011_v59 = vld [vmem:[%s4656_s0 + $0xf4] ss:$12 sps:$4 sm:$0xff]   ;;  %v3016_v63 = vld [vmem:[%s4656_s0 + $0x10c] ss:$12 sps:$4 sm:$0xff]  }
  0x15   :  { %v3013_v60 = vld [vmem:[%s4656_s0 + $0x68] ss:$12 sps:$4 sm:$0xff]   ;;  %v3014_v61 = vld [vmem:[%s4656_s0 + $0xf0] ss:$12 sps:$4 sm:$0xff]   ;;  %v3015_v62 = vld [vmem:[%s4656_s0 + $0x80] ss:$12 sps:$4 sm:$0xff]  }
  0x16   :  { %884 = vmatpush1.bf16.msra.mxu0 %v2940_v7  ;;  %2922 = vmatpush1.bf16.msra.mxu1 %v2940_v7  ;;  %v3019_v1 = vld [vmem:[%s4656_s0 + $0x108] ss:$12 sps:$4 sm:$0xff]   ;;  %v3020_v2 = vld [vmem:[%s4656_s0 + $0xb0] ss:$12 sps:$4 sm:$0xff]   ;;  %v3024_v5 = vld [vmem:[%s4656_s0 + $0x120] ss:$12 sps:$4 sm:$0xff]  }
  0x17   :  { %885 = vmatprep.subr.bf16.mxu0 %v3083_v0  ;;  %2907 = vmatprep.subr.bf16.mxu1 %v3083_v0  ;;  %v3021_v3 = vld [vmem:[%s4656_s0 + $0x124] ss:$12 sps:$4 sm:$0xff]   ;;  %v3023_v4 = vld [vmem:[%s4656_s0 + $0xc8] ss:$12 sps:$4 sm:$0xff]   ;;  %v3025_v6 = vld [vmem:[%s4656_s0 + $0xe0] ss:$12 sps:$4 sm:$0xff]  }
  0x18   :  { %v3026_v7 = vld [vmem:[%s4656_s0 + $0x13c] ss:$12 sps:$4 sm:$0xff]   ;;  %v3028_v8 = vld [vmem:[%s4656_s0 + $0xf8] ss:$12 sps:$4 sm:$0xff]  }
  0x1a   :  { %886 = vmatpush1.bf16.msra.mxu0 %v2941_v9  ;;  %2923 = vmatpush1.bf16.msra.mxu1 %v2941_v9  ;;  %v3029_v9 = vld [vmem:[%s4656_s0 + $0x138] ss:$12 sps:$4 sm:$0xff]  }
  0x1b   :  { %887 = vmatprep.subr.bf16.mxu0 %v3083_v0  ;;  %2908 = vmatprep.subr.bf16.mxu1 %v3083_v0 }
  0x1e   :  { %888 = vmatpush1.bf16.msra.mxu0 %v2942_v10  ;;  %2924 = vmatpush1.bf16.msra.mxu1 %v2942_v10  ;;  %v3030_v10 = vld [vmem:[%s4656_s0 + $0x110] ss:$12 sps:$4 sm:$0xff]  }
  0x1f   :  { %889 = vmatprep.subr.bf16.mxu0 %v3083_v0  ;;  %2909 = vmatprep.subr.bf16.mxu1 %v3083_v0 }
  0x22   :  { %890 = vmatpush1.bf16.msra.mxu0 %v2943_v11  ;;  %2925 = vmatpush1.bf16.msra.mxu1 %v2943_v11  ;;  %v3031_v11 = vld [vmem:[%s4656_s0 + $0x154] ss:$12 sps:$4 sm:$0xff]  }
  0x23   :  { %891 = vmatprep.subr.bf16.mxu0 %v3083_v0  ;;  %2910 = vmatprep.subr.bf16.mxu1 %v3083_v0 }
  0x26   :  { %892 = vmatpush1.bf16.msra.mxu0 %v2944_v12  ;;  %2926 = vmatpush1.bf16.msra.mxu1 %v2944_v12  ;;  %v3033_v12 = vld [vmem:[%s4656_s0 + $0x128] ss:$12 sps:$4 sm:$0xff]  }
  0x27   :  { %893 = vmatprep.subr.bf16.mxu0 %v3083_v0  ;;  %2911 = vmatprep.subr.bf16.mxu1 %v3083_v0 }
  0x2a   :  { %894 = vmatpush1.bf16.msra.mxu0 %v2945_v13  ;;  %2927 = vmatpush1.bf16.msra.mxu1 %v2945_v13  ;;  %v3034_v13 = vld [vmem:[%s4656_s0 + $0x150] ss:$12 sps:$4 sm:$0xff]  }
  0x2b   :  { %895 = vmatprep.subr.bf16.mxu0 %v3083_v0  ;;  %2912 = vmatprep.subr.bf16.mxu1 %v3083_v0 }
  0x2e   :  { %896 = vmatpush1.bf16.msra.mxu0 %v2946_v14  ;;  %2928 = vmatpush1.bf16.msra.mxu1 %v2946_v14  ;;  %v3035_v14 = vld [vmem:[%s4656_s0 + $0x140] ss:$12 sps:$4 sm:$0xff]  }
  0x2f   :  { %897 = vmatprep.subr.bf16.mxu0 %v3083_v0  ;;  %2913 = vmatprep.subr.bf16.mxu1 %v3083_v0 }
  0x32   :  { %898 = vmatpush1.bf16.msra.mxu0 %v2947_v15  ;;  %2929 = vmatpush1.bf16.msra.mxu1 %v2947_v15  ;;  %v3036_v15 = vld [vmem:[%s4656_s0 + $0x16c] ss:$12 sps:$4 sm:$0xff]  }
  0x33   :  { %899 = vmatprep.subr.bf16.mxu0 %v3083_v0  ;;  %2914 = vmatprep.subr.bf16.mxu1 %v3083_v0 }
  0x36   :  { %900 = vmatpush1.bf16.msra.mxu0 %v2948_v16  ;;  %2930 = vmatpush1.bf16.msra.mxu1 %v2948_v16  ;;  %v3038_v16 = vld [vmem:[%s4656_s0 + $0x158] ss:$12 sps:$4 sm:$0xff]  }
  0x37   :  { %901 = vmatprep.subr.bf16.mxu0 %v3083_v0  ;;  %2915 = vmatprep.subr.bf16.mxu1 %v3083_v0 }
  0x3a   :  { %902 = vmatpush1.bf16.msra.mxu0 %v2949_v17  ;;  %2931 = vmatpush1.bf16.msra.mxu1 %v2949_v17  ;;  %v3039_v17 = vld [vmem:[%s4656_s0 + $0x168] ss:$12 sps:$4 sm:$0xff]  }
  0x3b   :  { %903 = vmatprep.subr.bf16.mxu0 %v3083_v0  ;;  %2916 = vmatprep.subr.bf16.mxu1 %v3083_v0  ;;  %v3018_v0 = vld [vmem:[%s4656_s0 + $0x98] ss:$12 sps:$4 sm:$0xff]  }
  0x3e   :  { %904 = vmatpush1.bf16.msra.mxu0 %v2950_v18  ;;  %2932 = vmatpush1.bf16.msra.mxu1 %v2950_v18  ;;  %v3040_v18 = vld [vmem:[%s4656_s0 + $0x170] ss:$12 sps:$4 sm:$0xff]  }
  0x3f   :  { %2833 = vmatprep.subr.bf16.mxu1 %v2975_v19 }
  0x41   :  { %906 = vmatmul.mubr.bf16.vlgmr.msra.gmra.mrb[0].mxu0 %v2951_v20  ;;  %1098 = vmatmul.mubr.bf16.vlgmr.msra.gmra.mrb[0].mxu1 %v2954_v21  ;;  %v3043_v20 = vld [vmem:[%s4656_s0 + $0x188] ss:$12 sps:$4 sm:$0xff]   ;;  %v3044_v21 = vld [vmem:[%s4656_s0 + $0x180] ss:$12 sps:$4 sm:$0xff]  }
  0x42   :  { %913 = vmatprep.mubr.bf16.mxu0 %v2957_v22  ;;  %1105 = vmatprep.mubr.bf16.mxu1 %v2959_v23  ;;  %v3045_v22 = vld [vmem:[%s4656_s0 + $0x1a0] ss:$12 sps:$4 sm:$0xff]   ;;  %v3046_v23 = vld [vmem:[%s4656_s0 + $0x19c] ss:$12 sps:$4 sm:$0xff]  }
  0x43   :  { %2834 = vmatpush3.bf16.msra.mxu1 %v2975_v19  ;;  %v3041_v19 = vld [vmem:[%s4656_s0 + $0x184] ss:$12 sps:$4 sm:$0xff]  }
  0x44   :  { %2835 = vmatprep.subr.bf16.mxu1 %v3000_v24 }
  0x47   :  { %2836 = vmatpush3.bf16.msra.mxu1 %v3000_v24  ;;  %v3048_v24 = vld [vmem:[%s4656_s0 + $0x1b8] ss:$12 sps:$4 sm:$0xff]  }
  0x49   :  { %914 = vmatmul.mubr.bf16.gmra.mrb[4].mxu0 %v2961_v25  ;;  %1106 = vmatmul.mubr.bf16.gmra.mrb[4].mxu1 %v2962_v26  ;;  %v3049_v25 = vld [vmem:[%s4656_s0 + $0x198] ss:$12 sps:$4 sm:$0xff]   ;;  %v3050_v26 = vld [vmem:[%s4656_s0 + $0x1d0] ss:$12 sps:$4 sm:$0xff]  }
  0x4a   :  { %921 = vmatprep.mubr.bf16.mxu0 %v2963_v27  ;;  %1113 = vmatprep.mubr.bf16.mxu1 %v2965_v28  ;;  %v3051_v27 = vld [vmem:[%s4656_s0 + $0x1b4] ss:$12 sps:$4 sm:$0xff]  }
  0x4b   :  { %v3053_v28 = vld [vmem:[%s4656_s0 + $0x1e8] ss:$12 sps:$4 sm:$0xff]  }
  0x51   :  { %922 = vmatmul.mubr.bf16.gmra.mrb[8].mxu0 %v2967_v29  ;;  %1114 = vmatmul.mubr.bf16.gmra.mrb[8].mxu1 %v2968_v30  ;;  %v3054_v29 = vld [vmem:[%s4656_s0 + $0x1b0] ss:$12 sps:$4 sm:$0xff]   ;;  %v3055_v30 = vld [vmem:[%s4656_s0 + $0x200] ss:$12 sps:$4 sm:$0xff]  }
  0x52   :  { %929 = vmatprep.mubr.bf16.mxu0 %v2969_v31  ;;  %1121 = vmatprep.mubr.bf16.mxu1 %v2971_v32  ;;  %v3056_v31 = vld [vmem:[%s4656_s0 + $0x1cc] ss:$12 sps:$4 sm:$0xff]  }
  0x53   :  { %v3058_v32 = vld [vmem:[%s4656_s0 + $0x218] ss:$12 sps:$4 sm:$0xff]  }
  0x59   :  { %930 = vmatmul.mubr.bf16.gmra.mrb[12].mxu0 %v2973_v33  ;;  %1122 = vmatmul.mubr.bf16.gmra.mrb[12].mxu1 %v2974_v34  ;;  %v3059_v33 = vld [vmem:[%s4656_s0 + $0x1c8] ss:$12 sps:$4 sm:$0xff]   ;;  %v3060_v34 = vld [vmem:[%s4656_s0 + $0x230] ss:$12 sps:$4 sm:$0xff]  }
  0x5a   :  { %937 = vmatprep.mubr.bf16.mxu0 %v2976_v35  ;;  %1129 = vmatprep.mubr.bf16.mxu1 %v2978_v36  ;;  %v3061_v35 = vld [vmem:[%s4656_s0 + $0x1e4] ss:$12 sps:$4 sm:$0xff]   ;;  %v3063_v36 = vld [vmem:[%s4656_s0 + $0x248] ss:$12 sps:$4 sm:$0xff]  }
  0x61   :  { %938 = vmatmul.mubr.bf16.gmra.mrb[16].mxu0 %v2980_v37  ;;  %1130 = vmatmul.mubr.bf16.gmra.mrb[16].mxu1 %v2981_v38  ;;  %v3064_v37 = vld [vmem:[%s4656_s0 + $0x1e0] ss:$12 sps:$4 sm:$0xff]  }
  0x62   :  { %945 = vmatprep.mubr.bf16.mxu0 %v2982_v39  ;;  %1137 = vmatprep.mubr.bf16.mxu1 %v2984_v40  ;;  %v3065_v38 = vld [vmem:[%s4656_s0 + $0x260] ss:$12 sps:$4 sm:$0xff]   ;;  %v3066_v39 = vld [vmem:[%s4656_s0 + $0x1fc] ss:$12 sps:$4 sm:$0xff]   ;;  %v3068_v40 = vld [vmem:[%s4656_s0 + $0x278] ss:$12 sps:$4 sm:$0xff]  }
  0x69   :  { %946 = vmatmul.mubr.bf16.gmra.mrb[20].mxu0 %v2986_v41  ;;  %1138 = vmatmul.mubr.bf16.gmra.mrb[20].mxu1 %v2987_v42  ;;  %v3069_v41 = vld [vmem:[%s4656_s0 + $0x1f8] ss:$12 sps:$4 sm:$0xff]   ;;  %v3070_v42 = vld [vmem:[%s4656_s0 + $0x290] ss:$12 sps:$4 sm:$0xff]  }
  0x6a   :  { %953 = vmatprep.mubr.bf16.mxu0 %v2988_v43  ;;  %1145 = vmatprep.mubr.bf16.mxu1 %v2990_v44  ;;  %v3071_v43 = vld [vmem:[%s4656_s0 + $0x214] ss:$12 sps:$4 sm:$0xff]  }
  0x6b   :  { %v3073_v44 = vld [vmem:[%s4656_s0 + $0x2a8] ss:$12 sps:$4 sm:$0xff]  }
  0x71   :  { %954 = vmatmul.mubr.bf16.gmra.mrb[24].mxu0 %v2992_v45  ;;  %1146 = vmatmul.mubr.bf16.gmra.mrb[24].mxu1 %v2993_v46  ;;  %v3074_v45 = vld [vmem:[%s4656_s0 + $0x210] ss:$12 sps:$4 sm:$0xff]   ;;  %v3075_v46 = vld [vmem:[%s4656_s0 + $0x2c0] ss:$12 sps:$4 sm:$0xff]  }
  0x72   :  { %961 = vmatprep.mubr.bf16.mxu0 %v2994_v47  ;;  %1153 = vmatprep.mubr.bf16.mxu1 %v2996_v48  ;;  %v3076_v47 = vld [vmem:[%s4656_s0 + $0x22c] ss:$12 sps:$4 sm:$0xff]  }
  0x73   :  { %v3078_v48 = vld [vmem:[%s4656_s0 + $0x2d8] ss:$12 sps:$4 sm:$0xff]  }
  0x79   :  { %962 = vmatmul.mubr.bf16.gmra.mrb[28].mxu0 %v2998_v49  ;;  %1154 = vmatmul.mubr.bf16.gmra.mrb[28].mxu1 %v2999_v50  ;;  %v3079_v49 = vld [vmem:[%s4656_s0 + $0x228] ss:$12 sps:$4 sm:$0xff]   ;;  %v3080_v50 = vld [vmem:[%s4656_s0 + $0x2f0] ss:$12 sps:$4 sm:$0xff]  }
  0x7a   :  { %969 = vmatprep.mubr.bf16.mxu0 %v3001_v51  ;;  %2837 = vmatprep.mubr.msk.bf16.mxu1 %vm776_vm0, %v3003_v52 }
  0x81   :  { %970 = vmatmul.mubr.bf16.gmra.mrb[32].mxu0 %v3004_v53  ;;  %2838 = vmatmul.mubr.msk.bf16.vlgmr.msra.gmra.mrb[32].mxu1 %vm776_vm0, %v3005_v54 }
  0x82   :  { %977 = vmatprep.mubr.bf16.mxu0 %v3006_v55  ;;  %2841 = vmatprep.mubr.msk.bf16.mxu1 %vm776_vm0, %v3008_v56 }
  0x89   :  { %978 = vmatmul.mubr.bf16.gmra.mrb[36].mxu0 %v3009_v57  ;;  %2842 = vmatmul.mubr.msk.bf16.gmra.mrb[36].mxu1 %vm776_vm0, %v3010_v58 }
  0x8a   :  { %985 = vmatprep.mubr.bf16.mxu0 %v3011_v59  ;;  %2845 = vmatprep.mubr.msk.bf16.mxu1 %vm776_vm0, %v3013_v60 }
  0x91   :  { %986 = vmatmul.mubr.bf16.gmra.mrb[40].mxu0 %v3014_v61  ;;  %2846 = vmatmul.mubr.msk.bf16.gmra.mrb[40].mxu1 %vm776_vm0, %v3015_v62 }
  0x92   :  { %993 = vmatprep.mubr.bf16.mxu0 %v3016_v63  ;;  %2849 = vmatprep.mubr.msk.bf16.mxu1 %vm776_vm0, %v3018_v0 }
  0x99   :  { %994 = vmatmul.mubr.bf16.gmra.mrb[44].mxu0 %v3019_v1  ;;  %2850 = vmatmul.mubr.msk.bf16.gmra.mrb[44].mxu1 %vm776_vm0, %v3020_v2 }
  0x9a   :  { %1001 = vmatprep.mubr.bf16.mxu0 %v3021_v3  ;;  %2853 = vmatprep.mubr.msk.bf16.mxu1 %vm776_vm0, %v3023_v4 }
  0xa1   :  { %1002 = vmatmul.mubr.bf16.gmra.mrb[48].mxu0 %v3024_v5  ;;  %2854 = vmatmul.mubr.msk.bf16.gmra.mrb[48].mxu1 %vm776_vm0, %v3025_v6 }
  0xa2   :  { %1009 = vmatprep.mubr.bf16.mxu0 %v3026_v7  ;;  %2857 = vmatprep.mubr.msk.bf16.mxu1 %vm776_vm0, %v3028_v8 }
  0xa9   :  { %1010 = vmatmul.mubr.bf16.gmra.mrb[52].mxu0 %v3029_v9  ;;  %2858 = vmatmul.mubr.msk.bf16.gmra.mrb[52].mxu1 %vm776_vm0, %v3030_v10 }
  0xaa   :  { %1017 = vmatprep.mubr.bf16.mxu0 %v3031_v11  ;;  %2861 = vmatprep.mubr.msk.bf16.mxu1 %vm776_vm0, %v3033_v12 }
  0xb1   :  { %1018 = vmatmul.mubr.bf16.gmra.mrb[56].mxu0 %v3034_v13  ;;  %2862 = vmatmul.mubr.msk.bf16.gmra.mrb[56].mxu1 %vm776_vm0, %v3035_v14 }
  0xb2   :  { %1025 = vmatprep.mubr.bf16.mxu0 %v3036_v15  ;;  %2865 = vmatprep.mubr.msk.bf16.mxu1 %vm776_vm0, %v3038_v16 }
  0xb9   :  { %1026 = vmatmul.mubr.bf16.gmra.mrb[60].mxu0 %v3039_v17  ;;  %2866 = vmatmul.mubr.msk.bf16.gmra.mrb[60].mxu1 %vm776_vm0, %v3040_v18 }
  0xba   :  { %1033 = vmatprep.mubr.bf16.mxu0 %v3041_v19  ;;  %2869 = vmatprep.mubr.msk.bf16.mxu1 %vm776_vm0, %v3043_v20 }
  0xc1   :  { %1034 = vmatmul.mubr.bf16.gmra.mrb[64].mxu0 %v3044_v21  ;;  %2870 = vmatmul.mubr.msk.bf16.gmra.mrb[64].mxu1 %vm776_vm0, %v3045_v22 }
  0xc2   :  { %1041 = vmatprep.mubr.bf16.mxu0 %v3046_v23  ;;  %2873 = vmatprep.mubr.msk.bf16.mxu1 %vm776_vm0, %v3048_v24 }
  0xc9   :  { %1042 = vmatmul.mubr.bf16.gmra.mrb[68].mxu0 %v3049_v25  ;;  %2874 = vmatmul.mubr.msk.bf16.gmra.mrb[68].mxu1 %vm776_vm0, %v3050_v26 }
  0xca   :  { %1049 = vmatprep.mubr.bf16.mxu0 %v3051_v27  ;;  %2877 = vmatprep.mubr.msk.bf16.mxu1 %vm776_vm0, %v3053_v28 }
  0xd1   :  { %1050 = vmatmul.mubr.bf16.gmra.mrb[72].mxu0 %v3054_v29  ;;  %2878 = vmatmul.mubr.msk.bf16.gmra.mrb[72].mxu1 %vm776_vm0, %v3055_v30 }
  0xd2   :  { %1057 = vmatprep.mubr.bf16.mxu0 %v3056_v31  ;;  %2881 = vmatprep.mubr.msk.bf16.mxu1 %vm776_vm0, %v3058_v32 }
  0xd9   :  { %1058 = vmatmul.mubr.bf16.gmra.mrb[76].mxu0 %v3059_v33  ;;  %2882 = vmatmul.mubr.msk.bf16.gmra.mrb[76].mxu1 %vm776_vm0, %v3060_v34 }
  0xda   :  { %1065 = vmatprep.mubr.bf16.mxu0 %v3061_v35  ;;  %2885 = vmatprep.mubr.msk.bf16.mxu1 %vm776_vm0, %v3063_v36 }
  0xe1   :  { %1066 = vmatmul.mubr.bf16.gmra.mrb[80].mxu0 %v3064_v37  ;;  %2886 = vmatmul.mubr.msk.bf16.gmra.mrb[80].mxu1 %vm776_vm0, %v3065_v38 }
  0xe2   :  { %1073 = vmatprep.mubr.bf16.mxu0 %v3066_v39  ;;  %2889 = vmatprep.mubr.msk.bf16.mxu1 %vm776_vm0, %v3068_v40 }
  0xe9   :  { %1074 = vmatmul.mubr.bf16.gmra.mrb[84].mxu0 %v3069_v41  ;;  %2890 = vmatmul.mubr.msk.bf16.gmra.mrb[84].mxu1 %vm776_vm0, %v3070_v42 }
  0xea   :  { %1081 = vmatprep.mubr.bf16.mxu0 %v3071_v43  ;;  %2893 = vmatprep.mubr.msk.bf16.mxu1 %vm776_vm0, %v3073_v44 }
  0xf1   :  { %1082 = vmatmul.mubr.bf16.gmra.mrb[88].mxu0 %v3074_v45  ;;  %2894 = vmatmul.mubr.msk.bf16.gmra.mrb[88].mxu1 %vm776_vm0, %v3075_v46 }
  0xf2   :  { %1089 = vmatprep.mubr.bf16.mxu0 %v3076_v47  ;;  %2897 = vmatprep.mubr.msk.bf16.mxu1 %vm776_vm0, %v3078_v48 }
  0xf9   :  { %1090 = vmatmul.mubr.bf16.gmra.mrb[92].mxu0 %v3079_v49  ;;  %2898 = vmatmul.mubr.msk.bf16.gmra.mrb[92].mxu1 %vm776_vm0, %v3080_v50 }
 0x114   :  { %v3516_v51 = vpop.f32.mrb[0].mxu0  ;;  %v3518_v52 = vpop.f32.mrb[0].mxu1 }
 0x115   :  { %v909_v53 = vpop.f32.mrb[1].mxu0  ;;  %v1101_v54 = vpop.f32.mrb[1].mxu1 }
 0x116   :  { %v3520_v55 = vpop.f32.mrb[2].mxu0  ;;  %v3522_v56 = vpop.f32.mrb[2].mxu1 }
 0x117   :  { %v912_v57 = vpop.f32.mrb[3].mxu0  ;;  %v1104_v58 = vpop.f32.mrb[3].mxu1 }
 0x11c   :  { %v915_v59 = vpop.f32.mrb[4].mxu0  ;;  %v3524_v60 = vpop.f32.mrb[4].mxu1 }
 0x11d   :  { %v917_v61 = vpop.f32.mrb[5].mxu0  ;;  %v1109_v62 = vpop.f32.mrb[5].mxu1 }
 0x11e   :  { %v918_v63 = vpop.f32.mrb[6].mxu0  ;;  %v3526_v0 = vpop.f32.mrb[6].mxu1 }
 0x11f   :  { %v920_v1 = vpop.f32.mrb[7].mxu0  ;;  %v1112_v2 = vpop.f32.mrb[7].mxu1 }
 0x124   :  { %v3528_v3 = vpop.f32.mrb[8].mxu0  ;;  %v3530_v4 = vpop.f32.mrb[8].mxu1 }
 0x125   :  { %v925_v5 = vpop.f32.mrb[9].mxu0  ;;  %v1117_v6 = vpop.f32.mrb[9].mxu1 }
 0x126   :  { %v3532_v7 = vpop.f32.mrb[10].mxu0  ;;  %v3534_v8 = vpop.f32.mrb[10].mxu1 }
 0x127   :  { %v928_v9 = vpop.f32.mrb[11].mxu0  ;;  %v1120_v10 = vpop.f32.mrb[11].mxu1 }
 0x12c   :  { %v931_v11 = vpop.f32.mrb[12].mxu0  ;;  %v3536_v12 = vpop.f32.mrb[12].mxu1 }
 0x12d   :  { %v933_v13 = vpop.f32.mrb[13].mxu0  ;;  %v1125_v14 = vpop.f32.mrb[13].mxu1 }
 0x12e   :  { %v3538_v15 = vpop.f32.mrb[14].mxu0  ;;  %v3540_v16 = vpop.f32.mrb[14].mxu1 }
 0x12f   :  { %v936_v17 = vpop.f32.mrb[15].mxu0  ;;  %v1128_v18 = vpop.f32.mrb[15].mxu1 }
 0x134   :  { %v3542_v19 = vpop.f32.mrb[16].mxu0  ;;  %v3544_v20 = vpop.f32.mrb[16].mxu1 }
 0x135   :  { %v941_v21 = vpop.f32.mrb[17].mxu0  ;;  %v1133_v22 = vpop.f32.mrb[17].mxu1 }
 0x136   :  { %v3546_v23 = vpop.f32.mrb[18].mxu0  ;;  %v3548_v24 = vpop.f32.mrb[18].mxu1 }
 0x137   :  { %v944_v25 = vpop.f32.mrb[19].mxu0  ;;  %v1136_v26 = vpop.f32.mrb[19].mxu1 }
 0x13c   :  { %v3550_v27 = vpop.f32.mrb[20].mxu0  ;;  %v3552_v28 = vpop.f32.mrb[20].mxu1 }
 0x13d   :  { %v949_v29 = vpop.f32.mrb[21].mxu0  ;;  %v1141_v30 = vpop.f32.mrb[21].mxu1 }
 0x13e   :  { %v3554_v31 = vpop.f32.mrb[22].mxu0  ;;  %v3556_v32 = vpop.f32.mrb[22].mxu1 }
 0x13f   :  { %v952_v33 = vpop.f32.mrb[23].mxu0  ;;  %v1144_v34 = vpop.f32.mrb[23].mxu1 }
 0x144   :  { %v3558_v35 = vpop.f32.mrb[24].mxu0  ;;  %v3560_v36 = vpop.f32.mrb[24].mxu1 }
 0x145   :  { %v957_v37 = vpop.f32.mrb[25].mxu0  ;;  %v1149_v38 = vpop.f32.mrb[25].mxu1 }
 0x146   :  { %v3562_v39 = vpop.f32.mrb[26].mxu0  ;;  %v3564_v40 = vpop.f32.mrb[26].mxu1 }
 0x147   :  { %v960_v41 = vpop.f32.mrb[27].mxu0  ;;  %v1152_v42 = vpop.f32.mrb[27].mxu1 }
 0x14c   :  { %v3566_v43 = vpop.f32.mrb[28].mxu0  ;;  %v3568_v44 = vpop.f32.mrb[28].mxu1 }
 0x14d   :  { %v965_v45 = vpop.f32.mrb[29].mxu0  ;;  %v1157_v46 = vpop.f32.mrb[29].mxu1 }
 0x14e   :  { %v3570_v47 = vpop.f32.mrb[30].mxu0  ;;  %v3572_v48 = vpop.f32.mrb[30].mxu1 }
 0x14f   :  { %v968_v49 = vpop.f32.mrb[31].mxu0  ;;  %v1160_v50 = vpop.f32.mrb[31].mxu1 }
 0x150   :  { %v3084_v50 = vmov 0.0  }
 0x151   :  { %22 = vst [vmem:[#allocation3] sm:$0x1] %v3084_v50  ;;  %23 = vst [vmem:[#allocation4] sm:$0x1] %v3084_v50 }
 0x154   :  { %v3574_v53 = vpop.f32.mrb[32].mxu0  ;;  %v2839_v54 = vpop.f32.mrb[32].mxu1 }
 0x155   :  { %v3576_v57 = vadd.f32 %v2839_v54, %v915_v59  ;;  %v973_v58 = vpop.f32.mrb[33].mxu0  ;;  %v1196_v61 = vpop.f32.mrb[33].mxu1 }
 0x156   :  { %v3579_v62 = vadd.f32 %v1196_v61, %v3516_v51  ;;  %v3581_v1 = vpop.f32.mrb[34].mxu0  ;;  %v2840_v2 = vpop.f32.mrb[34].mxu1 }
 0x157   :  { %v3583_v5 = vadd.f32 %v2840_v2, %v918_v63  ;;  %v976_v6 = vpop.f32.mrb[35].mxu0  ;;  %v1199_v9 = vpop.f32.mrb[35].mxu1  ;;  %v1592_v14 = vmul.f32 %v3576_v57, %v3576_v57 }
 0x158   :  { %v3586_v10 = vadd.f32 %v1199_v9, %v3520_v55  ;;  %v1590_v13 = vmul.f32 %v3579_v62, %v3579_v62 }
 0x159   :  { %v1593_v26 = vmul.f32 %v3583_v5, %v3583_v5 }
 0x15a   :  { %v1518_v59 = vadd.f32 %v3586_v10, %v3579_v62  ;;  %v1591_v51 = vmul.f32 %v3586_v10, %v3586_v10 }
 0x15c   :  { %v1519_v63 = vadd.f32 %v1518_v59, %v3576_v57  ;;  %v1654_v17 = vadd.f32 %v1591_v51, %v1590_v13  ;;  %v3597_v18 = vpop.f32.mrb[36].mxu0  ;;  %v2843_v21 = vpop.f32.mrb[36].mxu1 }
 0x15d   :  { %v3599_v55 = vadd.f32 %v2843_v21, %v931_v11  ;;  %v981_v22 = vpop.f32.mrb[37].mxu0  ;;  %v1212_v25 = vpop.f32.mrb[37].mxu1 }
 0x15e   :  { %v1520_v29 = vadd.f32 %v1519_v63, %v3583_v5  ;;  %v1655_v30 = vadd.f32 %v1654_v17, %v1592_v14  ;;  %v3605_v33 = vadd.f32 %v1212_v25, %v3528_v3  ;;  %v3607_v34 = vpop.f32.mrb[38].mxu0  ;;  %v2844_v37 = vpop.f32.mrb[38].mxu1 }
 0x15f   :  { %v3610_v38 = vadd.f32 %v2844_v37, %v3538_v15  ;;  %v984_v41 = vpop.f32.mrb[39].mxu0  ;;  %v1215_v11 = vpop.f32.mrb[39].mxu1  ;;  %v1596_v58 = vmul.f32 %v3599_v55, %v3599_v55 }
 0x160   :  { %v1656_v42 = vadd.f32 %v1655_v30, %v1593_v26  ;;  %v1521_v45 = vadd.f32 %v1520_v29, %v3605_v33  ;;  %v1594_v46 = vmul.f32 %v3605_v33, %v3605_v33  ;;  %v3616_v49 = vadd.f32 %v1215_v11, %v3532_v7 }
 0x161   :  { %v1597_v51 = vmul.f32 %v3610_v38, %v3610_v38 }
 0x162   :  { %v1657_v3 = vadd.f32 %v1656_v42, %v1594_v46  ;;  %v1522_v54 = vadd.f32 %v1521_v45, %v3616_v49  ;;  %v1595_v15 = vmul.f32 %v3616_v49, %v3616_v49 }
 0x164   :  { %v1523_v61 = vadd.f32 %v1522_v54, %v3599_v55  ;;  %v1658_v2 = vadd.f32 %v1657_v3, %v1595_v15  ;;  %v3624_v6 = vpop.f32.mrb[40].mxu0  ;;  %v2847_v9 = vpop.f32.mrb[40].mxu1 }
 0x165   :  { %v3627_v7 = vadd.f32 %v2847_v9, %v3550_v27  ;;  %v989_v13 = vpop.f32.mrb[41].mxu0  ;;  %v1228_v59 = vpop.f32.mrb[41].mxu1 }
 0x166   :  { %v1659_v14 = vadd.f32 %v1658_v2, %v1596_v58  ;;  %v3632_v63 = vadd.f32 %v1228_v59, %v3542_v19  ;;  %v1524_v17 = vadd.f32 %v1523_v61, %v3610_v38  ;;  %v3635_v21 = vpop.f32.mrb[42].mxu0  ;;  %v2848_v22 = vpop.f32.mrb[42].mxu1 }
 0x167   :  { %v3638_v25 = vadd.f32 %v2848_v22, %v3554_v31  ;;  %v992_v26 = vpop.f32.mrb[43].mxu0  ;;  %v1231_v27 = vpop.f32.mrb[43].mxu1  ;;  %v1600_v31 = vmul.f32 %v3627_v7, %v3627_v7 }
 0x168   :  { %v1525_v29 = vadd.f32 %v1524_v17, %v3632_v63  ;;  %v1598_v30 = vmul.f32 %v3632_v63, %v3632_v63  ;;  %v1660_v37 = vadd.f32 %v1659_v14, %v1597_v51  ;;  %v3644_v41 = vadd.f32 %v1231_v27, %v3546_v23 }
 0x169   :  { %v1601_v58 = vmul.f32 %v3638_v25, %v3638_v25 }
 0x16a   :  { %v1661_v19 = vadd.f32 %v1660_v37, %v1598_v30  ;;  %v1526_v11 = vadd.f32 %v1525_v29, %v3644_v41  ;;  %v1599_v42 = vmul.f32 %v3644_v41, %v3644_v41 }
 0x16c   :  { %v1527_v45 = vadd.f32 %v1526_v11, %v3627_v7  ;;  %v1662_v46 = vadd.f32 %v1661_v19, %v1599_v42  ;;  %v995_v50 = vpop.f32.mrb[44].mxu0  ;;  %v2851_v3 = vpop.f32.mrb[44].mxu1 }
 0x16d   :  { %v3653_v54 = vadd.f32 %v2851_v3, %v3566_v43  ;;  %v997_v15 = vpop.f32.mrb[45].mxu0  ;;  %v1244_v23 = vpop.f32.mrb[45].mxu1 }
 0x16e   :  { %v1663_v61 = vadd.f32 %v1662_v46, %v1600_v31  ;;  %v3658_v2 = vadd.f32 %v1244_v23, %v3558_v35  ;;  %v1528_v9 = vadd.f32 %v1527_v45, %v3638_v25  ;;  %v998_v13 = vpop.f32.mrb[46].mxu0  ;;  %v2852_v59 = vpop.f32.mrb[46].mxu1 }
 0x16f   :  { %v3662_v51 = vadd.f32 %v2852_v59, %v3570_v47  ;;  %v1000_v14 = vpop.f32.mrb[47].mxu0  ;;  %v1247_v17 = vpop.f32.mrb[47].mxu1  ;;  %v1604_v47 = vmul.f32 %v3653_v54, %v3653_v54 }
 0x170   :  { %v1529_v43 = vadd.f32 %v1528_v9, %v3658_v2  ;;  %v1602_v22 = vmul.f32 %v3658_v2, %v3658_v2  ;;  %v1664_v26 = vadd.f32 %v1663_v61, %v1601_v58  ;;  %v3668_v27 = vadd.f32 %v1247_v17, %v3562_v39 }
 0x171   :  { %v1605_v46 = vmul.f32 %v3662_v51, %v3662_v51 }
 0x172   :  { %v1665_v35 = vadd.f32 %v1664_v26, %v1602_v22  ;;  %v1530_v29 = vadd.f32 %v1529_v43, %v3668_v27  ;;  %v1603_v30 = vmul.f32 %v3668_v27, %v3668_v27 }
 0x174   :  { %v1531_v37 = vadd.f32 %v1530_v29, %v3653_v54  ;;  %v1666_v19 = vadd.f32 %v1665_v35, %v1603_v30  ;;  %v1003_v11 = vpop.f32.mrb[48].mxu0  ;;  %v2855_v42 = vpop.f32.mrb[48].mxu1 }
 0x175   :  { %v3677_v31 = vadd.f32 %v2855_v42, %v3597_v18  ;;  %v1005_v45 = vpop.f32.mrb[49].mxu0  ;;  %v1260_v39 = vpop.f32.mrb[49].mxu1 }
 0x176   :  { %v1667_v3 = vadd.f32 %v1666_v19, %v1604_v47  ;;  %v3682_v15 = vadd.f32 %v1260_v39, %v3574_v53  ;;  %v1532_v23 = vadd.f32 %v1531_v37, %v3662_v51  ;;  %v1006_v58 = vpop.f32.mrb[50].mxu0  ;;  %v2856_v61 = vpop.f32.mrb[50].mxu1 }
 0x177   :  { %v3686_v9 = vadd.f32 %v2856_v61, %v3607_v34  ;;  %v1008_v59 = vpop.f32.mrb[51].mxu0  ;;  %v1263_v14 = vpop.f32.mrb[51].mxu1  ;;  %v1608_v34 = vmul.f32 %v3677_v31, %v3677_v31 }
 0x178   :  { %v1533_v18 = vadd.f32 %v1532_v23, %v3682_v15  ;;  %v1606_v17 = vmul.f32 %v3682_v15, %v3682_v15  ;;  %v1668_v43 = vadd.f32 %v1667_v3, %v1605_v46  ;;  %v3692_v22 = vadd.f32 %v1263_v14, %v3581_v1 }
 0x179   :  { %v1609_v1 = vmul.f32 %v3686_v9, %v3686_v9 }
 0x17a   :  { %v1669_v53 = vadd.f32 %v1668_v43, %v1606_v17  ;;  %v1534_v26 = vadd.f32 %v1533_v18, %v3692_v22  ;;  %v1607_v35 = vmul.f32 %v3692_v22, %v3692_v22 }
 0x17c   :  { %v1535_v29 = vadd.f32 %v1534_v26, %v3677_v31  ;;  %v1670_v30 = vadd.f32 %v1669_v53, %v1607_v35  ;;  %v1011_v47 = vpop.f32.mrb[52].mxu0  ;;  %v2859_v37 = vpop.f32.mrb[52].mxu1 }
 0x17d   :  { %v3700_v19 = vadd.f32 %v2859_v37, %v995_v50  ;;  %v1013_v42 = vpop.f32.mrb[53].mxu0  ;;  %v1276_v45 = vpop.f32.mrb[53].mxu1 }
 0x17e   :  { %v1671_v39 = vadd.f32 %v1670_v30, %v1608_v34  ;;  %v3705_v46 = vadd.f32 %v1276_v45, %v3624_v6  ;;  %v1536_v3 = vadd.f32 %v1535_v29, %v3686_v9  ;;  %v1014_v23 = vpop.f32.mrb[54].mxu0  ;;  %v2860_v61 = vpop.f32.mrb[54].mxu1 }
 0x17f   :  { %4689 = vst [vmem:[#allocation5_spill] sm:$0xff] %v3700_v19  ;;  %v3708_v59 = vadd.f32 %v2860_v61, %v998_v13  ;;  %v1016_v14 = vpop.f32.mrb[55].mxu0  ;;  %v1279_v18 = vpop.f32.mrb[55].mxu1  ;;  %v1612_v13 = vmul.f32 %v3700_v19, %v3700_v19 }
 0x180   :  { %4690 = vst [vmem:[#allocation6_spill] sm:$0xff] %v3705_v46  ;;  %v1537_v50 = vadd.f32 %v1536_v3, %v3705_v46  ;;  %v1610_v17 = vmul.f32 %v3705_v46, %v3705_v46  ;;  %v1672_v43 = vadd.f32 %v1671_v39, %v1609_v1  ;;  %v3714_v53 = vadd.f32 %v1279_v18, %v3635_v21 }
 0x181   :  { %4691 = vst [vmem:[#allocation7_spill] sm:$0xff] %v3708_v59  ;;  %v1613_v21 = vmul.f32 %v3708_v59, %v3708_v59 }
 0x182   :  { %4692 = vst [vmem:[#allocation8_spill] sm:$0xff] %v3714_v53  ;;  %v1673_v26 = vadd.f32 %v1672_v43, %v1610_v17  ;;  %v1538_v6 = vadd.f32 %v1537_v50, %v3714_v53  ;;  %v1611_v35 = vmul.f32 %v3714_v53, %v3714_v53 }
 0x184   :  { %v1539_v34 = vadd.f32 %v1538_v6, %v3700_v19  ;;  %v1674_v29 = vadd.f32 %v1673_v26, %v1611_v35  ;;  %v1019_v30 = vpop.f32.mrb[56].mxu0  ;;  %v2863_v37 = vpop.f32.mrb[56].mxu1 }
 0x185   :  { %v3722_v42 = vadd.f32 %v2863_v37, %v1011_v47  ;;  %v1021_v45 = vpop.f32.mrb[57].mxu0  ;;  %v1292_v1 = vpop.f32.mrb[57].mxu1 }
 0x186   :  { %v1675_v39 = vadd.f32 %v1674_v29, %v1612_v13  ;;  %v3726_v3 = vadd.f32 %v1292_v1, %v1003_v11  ;;  %v1540_v61 = vadd.f32 %v1539_v34, %v3708_v59  ;;  %v1022_v14 = vpop.f32.mrb[58].mxu0  ;;  %v2864_v18 = vpop.f32.mrb[58].mxu1 }
 0x187   :  { %4693 = vst [vmem:[#allocation9_spill] sm:$0xff] %v3722_v42  ;;  %v3729_v50 = vadd.f32 %v2864_v18, %v1014_v23  ;;  %v1024_v17 = vpop.f32.mrb[59].mxu0  ;;  %v1295_v43 = vpop.f32.mrb[59].mxu1  ;;  %v1616_v45 = vmul.f32 %v3722_v42, %v3722_v42 }
 0x188   :  { %4694 = vst [vmem:[#allocation10_spill] sm:$0xff] %v3726_v3  ;;  %v1541_v26 = vadd.f32 %v1540_v61, %v3726_v3  ;;  %v1614_v47 = vmul.f32 %v3726_v3, %v3726_v3  ;;  %v1676_v6 = vadd.f32 %v1675_v39, %v1613_v21  ;;  %v3734_v35 = vadd.f32 %v1295_v43, %v1006_v58 }
 0x189   :  { %4695 = vst [vmem:[#allocation11_spill] sm:$0xff] %v3729_v50 }
 0x18a   :  { %4696 = vst [vmem:[#allocation12_spill] sm:$0xff] %v3734_v35  ;;  %v1677_v37 = vadd.f32 %v1676_v6, %v1614_v47  ;;  %v1542_v11 = vadd.f32 %v1541_v26, %v3734_v35  ;;  %v1615_v13 = vmul.f32 %v3734_v35, %v3734_v35 }
 0x18c   :  { %v1678_v34 = vadd.f32 %v1677_v37, %v1615_v13  ;;  %v1027_v29 = vpop.f32.mrb[60].mxu0  ;;  %v2867_v23 = vpop.f32.mrb[60].mxu1  ;;  %v1543_v1 = vadd.f32 %v1542_v11, %v3722_v42  ;;  %v1617_v13 = vmul.f32 %v3729_v50, %v3729_v50 }
 0x18d   :  { %v3742_v61 = vadd.f32 %v2867_v23, %v1027_v29  ;;  %v1029_v18 = vpop.f32.mrb[61].mxu0  ;;  %v1308_v21 = vpop.f32.mrb[61].mxu1 }
 0x18e   :  { %v3744_v58 = vadd.f32 %v1308_v21, %v1019_v30  ;;  %v1030_v39 = vpop.f32.mrb[62].mxu0  ;;  %v2868_v17 = vpop.f32.mrb[62].mxu1  ;;  %v1679_v43 = vadd.f32 %v1678_v34, %v1616_v45  ;;  %v1544_v11 = vadd.f32 %v1543_v1, %v3729_v50 }
 0x18f   :  { %4697 = vst [vmem:[#allocation13_spill] sm:$0xff] %v3742_v61  ;;  %v3746_v26 = vadd.f32 %v2868_v17, %v1030_v39  ;;  %v1032_v47 = vpop.f32.mrb[63].mxu0  ;;  %v1311_v6 = vpop.f32.mrb[63].mxu1 }
 0x190   :  { %4698 = vst [vmem:[#allocation14_spill] sm:$0xff] %v3744_v58  ;;  %v3748_v37 = vadd.f32 %v1311_v6, %v1022_v14  ;;  %v1618_v29 = vmul.f32 %v3744_v58, %v3744_v58  ;;  %v1680_v23 = vadd.f32 %v1679_v43, %v1617_v13  ;;  %v1545_v21 = vadd.f32 %v1544_v11, %v3744_v58 }
 0x191   :  { %4699 = vst [vmem:[#allocation15_spill] sm:$0xff] %v3746_v26  ;;  %v1620_v11 = vmul.f32 %v3742_v61, %v3742_v61 }
 0x192   :  { %4700 = vst [vmem:[#allocation16_spill] sm:$0xff] %v3748_v37  ;;  %v1681_v47 = vadd.f32 %v1680_v23, %v1618_v29  ;;  %v1619_v6 = vmul.f32 %v3748_v37, %v3748_v37  ;;  %v1546_v43 = vadd.f32 %v1545_v21, %v3748_v37  ;;  %v1621_v21 = vmul.f32 %v3746_v26, %v3746_v26 }
 0x194   :  { %v1035_v30 = vpop.f32.mrb[64].mxu0  ;;  %v2871_v18 = vpop.f32.mrb[64].mxu1  ;;  %v1682_v13 = vadd.f32 %v1681_v47, %v1619_v6 }
 0x195   :  { %v1037_v34 = vpop.f32.mrb[65].mxu0  ;;  %v1324_v45 = vpop.f32.mrb[65].mxu1 }
 0x196   :  { %v3756_v39 = vadd.f32 %v1324_v45, %v1035_v30  ;;  %v1038_v17 = vpop.f32.mrb[66].mxu0  ;;  %v2872_v14 = vpop.f32.mrb[66].mxu1  ;;  %v1547_v30 = vadd.f32 %v1546_v43, %v3742_v61 }
 0x197   :  { %v1040_v42 = vpop.f32.mrb[67].mxu0  ;;  %v1327_v1 = vpop.f32.mrb[67].mxu1 }
 0x198   :  { %4701 = vst [vmem:[#allocation17_spill] sm:$0xff] %v3756_v39  ;;  %v3760_v50 = vadd.f32 %v1327_v1, %v1038_v17  ;;  %v1683_v42 = vadd.f32 %v1682_v13, %v1620_v11  ;;  %v1548_v47 = vadd.f32 %v1547_v30, %v3746_v26  ;;  %v1622_v6 = vmul.f32 %v3756_v39, %v3756_v39 }
 0x19a   :  { %4702 = vst [vmem:[#allocation18_spill] sm:$0xff] %v3760_v50  ;;  %v1684_v43 = vadd.f32 %v1683_v42, %v1621_v21  ;;  %v1623_v37 = vmul.f32 %v3760_v50, %v3760_v50 }
 0x19c   :  { %v1043_v35 = vpop.f32.mrb[68].mxu0  ;;  %v2875_v3 = vpop.f32.mrb[68].mxu1 }
 0x19d   :  { %v3766_v34 = vadd.f32 %v2871_v18, %v1043_v35  ;;  %v1045_v29 = vpop.f32.mrb[69].mxu0  ;;  %v1340_v23 = vpop.f32.mrb[69].mxu1 }
 0x19e   :  { %v1046_v45 = vpop.f32.mrb[70].mxu0  ;;  %v2876_v58 = vpop.f32.mrb[70].mxu1  ;;  %v1549_v29 = vadd.f32 %v1548_v47, %v3756_v39 }
 0x19f   :  { %4703 = vst [vmem:[#allocation19_spill] sm:$0xff] %v3766_v34  ;;  %v3768_v59 = vadd.f32 %v2872_v14, %v1046_v45  ;;  %v1048_v17 = vpop.f32.mrb[71].mxu0  ;;  %v1343_v1 = vpop.f32.mrb[71].mxu1  ;;  %v1624_v21 = vmul.f32 %v3766_v34, %v3766_v34 }
 0x1a0   :  { %v1685_v17 = vadd.f32 %v1684_v43, %v1622_v6  ;;  %v1550_v42 = vadd.f32 %v1549_v29, %v3760_v50 }
 0x1a1   :  { %4704 = vst [vmem:[#allocation20_spill] sm:$0xff] %v3768_v59  ;;  %v1625_v6 = vmul.f32 %v3768_v59, %v3768_v59 }
 0x1a2   :  { %v1551_v47 = vadd.f32 %v1550_v42, %v3766_v34 }
 0x1a4   :  { %v1051_v35 = vpop.f32.mrb[72].mxu0  ;;  %v2879_v18 = vpop.f32.mrb[72].mxu1  ;;  %v1552_v29 = vadd.f32 %v1551_v47, %v3768_v59 }
 0x1a5   :  { %v3776_v61 = vadd.f32 %v1340_v23, %v1051_v35  ;;  %v1053_v13 = vpop.f32.mrb[73].mxu0  ;;  %v1356_v14 = vpop.f32.mrb[73].mxu1  ;;  %v1686_v23 = vadd.f32 %v1685_v17, %v1623_v37 }
 0x1a6   :  { %v1054_v11 = vpop.f32.mrb[74].mxu0  ;;  %v3778_v45 = vpop.f32.mrb[74].mxu1 }
 0x1a7   :  { %4705 = vst [vmem:[#allocation21_spill] sm:$0xff] %v3776_v61  ;;  %v3782_v30 = vadd.f32 %v1343_v1, %v1054_v11  ;;  %v1056_v26 = vpop.f32.mrb[75].mxu0  ;;  %v1359_v19 = vpop.f32.mrb[75].mxu1  ;;  %v1687_v39 = vadd.f32 %v1686_v23, %v1624_v21  ;;  %v1626_v37 = vmul.f32 %v3776_v61, %v3776_v61  ;;  %v1553_v23 = vadd.f32 %v1552_v29, %v3776_v61 }
 0x1a9   :  { %4706 = vst [vmem:[#allocation22_spill] sm:$0xff] %v3782_v30  ;;  %v1688_v21 = vadd.f32 %v1687_v39, %v1625_v6  ;;  %v1554_v46 = vadd.f32 %v1553_v23, %v3782_v30 }
 0x1ab   :  { %v1689_v50 = vadd.f32 %v1688_v21, %v1626_v37 }
 0x1ac   :  { %v1059_v35 = vpop.f32.mrb[76].mxu0  ;;  %v3788_v13 = vpop.f32.mrb[76].mxu1 }
 0x1ad   :  { %v3792_v43 = vadd.f32 %v2875_v3, %v1059_v35  ;;  %v1061_v1 = vpop.f32.mrb[77].mxu0  ;;  %v1372_v26 = vpop.f32.mrb[77].mxu1  ;;  %v1627_v3 = vmul.f32 %v3782_v30, %v3782_v30 }
 0x1ae   :  { %v1062_v11 = vpop.f32.mrb[78].mxu0  ;;  %v3794_v53 = vpop.f32.mrb[78].mxu1 }
 0x1af   :  { %v3799_v17 = vadd.f32 %v2876_v58, %v1062_v11  ;;  %v1064_v42 = vpop.f32.mrb[79].mxu0  ;;  %v1375_v34 = vpop.f32.mrb[79].mxu1  ;;  %v1628_v47 = vmul.f32 %v3792_v43, %v3792_v43  ;;  %v1555_v21 = vadd.f32 %v1554_v46, %v3792_v43 }
 0x1b0   :  { %v1690_v42 = vadd.f32 %v1689_v50, %v1627_v3 }
 0x1b4   :  { %v1067_v35 = vpop.f32.mrb[80].mxu0  ;;  %v2887_v1 = vpop.f32.mrb[80].mxu1 }
 0x1b5   :  { %v3807_v59 = vadd.f32 %v1356_v14, %v1067_v35  ;;  %v3810_v58 = vadd.f32 %v2887_v1, %v3524_v60  ;;  %v1069_v11 = vpop.f32.mrb[81].mxu0  ;;  %v1388_v39 = vpop.f32.mrb[81].mxu1  ;;  %v1691_v35 = vadd.f32 %v1690_v42, %v1628_v47  ;;  %v1556_v1 = vadd.f32 %v1555_v21, %v3799_v17 }
 0x1b6   :  { %v3813_v6 = vadd.f32 %v1388_v39, %v3518_v52  ;;  %v1070_v29 = vpop.f32.mrb[82].mxu0  ;;  %v2888_v37 = vpop.f32.mrb[82].mxu1  ;;  %v1629_v52 = vmul.f32 %v3799_v17, %v3799_v17 }
 0x1b7   :  { %v3816_v61 = vadd.f32 %v1359_v19, %v1070_v29  ;;  %v1072_v23 = vpop.f32.mrb[83].mxu0  ;;  %v1391_v30 = vpop.f32.mrb[83].mxu1  ;;  %v3819_v14 = vadd.f32 %v2888_v37, %v3526_v0  ;;  %v1630_v50 = vmul.f32 %v3807_v59, %v3807_v59  ;;  %v1557_v11 = vadd.f32 %v1556_v1, %v3807_v59 }
 0x1b8   :  { %v3822_v60 = vadd.f32 %v1391_v30, %v3522_v56  ;;  %v1692_v3 = vadd.f32 %v1691_v35, %v1629_v52 }
 0x1b9   :  { %v1631_v21 = vmul.f32 %v3816_v61, %v3816_v61 }
 0x1ba   :  { %v1693_v42 = vadd.f32 %v1692_v3, %v1630_v50 }
 0x1bc   :  { %v1075_v46 = vpop.f32.mrb[84].mxu0  ;;  %v2891_v19 = vpop.f32.mrb[84].mxu1  ;;  %v1694_v50 = vadd.f32 %v1693_v42, %v1631_v21 }
 0x1bd   :  { %v3830_v39 = vadd.f32 %v2879_v18, %v1075_v46  ;;  %v3833_v0 = vadd.f32 %v2891_v19, %v3536_v12  ;;  %v1077_v56 = vpop.f32.mrb[85].mxu0  ;;  %v1404_v30 = vpop.f32.mrb[85].mxu1 }
 0x1be   :  { %v3836_v47 = vadd.f32 %v1404_v30, %v3530_v4  ;;  %v1078_v29 = vpop.f32.mrb[86].mxu0  ;;  %v2892_v37 = vpop.f32.mrb[86].mxu1  ;;  %v1558_v4 = vadd.f32 %v1557_v11, %v3816_v61 }
 0x1bf   :  { %v3841_v23 = vadd.f32 %v3778_v45, %v1078_v29  ;;  %v1080_v35 = vpop.f32.mrb[87].mxu0  ;;  %v1407_v18 = vpop.f32.mrb[87].mxu1  ;;  %v3844_v52 = vadd.f32 %v2892_v37, %v3540_v16  ;;  %v1632_v1 = vmul.f32 %v3830_v39, %v3830_v39 }
 0x1c0   :  { %v3847_v12 = vadd.f32 %v1407_v18, %v3534_v8  ;;  %v1559_v46 = vadd.f32 %v1558_v4, %v3830_v39 }
 0x1c1   :  { %v1695_v45 = vadd.f32 %v1694_v50, %v1632_v1  ;;  %v1633_v56 = vmul.f32 %v3841_v23, %v3841_v23 }
 0x1c2   :  { %v1560_v21 = vadd.f32 %v1559_v46, %v3841_v23 }
 0x1c3   :  { %v1696_v50 = vadd.f32 %v1695_v45, %v1633_v56 }
 0x1c4   :  { %v1083_v19 = vpop.f32.mrb[88].mxu0  ;;  %v2895_v3 = vpop.f32.mrb[88].mxu1 }
 0x1c5   :  { %v3855_v30 = vadd.f32 %v1372_v26, %v1083_v19  ;;  %v3858_v16 = vadd.f32 %v2895_v3, %v3552_v28  ;;  %v1085_v8 = vpop.f32.mrb[89].mxu0  ;;  %v1420_v29 = vpop.f32.mrb[89].mxu1 }
 0x1c6   :  { %v3861_v11 = vadd.f32 %v1420_v29, %v3544_v20  ;;  %v1086_v37 = vpop.f32.mrb[90].mxu0  ;;  %v2896_v42 = vpop.f32.mrb[90].mxu1 }
 0x1c7   :  { %4707 = vst [vmem:[#allocation23_spill] sm:$0xff] %v3858_v16  ;;  %v1634_v35 = vmul.f32 %v3855_v30, %v3855_v30  ;;  %v3866_v18 = vadd.f32 %v1375_v34, %v1086_v37  ;;  %v1088_v4 = vpop.f32.mrb[91].mxu0  ;;  %v1423_v26 = vpop.f32.mrb[91].mxu1  ;;  %v3869_v1 = vadd.f32 %v2896_v42, %v3556_v32  ;;  %v1561_v20 = vadd.f32 %v1560_v21, %v3855_v30 }
 0x1c8   :  { %v3872_v28 = vadd.f32 %v1423_v26, %v3548_v24 }
 0x1c9   :  { %4708 = vst [vmem:[#allocation24_spill] sm:$0xff] %v3869_v1  ;;  %v1697_v19 = vadd.f32 %v1696_v50, %v1634_v35  ;;  %v1635_v46 = vmul.f32 %v3866_v18, %v3866_v18  ;;  %v1562_v34 = vadd.f32 %v1561_v20, %v3866_v18 }
 0x1cb   :  { %v1698_v21 = vadd.f32 %v1697_v19, %v1635_v46  ;;  %v1638_v46 = vmul.f32 %v3813_v6, %v3813_v6 }
 0x1cc   :  { %v1091_v3 = vpop.f32.mrb[92].mxu0  ;;  %v2899_v8 = vpop.f32.mrb[92].mxu1 }
 0x1cd   :  { %v3879_v29 = vadd.f32 %v3788_v13, %v1091_v3  ;;  %v3882_v32 = vadd.f32 %v2899_v8, %v3568_v44  ;;  %v1093_v37 = vpop.f32.mrb[93].mxu0  ;;  %v1436_v24 = vpop.f32.mrb[93].mxu1 }
 0x1ce   :  { %v3885_v45 = vadd.f32 %v1436_v24, %v3560_v36  ;;  %v1094_v56 = vpop.f32.mrb[94].mxu0  ;;  %v2900_v42 = vpop.f32.mrb[94].mxu1 }
 0x1cf   :  { %4709 = vst [vmem:[#allocation25_spill] sm:$0xff] %v3882_v32  ;;  %v1563_v35 = vadd.f32 %v1562_v34, %v3879_v29  ;;  %v1636_v4 = vmul.f32 %v3879_v29, %v3879_v29  ;;  %v3891_v26 = vadd.f32 %v3794_v53, %v1094_v56  ;;  %v1096_v13 = vpop.f32.mrb[95].mxu0  ;;  %v1439_v50 = vpop.f32.mrb[95].mxu1  ;;  %v3894_v44 = vadd.f32 %v2900_v42, %v3572_v48 }
 0x1d0   :  { %4710 = vst [vmem:[#allocation26_spill] sm:$0xff] %v3885_v45  ;;  %v3897_v20 = vadd.f32 %v1439_v50, %v3564_v40  ;;  %v1639_v34 = vmul.f32 %v3822_v60, %v3822_v60  ;;  %v1640_v40 = vmul.f32 %v3810_v58, %v3810_v58  ;;  %v1641_v42 = vmul.f32 %v3819_v14, %v3819_v14 }
 0x1d1   :  { %v1699_v36 = vadd.f32 %v1698_v21, %v1636_v4  ;;  %v1564_v3 = vadd.f32 %v1563_v35, %v3891_v26  ;;  %v1637_v19 = vmul.f32 %v3891_v26, %v3891_v26  ;;  %v1642_v4 = vmul.f32 %v3836_v47, %v3836_v47 }
 0x1d2   :  { %4711 = vst [vmem:[#allocation27_spill] sm:$0xff] %v3897_v20 }
 0x1d3   :  { %v1565_v53 = vadd.f32 %v1564_v3, %v3813_v6  ;;  %v1700_v8 = vadd.f32 %v1699_v36, %v1637_v19  ;;  %v1643_v36 = vmul.f32 %v3847_v12, %v3847_v12 }
 0x1d5   :  { %v1566_v48 = vadd.f32 %v1565_v53, %v3822_v60  ;;  %v1701_v37 = vadd.f32 %v1700_v8, %v1638_v46  ;;  %v1644_v46 = vmul.f32 %v3833_v0, %v3833_v0 }
 0x1d7   :  { %v1567_v24 = vadd.f32 %v1566_v48, %v3810_v58  ;;  %v1702_v56 = vadd.f32 %v1701_v37, %v1639_v34  ;;  %v1645_v34 = vmul.f32 %v3844_v52, %v3844_v52 }
 0x1d9   :  { %v1568_v21 = vadd.f32 %v1567_v24, %v3819_v14  ;;  %v1703_v35 = vadd.f32 %v1702_v56, %v1640_v40  ;;  %v1646_v40 = vmul.f32 %v3861_v11, %v3861_v11 }
 0x1db   :  { %v1569_v13 = vadd.f32 %v1568_v21, %v3836_v47  ;;  %v1704_v50 = vadd.f32 %v1703_v35, %v1641_v42  ;;  %v1647_v42 = vmul.f32 %v3872_v28, %v3872_v28 }
 0x1dd   :  { %v1570_v3 = vadd.f32 %v1569_v13, %v3847_v12  ;;  %v1705_v19 = vadd.f32 %v1704_v50, %v1642_v4  ;;  %v1648_v4 = vmul.f32 %v3858_v16, %v3858_v16 }
 0x1df   :  { %v1706_v53 = vadd.f32 %v1705_v19, %v1643_v36  ;;  %v1571_v8 = vadd.f32 %v1570_v3, %v3833_v0  ;;  %v1649_v36 = vmul.f32 %v3869_v1, %v3869_v1 }
 0x1e1   :  { %v1572_v48 = vadd.f32 %v1571_v8, %v3844_v52  ;;  %v1707_v37 = vadd.f32 %v1706_v53, %v1644_v46  ;;  %v1650_v46 = vmul.f32 %v3885_v45, %v3885_v45 }
 0x1e3   :  { %v1573_v24 = vadd.f32 %v1572_v48, %v3861_v11  ;;  %v1708_v56 = vadd.f32 %v1707_v37, %v1645_v34  ;;  %v1651_v48 = vmul.f32 %v3897_v20, %v3897_v20 }
 0x1e5   :  { %v1574_v21 = vadd.f32 %v1573_v24, %v3872_v28  ;;  %v1709_v35 = vadd.f32 %v1708_v56, %v1646_v40  ;;  %v1652_v40 = vmul.f32 %v3882_v32, %v3882_v32 }
 0x1e7   :  { %v1575_v13 = vadd.f32 %v1574_v21, %v3858_v16  ;;  %v1710_v50 = vadd.f32 %v1709_v35, %v1647_v42  ;;  %v1653_v42 = vmul.f32 %v3894_v44, %v3894_v44 }
 0x1e9   :  { %v1576_v3 = vadd.f32 %v1575_v13, %v3869_v1  ;;  %v1711_v19 = vadd.f32 %v1710_v50, %v1648_v4 }
 0x1eb   :  { %v1577_v53 = vadd.f32 %v1576_v3, %v3885_v45  ;;  %v1712_v8 = vadd.f32 %v1711_v19, %v1649_v36  ;;  %v1517_v45 = vld [vmem:[#allocation3] sm:$0x1] }
 0x1ed   :  { %v1578_v34 = vadd.f32 %v1577_v53, %v3897_v20  ;;  %v1713_v37 = vadd.f32 %v1712_v8, %v1650_v46 }
 0x1ef   :  { %v1579_v24 = vadd.f32 %v1578_v34, %v3882_v32  ;;  %v1714_v56 = vadd.f32 %v1713_v37, %v1651_v48  ;;  %v1589_v48 = vld [vmem:[#allocation4] sm:$0x1] }
 0x1f1   :  { %v1580_v21 = vadd.f32 %v1579_v24, %v3894_v44  ;;  %v1715_v35 = vadd.f32 %v1714_v56, %v1652_v40 }
 0x1f3   :  { %v1581_v4 = vrot.slane %v1580_v21, 4  ;;  %v1716_v13 = vadd.f32 %v1715_v35, %v1653_v42 }
 0x1f5   :  { %v1582_v50 = vadd.f32 %v1581_v4, %v1580_v21  ;;  %v1717_v36 = vrot.slane %v1716_v13, 4 }
 0x1f7   :  { %v1583_v3 = vrot.slane %v1582_v50, 2  ;;  %v1718_v19 = vadd.f32 %v1717_v36, %v1716_v13 }
 0x1f9   :  { %v1584_v53 = vadd.f32 %v1583_v3, %v1582_v50  ;;  %v1719_v46 = vrot.slane %v1718_v19, 2  ;;  %v1807_v50 = vlaneseq }
 0x1fb   :  { %v1585_v8 = vrot.slane %v1584_v53, 1  ;;  %v1720_v20 = vadd.f32 %v1719_v46, %v1718_v19  ;;  %v3950_v36 = vshrl.u32 %v1807_v50, 7 }
 0x1fd   :  { %v1586_v1 = vadd.f32 %v1585_v8, %v1584_v53  ;;  %v1721_v34 = vrot.slane %v1720_v20, 1 }
 0x1ff   :  { %v1587_v37 = vadd.f32 %v1586_v1, %v1517_v45  ;;  %v1722_v32 = vadd.f32 %v1721_v34, %v1720_v20  ;;  %v1735_v1 = vld [vmem:[%s4657_s2] sm:$0x1]  ;;  %v4683_v45 = vsub.s32 0, %v3950_v36 }
 0x200   :  { %v3959_v20 = vld [vmem:[%s4658_s3] sm:$0x1] }
 0x201   :  { %1588 = vst [vmem:[#allocation3] sm:$0x1] %v1587_v37  ;;  %v1723_v16 = vadd.f32 %v1722_v32, %v1589_v48 }
 0x203   :  { %1724 = vst [vmem:[#allocation4] sm:$0x1] %v1723_v16 }
 0x208   :  { %v1728_v40 = vld [vmem:[#allocation3] sm:$0x1] }
 0x209   :  { %v1729_v24 = vmul.f32 0.001953125, %v1728_v40  ;;  %v4712_v40 = vld [vmem:[#allocation6_spill] sm:$0xff] }
 0x20a   :  { %v1730_v56 = vld [vmem:[#allocation4] sm:$0x1] }
 0x20b   :  { %v1731_v42 = vmul.f32 0.001953125, %v1730_v56  ;;  %v1732_v21 = vmul.f32 %v1729_v24, %v1729_v24  ;;  %v4714_v56 = vld [vmem:[#allocation5_spill] sm:$0xff] }
 0x20d   :  { %v1733_v35 = vsub.f32 %v1731_v42, %v1732_v21  ;;  %v4715_v42 = vld [vmem:[#allocation7_spill] sm:$0xff]  ;;  %v4716_v21 = vld [vmem:[#allocation10_spill] sm:$0xff] }
 0x20f   :  { %v1734_v4 = vmax.f32 %v1733_v35, 0.0  ;;  %v4717_v35 = vld [vmem:[#allocation12_spill] sm:$0xff] }
 0x211   :  { %v1736_v13 = vadd.f32 1e-05, %v1734_v4 }
 0x213   :  { %3081 = vrsqrt.f32 %v1736_v13  ;;  %v4718_v13 = vld [vmem:[#allocation9_spill] sm:$0xff] }
 0x21d   :  { %v3082_v32 = vpop.eup %3081 }
 0x21e   :  { %v1738_v16 = vmul.f32 %v3082_v32, %v1735_v1  ;;  %v4719_v1 = vld [vmem:[#allocation11_spill] sm:$0xff] }
 0x220   :  { %v3961_v3 = vmul.f32 %v1738_v16, %v1729_v24  ;;  %v3965_v19 = vrot.slane %v1738_v16, %v4683_v45  ;;  %v4713_v24 = vld [vmem:[#allocation8_spill] sm:$0xff]  ;;  %v4720_v16 = vld [vmem:[#allocation14_spill] sm:$0xff]  ;;  %v4729_v45 = vld [vmem:[#allocation19_spill] sm:$0xff] }
 0x222   :  { %v1741_v53 = vsub.f32 %v3959_v20, %v3961_v3  ;;  %v3971_v46 = vmul.f32 %v3965_v19, %v3579_v62  ;;  %v3975_v8 = vmul.f32 %v3965_v19, %v3586_v10  ;;  %v3979_v34 = vmul.f32 %v3965_v19, %v3576_v57  ;;  %v4721_v3 = vld [vmem:[#allocation16_spill] sm:$0xff] }
 0x223   :  { %v3983_v48 = vmul.f32 %v3965_v19, %v3583_v5  ;;  %v3987_v37 = vmul.f32 %v3965_v19, %v3605_v33  ;;  %v3991_v62 = vmul.f32 %v3965_v19, %v3616_v49  ;;  %v3995_v10 = vmul.f32 %v3965_v19, %v3599_v55 }
 0x224   :  { %v3999_v57 = vmul.f32 %v3965_v19, %v3610_v38  ;;  %v4003_v5 = vmul.f32 %v3965_v19, %v3632_v63  ;;  %v4007_v33 = vmul.f32 %v3965_v19, %v3644_v41  ;;  %v4011_v49 = vmul.f32 %v3965_v19, %v3627_v7 }
 0x225   :  { %v4015_v55 = vmul.f32 %v3965_v19, %v3638_v25  ;;  %v4019_v38 = vmul.f32 %v3965_v19, %v3658_v2  ;;  %v4023_v63 = vmul.f32 %v3965_v19, %v3668_v27  ;;  %v4027_v41 = vmul.f32 %v3965_v19, %v3653_v54 }
 0x226   :  { %v4031_v7 = vmul.f32 %v3965_v19, %v3662_v51  ;;  %v4035_v25 = vmul.f32 %v3965_v19, %v3682_v15  ;;  %v4039_v2 = vmul.f32 %v3965_v19, %v3692_v22  ;;  %v4043_v27 = vmul.f32 %v3965_v19, %v3677_v31 }
 0x227   :  { %v4047_v54 = vmul.f32 %v3965_v19, %v3686_v9  ;;  %v4051_v51 = vmul.f32 %v3965_v19, %v4712_v40  ;;  %v4055_v15 = vmul.f32 %v3965_v19, %v4713_v24  ;;  %v4059_v22 = vmul.f32 %v3965_v19, %v4714_v56  ;;  %v4723_v24 = vld [vmem:[#allocation13_spill] sm:$0xff] }
 0x228   :  { %v4063_v31 = vmul.f32 %v3965_v19, %v4715_v42  ;;  %v4067_v9 = vmul.f32 %v3965_v19, %v4716_v21  ;;  %v4071_v4 = vmul.f32 %v3965_v19, %v4717_v35  ;;  %v4075_v50 = vmul.f32 %v3965_v19, %v4718_v13  ;;  %v4725_v42 = vld [vmem:[#allocation15_spill] sm:$0xff]  ;;  %v4727_v35 = vld [vmem:[#allocation17_spill] sm:$0xff] }
 0x229   :  { %v4079_v32 = vmul.f32 %v3965_v19, %v4719_v1  ;;  %v4083_v20 = vmul.f32 %v3965_v19, %v4720_v16  ;;  %v4087_v40 = vmul.f32 %v3965_v19, %v4721_v3  ;;  %v4091_v56 = vmul.f32 %v3965_v19, %v4723_v24  ;;  %v4728_v1 = vld [vmem:[#allocation18_spill] sm:$0xff] }
 0x22a   :  { %v4095_v21 = vmul.f32 %v3965_v19, %v4725_v42  ;;  %v4099_v13 = vmul.f32 %v3965_v19, %v4727_v35  ;;  %v4103_v16 = vmul.f32 %v3965_v19, %v4728_v1  ;;  %v4107_v3 = vmul.f32 %v3965_v19, %v4729_v45 }
 0x22b   :  { %4722 = vst [vmem:[#allocation6_spill] sm:$0xff] %v4087_v40  ;;  %4724 = vst [vmem:[#allocation8_spill] sm:$0xff] %v4091_v56  ;;  %v4730_v40 = vld [vmem:[#allocation20_spill] sm:$0xff]  ;;  %v4731_v56 = vld [vmem:[#allocation21_spill] sm:$0xff]  ;;  %v4123_v1 = vmul.f32 %v3965_v19, %v3792_v43  ;;  %v4127_v45 = vmul.f32 %v3965_v19, %v3799_v17  ;;  %v4143_v43 = vmul.f32 %v3965_v19, %v3841_v23 }
 0x22c   :  { %4726 = vst [vmem:[#allocation5_spill] sm:$0xff] %v4095_v21  ;;  %v4111_v24 = vmul.f32 %v3965_v19, %v4730_v40  ;;  %v4115_v42 = vmul.f32 %v3965_v19, %v4731_v56  ;;  %v4732_v21 = vld [vmem:[#allocation22_spill] sm:$0xff]  ;;  %v4131_v40 = vmul.f32 %v3965_v19, %v3807_v59  ;;  %v4135_v56 = vmul.f32 %v3965_v19, %v3816_v61 }
 0x22d   :  { %v4119_v35 = vmul.f32 %v3965_v19, %v4732_v21  ;;  %v4139_v21 = vmul.f32 %v3965_v19, %v3830_v39  ;;  %v4147_v17 = vmul.f32 %v3965_v19, %v3855_v30  ;;  %v4151_v59 = vmul.f32 %v3965_v19, %v3866_v18 }
 0x22e   :  { %v4155_v61 = vmul.f32 %v3965_v19, %v3879_v29  ;;  %v4159_v39 = vmul.f32 %v3965_v19, %v3891_v26  ;;  %v4163_v23 = vmul.f32 %v3965_v19, %v3813_v6  ;;  %v4167_v30 = vmul.f32 %v3965_v19, %v3822_v60 }
 0x22f   :  { %v4171_v18 = vmul.f32 %v3965_v19, %v3810_v58  ;;  %v4175_v29 = vmul.f32 %v3965_v19, %v3819_v14  ;;  %v4179_v26 = vmul.f32 %v3965_v19, %v3836_v47  ;;  %v4183_v6 = vmul.f32 %v3965_v19, %v3847_v12 }
 0x230   :  { %v4187_v60 = vmul.f32 %v3965_v19, %v3833_v0  ;;  %v4191_v58 = vmul.f32 %v3965_v19, %v3844_v52  ;;  %v4195_v14 = vmul.f32 %v3965_v19, %v3861_v11  ;;  %v4199_v47 = vmul.f32 %v3965_v19, %v3872_v28 }
 0x231   :  { %4733 = vst [vmem:[#allocation7_spill] sm:$0xff] %v4179_v26  ;;  %4734 = vst [vmem:[#allocation10_spill] sm:$0xff] %v4183_v6  ;;  %v4739_v26 = vld [vmem:[#allocation23_spill] sm:$0xff]  ;;  %v4740_v6 = vld [vmem:[#allocation24_spill] sm:$0xff] }
 0x232   :  { %4735 = vst [vmem:[#allocation12_spill] sm:$0xff] %v4187_v60  ;;  %4736 = vst [vmem:[#allocation9_spill] sm:$0xff] %v4191_v58  ;;  %v4203_v12 = vmul.f32 %v3965_v19, %v4739_v26  ;;  %v4207_v0 = vmul.f32 %v3965_v19, %v4740_v6  ;;  %v4741_v60 = vsub.s32 0, %v3950_v36  ;;  %v4742_v58 = vld [vmem:[#allocation26_spill] sm:$0xff]  ;;  %v4227_v6 = vmul.f32 %v3965_v19, %v3894_v44 }
 0x233   :  { %4737 = vst [vmem:[#allocation11_spill] sm:$0xff] %v4195_v14  ;;  %4738 = vst [vmem:[#allocation14_spill] sm:$0xff] %v4199_v47  ;;  %v4215_v11 = vmul.f32 %v3965_v19, %v4742_v58  ;;  %v4743_v14 = vld [vmem:[#allocation27_spill] sm:$0xff]  ;;  %v4744_v47 = vld [vmem:[#allocation25_spill] sm:$0xff] }
 0x234   :  { %v4211_v52 = vrot.slane %v1741_v53, %v4741_v60  ;;  %v4219_v28 = vmul.f32 %v3965_v19, %v4743_v14  ;;  %v4223_v26 = vmul.f32 %v3965_v19, %v4744_v47  ;;  %v4751_v14 = vld [vmem:[#allocation8_spill] sm:$0xff]  ;;  %v4752_v47 = vld [vmem:[#allocation5_spill] sm:$0xff] }
 0x236   :  { %v4231_v36 = vadd.f32 %v4211_v52, %v3971_v46  ;;  %v4235_v53 = vadd.f32 %v4211_v52, %v3975_v8  ;;  %v4239_v60 = vadd.f32 %v4211_v52, %v3979_v34  ;;  %v4243_v58 = vadd.f32 %v4211_v52, %v3983_v48 }
 0x237   :  { %v4247_v44 = vadd.f32 %v4211_v52, %v3987_v37  ;;  %v4251_v19 = vadd.f32 %v4211_v52, %v3991_v62  ;;  %v4255_v46 = vadd.f32 %v4211_v52, %v3995_v10  ;;  %v4259_v8 = vadd.f32 %v4211_v52, %v3999_v57 }
 0x238   :  { %4745 = vst [vmem:[#allocation16_spill] sm:$0xff] %v4231_v36  ;;  %4746 = vst [vmem:[#allocation13_spill] sm:$0xff] %v4235_v53  ;;  %v4263_v34 = vadd.f32 %v4211_v52, %v4003_v5  ;;  %v4267_v48 = vadd.f32 %v4211_v52, %v4007_v33  ;;  %v4271_v37 = vadd.f32 %v4211_v52, %v4011_v49 }
 0x239   :  { %4747 = vst [vmem:[#allocation15_spill] sm:$0xff] %v4239_v60  ;;  %4748 = vst [vmem:[#allocation17_spill] sm:$0xff] %v4243_v58  ;;  %v4275_v62 = vadd.f32 %v4211_v52, %v4015_v55  ;;  %v4279_v10 = vadd.f32 %v4211_v52, %v4019_v38  ;;  %v4283_v57 = vadd.f32 %v4211_v52, %v4023_v63 }
 0x23a   :  { %4749 = vst [vmem:[#allocation18_spill] sm:$0xff] %v4247_v44  ;;  %v4287_v5 = vadd.f32 %v4211_v52, %v4027_v41  ;;  %v4291_v33 = vadd.f32 %v4211_v52, %v4031_v7  ;;  %v4295_v49 = vadd.f32 %v4211_v52, %v4035_v25  ;;  %v4299_v55 = vadd.f32 %v4211_v52, %v4039_v2 }
 0x23b   :  { %v4303_v38 = vadd.f32 %v4211_v52, %v4043_v27  ;;  %v4307_v63 = vadd.f32 %v4211_v52, %v4047_v54  ;;  %v4311_v41 = vadd.f32 %v4211_v52, %v4051_v51  ;;  %v4315_v7 = vadd.f32 %v4211_v52, %v4055_v15 }
 0x23c   :  { %v4319_v25 = vadd.f32 %v4211_v52, %v4059_v22  ;;  %v4323_v2 = vadd.f32 %v4211_v52, %v4063_v31  ;;  %v4327_v27 = vadd.f32 %v4211_v52, %v4067_v9  ;;  %v4331_v54 = vadd.f32 %v4211_v52, %v4071_v4  ;;  %v4750_v31 = vld [vmem:[#allocation6_spill] sm:$0xff] }
 0x23d   :  { %v4335_v51 = vadd.f32 %v4211_v52, %v4075_v50  ;;  %v4339_v15 = vadd.f32 %v4211_v52, %v4079_v32  ;;  %v4343_v22 = vadd.f32 %v4211_v52, %v4083_v20  ;;  %v4347_v9 = vadd.f32 %v4211_v52, %v4750_v31 }
 0x23e   :  { %v4351_v4 = vadd.f32 %v4211_v52, %v4751_v14  ;;  %v4355_v50 = vadd.f32 %v4211_v52, %v4752_v47  ;;  %v4359_v32 = vadd.f32 %v4211_v52, %v4099_v13  ;;  %v4363_v20 = vadd.f32 %v4211_v52, %v4103_v16 }
 0x23f   :  { %v4367_v31 = vadd.f32 %v4211_v52, %v4107_v3  ;;  %v4371_v14 = vadd.f32 %v4211_v52, %v4111_v24  ;;  %v4375_v47 = vadd.f32 %v4211_v52, %v4115_v42  ;;  %v4379_v13 = vadd.f32 %v4211_v52, %v4119_v35 }
 0x240   :  { %v4383_v16 = vadd.f32 %v4211_v52, %v4123_v1  ;;  %v4387_v3 = vadd.f32 %v4211_v52, %v4127_v45  ;;  %v4391_v24 = vadd.f32 %v4211_v52, %v4131_v40  ;;  %v4395_v42 = vadd.f32 %v4211_v52, %v4135_v56 }
 0x241   :  { %v4399_v35 = vadd.f32 %v4211_v52, %v4139_v21  ;;  %v4403_v1 = vadd.f32 %v4211_v52, %v4143_v43  ;;  %v4407_v45 = vadd.f32 %v4211_v52, %v4147_v17  ;;  %v4411_v40 = vadd.f32 %v4211_v52, %v4151_v59 }
 0x242   :  { %v4415_v56 = vadd.f32 %v4211_v52, %v4155_v61  ;;  %v4419_v21 = vadd.f32 %v4211_v52, %v4159_v39  ;;  %v4423_v43 = vadd.f32 %v4211_v52, %v4163_v23  ;;  %v4427_v17 = vadd.f32 %v4211_v52, %v4167_v30 }
 0x243   :  { %v4431_v59 = vadd.f32 %v4211_v52, %v4171_v18  ;;  %v4435_v61 = vadd.f32 %v4211_v52, %v4175_v29 }
 0x244   :  { %4753 = vst [vmem:[#allocation19_spill] sm:$0xff] %v4415_v56  ;;  %4754 = vst [vmem:[#allocation20_spill] sm:$0xff] %v4419_v21  ;;  %v4759_v56 = vld [vmem:[#allocation7_spill] sm:$0xff]  ;;  %v4760_v21 = vld [vmem:[#allocation10_spill] sm:$0xff] }
 0x245   :  { %4755 = vst [vmem:[#allocation21_spill] sm:$0xff] %v4423_v43  ;;  %4756 = vst [vmem:[#allocation22_spill] sm:$0xff] %v4427_v17  ;;  %v4439_v39 = vadd.f32 %v4211_v52, %v4759_v56  ;;  %v4443_v23 = vadd.f32 %v4211_v52, %v4760_v21  ;;  %v4761_v43 = vld [vmem:[#allocation12_spill] sm:$0xff]  ;;  %v4762_v17 = vld [vmem:[#allocation9_spill] sm:$0xff]  ;;  %v4463_v21 = vadd.f32 %v4211_v52, %v4203_v12 }
 0x246   :  { %4757 = vst [vmem:[#allocation23_spill] sm:$0xff] %v4431_v59  ;;  %4758 = vst [vmem:[#allocation24_spill] sm:$0xff] %v4435_v61  ;;  %v4447_v30 = vadd.f32 %v4211_v52, %v4761_v43  ;;  %v4451_v18 = vadd.f32 %v4211_v52, %v4762_v17  ;;  %v4763_v59 = vld [vmem:[#allocation11_spill] sm:$0xff]  ;;  %v4764_v61 = vld [vmem:[#allocation14_spill] sm:$0xff]  ;;  %v4467_v43 = vadd.f32 %v4211_v52, %v4207_v0  ;;  %v1957_v0 = vmax.f32 %v4275_v62, 0.0 }
 0x247   :  { %v4455_v29 = vadd.f32 %v4211_v52, %v4763_v59  ;;  %v4459_v56 = vadd.f32 %v4211_v52, %v4764_v61  ;;  %4765 = vst [vmem:[#allocation26_spill] sm:$0xff] %v4463_v21  ;;  %v4471_v17 = vadd.f32 %v4211_v52, %v4215_v11  ;;  %v4475_v59 = vadd.f32 %v4211_v52, %v4219_v28 }
 0x248   :  { %4766 = vst [vmem:[#allocation27_spill] sm:$0xff] %v4467_v43  ;;  %v4479_v61 = vadd.f32 %v4211_v52, %v4223_v26  ;;  %v4483_v12 = vadd.f32 %v4211_v52, %v4227_v6  ;;  %v1951_v28 = vmax.f32 %v4251_v19, 0.0  ;;  %v1953_v26 = vmax.f32 %v4259_v8, 0.0 }
 0x249   :  { %4767 = vst [vmem:[#allocation25_spill] sm:$0xff] %v4471_v17  ;;  %4768 = vst [vmem:[#allocation6_spill] sm:$0xff] %v4475_v59  ;;  %v1952_v59 = vmax.f32 %v4255_v46, 0.0  ;;  %v1955_v52 = vmax.f32 %v4267_v48, 0.0  ;;  %v1956_v6 = vmax.f32 %v4271_v37, 0.0  ;;  %v1958_v43 = vmax.f32 %v4279_v10, 0.0 }
 0x24a   :  { %4769 = vst [vmem:[#allocation8_spill] sm:$0xff] %v4479_v61  ;;  %4770 = vst [vmem:[#allocation5_spill] sm:$0xff] %v4483_v12  ;;  %v1954_v61 = vmax.f32 %v4263_v34, 0.0  ;;  %v1959_v11 = vmax.f32 %v4283_v57, 0.0  ;;  %v1960_v17 = vmax.f32 %v4287_v5, 0.0  ;;  %v1961_v19 = vmax.f32 %v4291_v33, 0.0 }
 0x24b   :  { %v1962_v46 = vmax.f32 %v4295_v49, 0.0  ;;  %v1963_v8 = vmax.f32 %v4299_v55, 0.0  ;;  %v1964_v34 = vmax.f32 %v4303_v38, 0.0  ;;  %v1965_v48 = vmax.f32 %v4307_v63, 0.0  ;;  %v4771_v21 = vld [vmem:[#allocation19_spill] sm:$0xff]  ;;  %v4772_v44 = vld [vmem:[#allocation20_spill] sm:$0xff] }
 0x24c   :  { %v1966_v37 = vmax.f32 %v4311_v41, 0.0  ;;  %v1967_v62 = vmax.f32 %v4315_v7, 0.0  ;;  %v1968_v10 = vmax.f32 %v4319_v25, 0.0  ;;  %v1969_v57 = vmax.f32 %v4323_v2, 0.0  ;;  %v4773_v58 = vld [vmem:[#allocation21_spill] sm:$0xff]  ;;  %v4774_v60 = vld [vmem:[#allocation22_spill] sm:$0xff] }
 0x24d   :  { %v1970_v5 = vmax.f32 %v4327_v27, 0.0  ;;  %v1971_v33 = vmax.f32 %v4331_v54, 0.0  ;;  %v1972_v49 = vmax.f32 %v4335_v51, 0.0  ;;  %v1973_v55 = vmax.f32 %v4339_v15, 0.0  ;;  %v4775_v53 = vld [vmem:[#allocation23_spill] sm:$0xff]  ;;  %v4776_v36 = vld [vmem:[#allocation24_spill] sm:$0xff] }
 0x24e   :  { %v1974_v38 = vmax.f32 %v4343_v22, 0.0  ;;  %v1975_v63 = vmax.f32 %v4347_v9, 0.0  ;;  %v1976_v41 = vmax.f32 %v4351_v4, 0.0  ;;  %v1977_v7 = vmax.f32 %v4355_v50, 0.0  ;;  %v4777_v12 = vld [vmem:[#allocation26_spill] sm:$0xff] }
 0x24f   :  { %v1978_v25 = vmax.f32 %v4359_v32, 0.0  ;;  %v1979_v2 = vmax.f32 %v4363_v20, 0.0  ;;  %v1980_v27 = vmax.f32 %v4367_v31, 0.0  ;;  %v1981_v54 = vmax.f32 %v4371_v14, 0.0 }
 0x250   :  { %v1982_v51 = vmax.f32 %v4375_v47, 0.0  ;;  %v1983_v15 = vmax.f32 %v4379_v13, 0.0  ;;  %v1984_v22 = vmax.f32 %v4383_v16, 0.0  ;;  %v1985_v9 = vmax.f32 %v4387_v3, 0.0 }
 0x251   :  { %v1986_v4 = vmax.f32 %v4391_v24, 0.0  ;;  %v1987_v50 = vmax.f32 %v4395_v42, 0.0  ;;  %v1988_v32 = vmax.f32 %v4399_v35, 0.0  ;;  %v1989_v20 = vmax.f32 %v4403_v1, 0.0 }
 0x252   :  { %v1990_v31 = vmax.f32 %v4407_v45, 0.0  ;;  %v1991_v14 = vmax.f32 %v4411_v40, 0.0  ;;  %v1992_v47 = vmax.f32 %v4771_v21, 0.0  ;;  %v1993_v13 = vmax.f32 %v4772_v44, 0.0 }
 0x253   :  { %v1994_v16 = vmax.f32 %v4773_v58, 0.0  ;;  %v1995_v3 = vmax.f32 %v4774_v60, 0.0  ;;  %v1996_v24 = vmax.f32 %v4775_v53, 0.0  ;;  %v1997_v42 = vmax.f32 %v4776_v36, 0.0  ;;  %v4778_v60 = vld [vmem:[#allocation27_spill] sm:$0xff]  ;;  %v4779_v36 = vld [vmem:[#allocation25_spill] sm:$0xff] }
 0x254   :  { %v1998_v35 = vmax.f32 %v4439_v39, 0.0  ;;  %v1999_v1 = vmax.f32 %v4443_v23, 0.0  ;;  %v2000_v45 = vmax.f32 %v4447_v30, 0.0  ;;  %v2001_v40 = vmax.f32 %v4451_v18, 0.0  ;;  %v4780_v23 = vld [vmem:[#allocation6_spill] sm:$0xff]  ;;  %v4781_v18 = vld [vmem:[#allocation8_spill] sm:$0xff] }
 0x255   :  { %v2002_v21 = vmax.f32 %v4455_v29, 0.0  ;;  %v2003_v44 = vmax.f32 %v4459_v56, 0.0  ;;  %v2004_v58 = vmax.f32 %v4777_v12, 0.0  ;;  %v2005_v53 = vmax.f32 %v4778_v60, 0.0  ;;  %v4782_v56 = vld [vmem:[#allocation5_spill] sm:$0xff]  ;;  %v4783_v60 = vld [vmem:[#allocation16_spill] sm:$0xff] }
 0x256   :  { %v2006_v39 = vmax.f32 %v4779_v36, 0.0  ;;  %v2007_v30 = vmax.f32 %v4780_v23, 0.0  ;;  %v2008_v29 = vmax.f32 %v4781_v18, 0.0  ;;  %v2009_v12 = vmax.f32 %v4782_v56, 0.0  ;;  %v4785_v23 = vld [vmem:[#allocation13_spill] sm:$0xff] }
 0x257   :  { %v4784_v36 = vmax.f32 %v4783_v60, 0.0  ;;  %v4786_v18 = vmax.f32 %v4785_v23, 0.0  ;;  %v4787_v60 = vld [vmem:[#allocation15_spill] sm:$0xff] }
 0x258   :  { %v4788_v23 = vmax.f32 %v4787_v60, 0.0 }
 0x259   :  { %v2611_v56 = vpack.c.bf16 %v4786_v18, %v4784_v36  ;;  %v4789_v18 = vld [vmem:[#allocation17_spill] sm:$0xff] }
 0x25a   :  { %v4790_v36 = vmax.f32 %v4789_v18, 0.0  ;;  %v4791_v18 = vld [vmem:[#allocation18_spill] sm:$0xff] }
 0x25b   :  { %2612 = vst [vmem:[%s4659_s4] sm:$0xff] %v2611_v56  }
 0x25c   :  { %v2616_v60 = vpack.c.bf16 %v4790_v36, %v4788_v23  ;;  %v4792_v23 = vmax.f32 %v4791_v18, 0.0  ;;  %v2626_v18 = vpack.c.bf16 %v1953_v26, %v1952_v59  ;;  %v2641_v26 = vpack.c.bf16 %v1959_v11, %v1958_v43 }
 0x25d   :  { %v2646_v59 = vpack.c.bf16 %v1961_v19, %v1960_v17  ;;  %v2661_v43 = vpack.c.bf16 %v1967_v62, %v1966_v37  ;;  %v2666_v17 = vpack.c.bf16 %v1969_v57, %v1968_v10  ;;  %v2671_v11 = vpack.c.bf16 %v1971_v33, %v1970_v5 }
 0x25e   :  { %v2621_v36 = vpack.c.bf16 %v1951_v28, %v4792_v23  ;;  %v2631_v23 = vpack.c.bf16 %v1955_v52, %v1954_v61  ;;  %v2636_v28 = vpack.c.bf16 %v1957_v0, %v1956_v6  ;;  %2768 = vst [vmem:[%s4659_s4 + $0x8] sm:$0xff] %v2616_v60   ;;  %2770 = vst [vmem:[%s4659_s4 + $0x18] sm:$0xff] %v2626_v18  }
 0x25f   :  { %v2651_v61 = vpack.c.bf16 %v1963_v8, %v1962_v46  ;;  %v2656_v0 = vpack.c.bf16 %v1965_v48, %v1964_v34  ;;  %2773 = vst [vmem:[%s4659_s4 + $0x30] sm:$0xff] %v2641_v26   ;;  %2774 = vst [vmem:[%s4659_s4 + $0x38] sm:$0xff] %v2646_v59   ;;  %v2676_v52 = vpack.c.bf16 %v1973_v55, %v1972_v49 }
 0x260   :  { %2769 = vst [vmem:[%s4659_s4 + $0x10] sm:$0xff] %v2621_v36   ;;  %2771 = vst [vmem:[%s4659_s4 + $0x20] sm:$0xff] %v2631_v23   ;;  %v2681_v6 = vpack.c.bf16 %v1975_v63, %v1974_v38  ;;  %v2686_v19 = vpack.c.bf16 %v1977_v7, %v1976_v41  ;;  %v2691_v46 = vpack.c.bf16 %v1979_v2, %v1978_v25 }
 0x261   :  { %2772 = vst [vmem:[%s4659_s4 + $0x28] sm:$0xff] %v2636_v28   ;;  %2775 = vst [vmem:[%s4659_s4 + $0x40] sm:$0xff] %v2651_v61   ;;  %v2696_v8 = vpack.c.bf16 %v1981_v54, %v1980_v27  ;;  %v2701_v34 = vpack.c.bf16 %v1983_v15, %v1982_v51  ;;  %v2706_v48 = vpack.c.bf16 %v1985_v9, %v1984_v22 }
 0x262   :  { %2776 = vst [vmem:[%s4659_s4 + $0x48] sm:$0xff] %v2656_v0   ;;  %2777 = vst [vmem:[%s4659_s4 + $0x50] sm:$0xff] %v2661_v43   ;;  %v2711_v37 = vpack.c.bf16 %v1987_v50, %v1986_v4  ;;  %v2716_v62 = vpack.c.bf16 %v1989_v20, %v1988_v32  ;;  %v2721_v10 = vpack.c.bf16 %v1991_v14, %v1990_v31 }
 0x263   :  { %2778 = vst [vmem:[%s4659_s4 + $0x58] sm:$0xff] %v2666_v17   ;;  %2779 = vst [vmem:[%s4659_s4 + $0x60] sm:$0xff] %v2671_v11   ;;  %v2726_v57 = vpack.c.bf16 %v1993_v13, %v1992_v47  ;;  %v2731_v5 = vpack.c.bf16 %v1995_v3, %v1994_v16  ;;  %v2736_v33 = vpack.c.bf16 %v1997_v42, %v1996_v24 }
 0x264   :  { %2780 = vst [vmem:[%s4659_s4 + $0x68] sm:$0xff] %v2676_v52   ;;  %2781 = vst [vmem:[%s4659_s4 + $0x70] sm:$0xff] %v2681_v6   ;;  %v2741_v49 = vpack.c.bf16 %v1999_v1, %v1998_v35  ;;  %v2746_v55 = vpack.c.bf16 %v2001_v40, %v2000_v45  ;;  %v2751_v38 = vpack.c.bf16 %v2003_v44, %v2002_v21 }
 0x265   :  { %2782 = vst [vmem:[%s4659_s4 + $0x78] sm:$0xff] %v2686_v19   ;;  %2783 = vst [vmem:[%s4659_s4 + $0x80] sm:$0xff] %v2691_v46   ;;  %v2756_v63 = vpack.c.bf16 %v2005_v53, %v2004_v58  ;;  %v2761_v41 = vpack.c.bf16 %v2007_v30, %v2006_v39  ;;  %v2766_v7 = vpack.c.bf16 %v2009_v12, %v2008_v29 }
 0x266   :  { %2784 = vst [vmem:[%s4659_s4 + $0x88] sm:$0xff] %v2696_v8   ;;  %2785 = vst [vmem:[%s4659_s4 + $0x90] sm:$0xff] %v2701_v34  }
 0x267   :  { %2786 = vst [vmem:[%s4659_s4 + $0x98] sm:$0xff] %v2706_v48   ;;  %2787 = vst [vmem:[%s4659_s4 + $0xa0] sm:$0xff] %v2711_v37  }
 0x268   :  { %2788 = vst [vmem:[%s4659_s4 + $0xa8] sm:$0xff] %v2716_v62   ;;  %2789 = vst [vmem:[%s4659_s4 + $0xb0] sm:$0xff] %v2721_v10  }
 0x269   :  { %2790 = vst [vmem:[%s4659_s4 + $0xb8] sm:$0xff] %v2726_v57   ;;  %2791 = vst [vmem:[%s4659_s4 + $0xc0] sm:$0xff] %v2731_v5  }
 0x26a   :  { %2792 = vst [vmem:[%s4659_s4 + $0xc8] sm:$0xff] %v2736_v33   ;;  %2793 = vst [vmem:[%s4659_s4 + $0xd0] sm:$0xff] %v2741_v49  }
 0x26b   :  { %2794 = vst [vmem:[%s4659_s4 + $0xd8] sm:$0xff] %v2746_v55   ;;  %2795 = vst [vmem:[%s4659_s4 + $0xe0] sm:$0xff] %v2751_v38  }
 0x26c   :  { %2796 = vst [vmem:[%s4659_s4 + $0xe8] sm:$0xff] %v2756_v63   ;;  %2797 = vst [vmem:[%s4659_s4 + $0xf0] sm:$0xff] %v2761_v41  }
 0x26d   :  { %2798 = vst [vmem:[%s4659_s4 + $0xf8] sm:$0xff] %v2766_v7  }

</bundles_post_ra>
